<compile_context>
chip_gen: v6e
topology: v6e:2x2x1
jax: 0.10.0
libtpu: 0.0.40
codegen_flags: <defaults>
</compile_context>

<pallas_src>
import numpy as np

import jax
import jax.numpy as jnp
from jax import lax
from jax.experimental import pallas as pl
from jax.experimental.pallas import tpu as pltpu


# ----------------------------------------------------------------------------
# Kernel 1: fused conv1 + sigmoid + pool1 + conv2 + sigmoid + pool2
#   grid = (num_groups,), G images per program, stacked along the row axis.
#
#   x_ref   : (1, G*28, 252)  host-built 9-tap im2col rows of the padded image
#   w1_ref  : (252, 448)      block-diag conv1 weights  -> A1 (G*28, 448)
#   b1_ref  : (1, 448)
#   rh_ref  : (448, 256)      pool1 horizontal windows + zero-padded 16-grid
#   pv_ref  : (3, G*16, G*28) pool1 vertical windows fused w/ conv2 row shift
#   w2_ref  : (3, 256, 416)   conv2 weights, one matrix per kernel row
#   b2_ref  : (1, 416)
#   pv2_ref : (G*8, G*16)     pool2 vertical windows
#   rh2_ref : (416, 192)      pool2 horizontal windows (1/9 folded in)
#   o_ref   : (1, G*8, 192)   per image: 8 rows (6 valid), (w,c) on lanes
# ----------------------------------------------------------------------------
def _feature_kernel(x_ref, w1_ref, b1_ref, rh_ref, pv_ref, w2_ref, b2_ref,
                    pv2_ref, rh2_ref, o_ref):
    f32 = jnp.float32

    # conv1 (1->16, 3x3, pad 1) + sigmoid : one matmul
    a1 = jax.nn.sigmoid(
        jnp.dot(x_ref[0], w1_ref[...], preferred_element_type=f32)
        + b1_ref[...])                                         # (G*28, 448)

    # pool1, horizontal part (3-wide windows, stride 2, /9, zero-padded grid)
    ah = jnp.dot(a1, rh_ref[...], preferred_element_type=f32)  # (G*28, 256)

    # pool1 vertical part fused with conv2 (16->32, 3x3, pad 1):
    #   for each kernel row di: rows of the padded pooled grid shifted by di,
    #   then matmul against the (dj, cin)->cout packed weights.
    terms = []
    for di in range(3):
        q = jnp.dot(pv_ref[di], ah, preferred_element_type=f32)        # (G*16, 256)
        terms.append(jnp.dot(q, w2_ref[di], preferred_element_type=f32))  # (G*16, 416)
    a2 = jax.nn.sigmoid(terms[0] + terms[1] + terms[2] + b2_ref[...])  # (G*16, 416)

    # pool2 (3x3, stride 2, /9): vertical then horizontal selection matmuls
    v2 = jnp.dot(pv2_ref[...], a2, preferred_element_type=f32)         # (G*8, 416)
    o_ref[0] = jnp.dot(v2, rh2_ref[...],
                       preferred_element_type=f32).astype(o_ref.dtype)  # (G*8, 192)


def conv_features(x9g, w1big, b1big, rh, pvg, w2big, b2big, pv2g, rh2):
    steps, rows, k1 = x9g.shape
    g8 = pv2g.shape[0]
    return pl.pallas_call(
        _feature_kernel,
        out_shape=jax.ShapeDtypeStruct((steps, g8, 192), jnp.float32),
        grid_spec=pltpu.PrefetchScalarGridSpec(
            num_scalar_prefetch=0,
            grid=(steps,),
            in_specs=[
                pl.BlockSpec((1, rows, k1), lambda s: (s, 0, 0)),
                pl.BlockSpec(w1big.shape, lambda s: (0, 0)),
                pl.BlockSpec(b1big.shape, lambda s: (0, 0)),
                pl.BlockSpec(rh.shape, lambda s: (0, 0)),
                pl.BlockSpec(pvg.shape, lambda s: (0, 0, 0)),
                pl.BlockSpec(w2big.shape, lambda s: (0, 0, 0)),
                pl.BlockSpec(b2big.shape, lambda s: (0, 0)),
                pl.BlockSpec(pv2g.shape, lambda s: (0, 0)),
                pl.BlockSpec(rh2.shape, lambda s: (0, 0)),
            ],
            out_specs=pl.BlockSpec((1, g8, 192), lambda s: (s, 0, 0)),
        ),
        compiler_params=pltpu.CompilerParams(dimension_semantics=("parallel",)),
    )(x9g, w1big, b1big, rh, pvg, w2big, b2big, pv2g, rh2)


# ----------------------------------------------------------------------------
# Kernel 2: fused fc1 -> sigmoid -> fc2 -> sigmoid -> fc3, M-tiled over batch
# ----------------------------------------------------------------------------
def _fc_kernel(x_ref, w1_ref, b1_ref, w2_ref, b2_ref, w3_ref, b3_ref, o_ref):
    h = jnp.dot(x_ref[...], w1_ref[...], preferred_element_type=jnp.float32)
    h = jax.nn.sigmoid(h + b1_ref[...])
    h = jnp.dot(h, w2_ref[...], preferred_element_type=jnp.float32)
    h = jax.nn.sigmoid(h + b2_ref[...])
    out = jnp.dot(h, w3_ref[...], preferred_element_type=jnp.float32) + b3_ref[...]
    o_ref[...] = out.astype(o_ref.dtype)


def fused_fc(feat, w1, b1, w2, b2, w3, b3, *, tile_m=128):
    M, K1 = feat.shape
    N1, N2, N3 = w1.shape[1], w2.shape[1], w3.shape[1]
    tm = M if M <= tile_m else tile_m
    grid = pl.cdiv(M, tm)
    return pl.pallas_call(
        _fc_kernel,
        out_shape=jax.ShapeDtypeStruct((M, N3), jnp.float32),
        grid_spec=pltpu.PrefetchScalarGridSpec(
            num_scalar_prefetch=0,
            grid=(grid,),
            in_specs=[
                pl.BlockSpec((tm, K1), lambda i: (i, 0)),
                pl.BlockSpec((K1, N1), lambda i: (0, 0)),
                pl.BlockSpec((1, N1), lambda i: (0, 0)),
                pl.BlockSpec((N1, N2), lambda i: (0, 0)),
                pl.BlockSpec((1, N2), lambda i: (0, 0)),
                pl.BlockSpec((N2, N3), lambda i: (0, 0)),
                pl.BlockSpec((1, N3), lambda i: (0, 0)),
            ],
            out_specs=pl.BlockSpec((tm, N3), lambda i: (i, 0)),
        ),
        compiler_params=pltpu.CompilerParams(dimension_semantics=("parallel",)),
    )(feat, w1, b1, w2, b2, w3, b3)


# ----------------------------------------------------------------------------
# One-time weight packing (hoisted out of the forward pass, numpy on host)
# ----------------------------------------------------------------------------
def prepare_params(params):
    f32 = np.float32
    c1w = np.asarray(params["conv1_w"], f32)      # (16, 1, 3, 3)
    c2w = np.asarray(params["conv2_w"], f32)      # (32, 16, 3, 3)

    # conv1 as one matmul on the host-built 9-tap rows:
    #   W1big[w*9 + (3*di+dj), w*16 + c] = conv1_w[c, 0, di, dj]
    taps1 = c1w[:, 0, :, :].transpose(1, 2, 0).reshape(9, 16)   # [3*di+dj, c]
    w1big = np.zeros((28 * 9, 28 * 16), f32)
    for w in range(28):
        w1big[w * 9:(w + 1) * 9, w * 16:(w + 1) * 16] = taps1
    b1big = np.tile(np.asarray(params["conv1_b"], f32), 28).reshape(1, 28 * 16)

    # conv2 as 3 matmuls (one per kernel row di) on the padded pooled grid:
    #   W2big[di, gw*16 + c, n*32 + c2] = conv2_w[c2, c, di, gw - n], gw-n in {0,1,2}
    w2big = np.zeros((3, 16 * 16, 13 * 32), f32)
    for di in range(3):
        for dj in range(3):
            blk = c2w[:, :, di, dj].T                           # (16 cin, 32 cout)
            for n in range(13):
                gw = n + dj
                w2big[di, gw * 16:(gw + 1) * 16, n * 32:(n + 1) * 32] = blk
    b2big = np.tile(np.asarray(params["conv2_b"], f32), 13).reshape(1, 13 * 32)

    # fc1: permute K from torch's (c, h, w) flatten order to the kernel's (h, w, c)
    fc1 = (np.asarray(params["fc1_w"], f32).reshape(400, 32, 6, 6)
           .transpose(0, 2, 3, 1).reshape(400, 1152).T)          # (1152, 400)

    packed = {
        "w1big": w1big, "b1big": b1big, "w2big": w2big, "b2big": b2big,
        "fc1_w": fc1,
        "fc1_b": np.asarray(params["fc1_b"], f32).reshape(1, 400),
        "fc2_w": np.asarray(params["fc2_w"], f32).T,             # (400, 100)
        "fc2_b": np.asarray(params["fc2_b"], f32).reshape(1, 100),
        "fc3_w": np.asarray(params["fc3_w"], f32).T,             # (100, 10)
        "fc3_b": np.asarray(params["fc3_b"], f32).reshape(1, 10),
    }
    return {k: jnp.asarray(v) for k, v in packed.items()}


# ----------------------------------------------------------------------------
# Structural pooling / selection matrices (weight-independent, trace-time
# constants).  G = number of images stacked per grid step.
# ----------------------------------------------------------------------------
def _structural_mats(G):
    f32 = np.float32
    # pool1 horizontal: Rh[w*16+c, (j+1)*16+c] = 1/9 for w in {2j,2j+1,2j+2},
    # producing a zero-padded 16-wide grid (cols 0, 14, 15 stay zero).
    rh = np.zeros((28 * 16, 16 * 16), f32)
    eye16 = np.eye(16, dtype=f32) / 9.0
    for j in range(13):
        for dj in range(3):
            w = 2 * j + dj
            rh[w * 16:(w + 1) * 16, (j + 1) * 16:(j + 2) * 16] += eye16
    # pool1 vertical fused with conv2 row shift di:
    #   Pv[di, m, h] = 1 when 1 <= m+di <= 13 and h in {2*(m+di-1)+dv}
    pv = np.zeros((3, 16, 28), f32)
    for di in range(3):
        for m in range(16):
            gh = m + di
            if 1 <= gh <= 13:
                pv[di, m, 2 * (gh - 1):2 * (gh - 1) + 3] = 1.0
    # pool2 vertical / horizontal (1/9 folded into Rh2)
    pv2 = np.zeros((8, 16), f32)
    for u in range(6):
        pv2[u, 2 * u:2 * u + 3] = 1.0
    rh2 = np.zeros((13 * 32, 6 * 32), f32)
    eye32 = np.eye(32, dtype=f32) / 9.0
    for v in range(6):
        for dn in range(3):
            n = 2 * v + dn
            rh2[n * 32:(n + 1) * 32, v * 32:(v + 1) * 32] += eye32
    # Block-diagonal versions over the image group (images stacked on rows).
    pvg = np.zeros((3, G * 16, G * 28), f32)
    pv2g = np.zeros((G * 8, G * 16), f32)
    for g in range(G):
        pvg[:, g * 16:(g + 1) * 16, g * 28:(g + 1) * 28] = pv
        pv2g[g * 8:(g + 1) * 8, g * 16:(g + 1) * 16] = pv2
    return jnp.asarray(pvg), jnp.asarray(pv2g), jnp.asarray(rh), jnp.asarray(rh2)


# ----------------------------------------------------------------------------
# CustomNet forward: 2 pallas_calls + tiny XLA glue (pad / stack / reshape)
# ----------------------------------------------------------------------------
def custom_net_forward(x_nchw, packed, group=8):
    B, C, H, W = x_nchw.shape
    assert (C, H, W) == (1, 28, 28), "CustomNet expects 1x28x28 inputs"

    G = min(group, B)
    Bp = ((B + G - 1) // G) * G                          # pad batch to group size

    # host-side 9-tap im2col of the zero-padded image (28 KiB/image, trivial)
    img = x_nchw[:, 0, :, :].astype(jnp.float32)                 # (B, 28, 28)
    padi = jnp.pad(img, ((0, Bp - B), (1, 1), (1, 1)))           # (Bp, 30, 30)
    x9 = jnp.stack([padi[:, di:di + 28, dj:dj + 28]
                    for di in range(3) for dj in range(3)], axis=-1)  # (Bp,28,28,9)
    x9 = x9.reshape(Bp // G, G * 28, 28 * 9)                     # (steps, G*28, 252)

    pvg, pv2g, rh, rh2 = _structural_mats(G)             # trace-time constants

    feat8 = conv_features(x9, packed["w1big"], packed["b1big"], rh, pvg,
                          packed["w2big"], packed["b2big"], pv2g, rh2)
    # (steps, G*8, 192) -> (Bp, 8, 192) -> drop 2 junk rows + batch padding
    feat = feat8.reshape(Bp, 8, 192)[:B, :6, :].reshape(B, 1152)   # (h, w, c) order

    return fused_fc(feat,
                    packed["fc1_w"], packed["fc1_b"],
                    packed["fc2_w"], packed["fc2_b"],
                    packed["fc3_w"], packed["fc3_b"])              # (B, 10)


# ----------------------------------------------------------------------------
# Pure-JAX reference (correctness check only)
# ----------------------------------------------------------------------------
def reference_forward(x_nchw, params):
    with jax.default_matmul_precision("highest"):
        def conv(x, w, b):
            y = lax.conv_general_dilated(x, w, (1, 1), [(1, 1), (1, 1)],
                                         dimension_numbers=("NCHW", "OIHW", "NCHW"))
            return y + b.reshape(1, -1, 1, 1)

        def avg_pool(x):
            s = lax.reduce_window(x, 0.0, lax.add, (1, 1, 3, 3), (1, 1, 2, 2), "VALID")
            return s / 9.0

        x = jax.nn.sigmoid(conv(x_nchw, params["conv1_w"], params["conv1_b"]))
        x = avg_pool(x)
        x = jax.nn.sigmoid(conv(x, params["conv2_w"], params["conv2_b"]))
        x = avg_pool(x)
        x = x.reshape(x.shape[0], -1)
        x = jax.nn.sigmoid(x @ params["fc1_w"].T + params["fc1_b"])
        x = jax.nn.sigmoid(x @ params["fc2_w"].T + params["fc2_b"])
        return x @ params["fc3_w"].T + params["fc3_b"]


# ----------------------------------------------------------------------------
# Deterministic synthetic parameters + driver
# ----------------------------------------------------------------------------
def init_params(key):
    ks = jax.random.split(key, 10)
    n = lambda k, shape, scale: (scale * jax.random.normal(k, shape)).astype(jnp.float32)
    return {
        "conv1_w": n(ks[0], (16, 1, 3, 3), 0.3),
        "conv1_b": n(ks[1], (16,), 0.1),
        "conv2_w": n(ks[2], (32, 16, 3, 3), 0.1),
        "conv2_b": n(ks[3], (32,), 0.1),
        "fc1_w": n(ks[4], (400, 32 * 6 * 6), 0.05),
        "fc1_b": n(ks[5], (400,), 0.05),
        "fc2_w": n(ks[6], (100, 400), 0.05),
        "fc2_b": n(ks[7], (100,), 0.05),
        "fc3_w": n(ks[8], (10, 100), 0.05),
        "fc3_b": n(ks[9], (10,), 0.05),
    }


if __name__ == "__main__":
    key = jax.random.PRNGKey(0)
    pkey, xkey = jax.random.split(key)
    params = init_params(pkey)
    packed = prepare_params(params)           # weight packing hoisted out of forward
    jax.block_until_ready(jax.tree_util.tree_leaves(packed))

    # Input must be 1x28x28 so that the flattened features match fc1 (32*6*6).
    x = jax.random.normal(xkey, (2, 1, 28, 28), dtype=jnp.float32)

    fwd = jax.jit(custom_net_forward)
    out = fwd(x, packed)
    jax.block_until_ready(out)

    ref = reference_forward(x, params)
    assert out.shape == (2, 10)
    err = float(jnp.max(jnp.abs(out - ref)))
    assert err < 2e-3, f"mismatch vs pure-JAX reference: {err}"

    print("KERNEL_OK")
</pallas_src>

<mosaic_0001>
module attributes {stable_mosaic.version = 11 : i64} {
  func.func @_feature_kernel(%arg0: i32, %arg1: memref<1x56x252xf32, #tpu.memory_space<vmem>>, %arg2: memref<252x448xf32, #tpu.memory_space<vmem>>, %arg3: memref<1x448xf32, #tpu.memory_space<vmem>>, %arg4: memref<448x256xf32, #tpu.memory_space<vmem>>, %arg5: memref<3x32x56xf32, #tpu.memory_space<vmem>>, %arg6: memref<3x256x416xf32, #tpu.memory_space<vmem>>, %arg7: memref<1x416xf32, #tpu.memory_space<vmem>>, %arg8: memref<16x32xf32, #tpu.memory_space<vmem>>, %arg9: memref<416x192xf32, #tpu.memory_space<vmem>>, %arg10: memref<1x16x192xf32, #tpu.memory_space<vmem>>) attributes {dimension_semantics = [#tpu.dimension_semantics<parallel>], iteration_bounds = array<i64: 1>, scalar_prefetch = 0 : i64, scratch_operands = 0 : i64, tpu.core_type = #tpu.core_type<tc>, window_params = [{transform_indices = @transform_0, window_bounds = array<i64: 1, 56, 252>}, {pipeline_mode = #tpu.pipeline_mode<synchronous>, transform_indices = @transform_1, window_bounds = array<i64: 252, 448>}, {pipeline_mode = #tpu.pipeline_mode<synchronous>, transform_indices = @transform_2, window_bounds = array<i64: 1, 448>}, {pipeline_mode = #tpu.pipeline_mode<synchronous>, transform_indices = @transform_3, window_bounds = array<i64: 448, 256>}, {pipeline_mode = #tpu.pipeline_mode<synchronous>, transform_indices = @transform_4, window_bounds = array<i64: 3, 32, 56>}, {pipeline_mode = #tpu.pipeline_mode<synchronous>, transform_indices = @transform_5, window_bounds = array<i64: 3, 256, 416>}, {pipeline_mode = #tpu.pipeline_mode<synchronous>, transform_indices = @transform_6, window_bounds = array<i64: 1, 416>}, {pipeline_mode = #tpu.pipeline_mode<synchronous>, transform_indices = @transform_7, window_bounds = array<i64: 16, 32>}, {pipeline_mode = #tpu.pipeline_mode<synchronous>, transform_indices = @transform_8, window_bounds = array<i64: 416, 192>}, {transform_indices = @transform_9, window_bounds = array<i64: 1, 16, 192>}]} {
    %c0 = arith.constant 0 : index
    %c0_0 = arith.constant 0 : index
    %c0_1 = arith.constant 0 : index
    %0 = vector.load %arg1[%c0, %c0_0, %c0_1] : memref<1x56x252xf32, #tpu.memory_space<vmem>>, vector<1x56x252xf32>
    %1 = vector.shape_cast %0 : vector<1x56x252xf32> to vector<56x252xf32>
    %c0_2 = arith.constant 0 : index
    %c0_3 = arith.constant 0 : index
    %2 = vector.load %arg2[%c0_2, %c0_3] : memref<252x448xf32, #tpu.memory_space<vmem>>, vector<252x448xf32>
    %cst = arith.constant dense<0.000000e+00> : vector<56x448xf32>
    %3 = tpu.matmul %1, %2, %cst {dimension_numbers = #tpu.dot_dimension_numbers<[1], [0], [0], [1], [0, 0, 1, 1], [], []>} : vector<56x252xf32>, vector<252x448xf32>, vector<56x448xf32> -> vector<56x448xf32>
    %c0_4 = arith.constant 0 : index
    %c0_5 = arith.constant 0 : index
    %4 = vector.load %arg3[%c0_4, %c0_5] : memref<1x448xf32, #tpu.memory_space<vmem>>, vector<1x448xf32>
    %5 = vector.broadcast %4 : vector<1x448xf32> to vector<56x448xf32>
    %6 = arith.addf %3, %5 : vector<56x448xf32>
    %7 = arith.negf %6 : vector<56x448xf32>
    %8 = math.exp %7 : vector<56x448xf32>
    %cst_6 = arith.constant 1.000000e+00 : f32
    %9 = vector.broadcast %cst_6 : f32 to vector<56x448xf32>
    %10 = arith.addf %9, %8 : vector<56x448xf32>
    %11 = arith.divf %9, %10 : vector<56x448xf32>
    %c0_7 = arith.constant 0 : index
    %c0_8 = arith.constant 0 : index
    %12 = vector.load %arg4[%c0_7, %c0_8] : memref<448x256xf32, #tpu.memory_space<vmem>>, vector<448x256xf32>
    %cst_9 = arith.constant dense<0.000000e+00> : vector<56x256xf32>
    %13 = tpu.matmul %11, %12, %cst_9 {dimension_numbers = #tpu.dot_dimension_numbers<[1], [0], [0], [1], [0, 0, 1, 1], [], []>} : vector<56x448xf32>, vector<448x256xf32>, vector<56x256xf32> -> vector<56x256xf32>
    %c0_10 = arith.constant 0 : index
    %c0_11 = arith.constant 0 : index
    %c0_12 = arith.constant 0 : index
    %14 = vector.load %arg5[%c0_10, %c0_11, %c0_12] : memref<3x32x56xf32, #tpu.memory_space<vmem>>, vector<1x32x56xf32>
    %15 = vector.shape_cast %14 : vector<1x32x56xf32> to vector<32x56xf32>
    %cst_13 = arith.constant dense<0.000000e+00> : vector<32x256xf32>
    %16 = tpu.matmul %15, %13, %cst_13 {dimension_numbers = #tpu.dot_dimension_numbers<[1], [0], [0], [1], [0, 0, 1, 1], [], []>} : vector<32x56xf32>, vector<56x256xf32>, vector<32x256xf32> -> vector<32x256xf32>
    %c0_14 = arith.constant 0 : index
    %c0_15 = arith.constant 0 : index
    %c0_16 = arith.constant 0 : index
    %17 = vector.load %arg6[%c0_14, %c0_15, %c0_16] : memref<3x256x416xf32, #tpu.memory_space<vmem>>, vector<1x256x416xf32>
    %18 = vector.shape_cast %17 : vector<1x256x416xf32> to vector<256x416xf32>
    %cst_17 = arith.constant dense<0.000000e+00> : vector<32x416xf32>
    %19 = tpu.matmul %16, %18, %cst_17 {dimension_numbers = #tpu.dot_dimension_numbers<[1], [0], [0], [1], [0, 0, 1, 1], [], []>} : vector<32x256xf32>, vector<256x416xf32>, vector<32x416xf32> -> vector<32x416xf32>
    %c1 = arith.constant 1 : index
    %c0_18 = arith.constant 0 : index
    %c0_19 = arith.constant 0 : index
    %20 = vector.load %arg5[%c1, %c0_18, %c0_19] : memref<3x32x56xf32, #tpu.memory_space<vmem>>, vector<1x32x56xf32>
    %21 = vector.shape_cast %20 : vector<1x32x56xf32> to vector<32x56xf32>
    %cst_20 = arith.constant dense<0.000000e+00> : vector<32x256xf32>
    %22 = tpu.matmul %21, %13, %cst_20 {dimension_numbers = #tpu.dot_dimension_numbers<[1], [0], [0], [1], [0, 0, 1, 1], [], []>} : vector<32x56xf32>, vector<56x256xf32>, vector<32x256xf32> -> vector<32x256xf32>
    %c1_21 = arith.constant 1 : index
    %c0_22 = arith.constant 0 : index
    %c0_23 = arith.constant 0 : index
    %23 = vector.load %arg6[%c1_21, %c0_22, %c0_23] : memref<3x256x416xf32, #tpu.memory_space<vmem>>, vector<1x256x416xf32>
    %24 = vector.shape_cast %23 : vector<1x256x416xf32> to vector<256x416xf32>
    %cst_24 = arith.constant dense<0.000000e+00> : vector<32x416xf32>
    %25 = tpu.matmul %22, %24, %cst_24 {dimension_numbers = #tpu.dot_dimension_numbers<[1], [0], [0], [1], [0, 0, 1, 1], [], []>} : vector<32x256xf32>, vector<256x416xf32>, vector<32x416xf32> -> vector<32x416xf32>
    %c2 = arith.constant 2 : index
    %c0_25 = arith.constant 0 : index
    %c0_26 = arith.constant 0 : index
    %26 = vector.load %arg5[%c2, %c0_25, %c0_26] : memref<3x32x56xf32, #tpu.memory_space<vmem>>, vector<1x32x56xf32>
    %27 = vector.shape_cast %26 : vector<1x32x56xf32> to vector<32x56xf32>
    %cst_27 = arith.constant dense<0.000000e+00> : vector<32x256xf32>
    %28 = tpu.matmul %27, %13, %cst_27 {dimension_numbers = #tpu.dot_dimension_numbers<[1], [0], [0], [1], [0, 0, 1, 1], [], []>} : vector<32x56xf32>, vector<56x256xf32>, vector<32x256xf32> -> vector<32x256xf32>
    %c2_28 = arith.constant 2 : index
    %c0_29 = arith.constant 0 : index
    %c0_30 = arith.constant 0 : index
    %29 = vector.load %arg6[%c2_28, %c0_29, %c0_30] : memref<3x256x416xf32, #tpu.memory_space<vmem>>, vector<1x256x416xf32>
    %30 = vector.shape_cast %29 : vector<1x256x416xf32> to vector<256x416xf32>
    %cst_31 = arith.constant dense<0.000000e+00> : vector<32x416xf32>
    %31 = tpu.matmul %28, %30, %cst_31 {dimension_numbers = #tpu.dot_dimension_numbers<[1], [0], [0], [1], [0, 0, 1, 1], [], []>} : vector<32x256xf32>, vector<256x416xf32>, vector<32x416xf32> -> vector<32x416xf32>
    %32 = arith.addf %19, %25 : vector<32x416xf32>
    %33 = arith.addf %32, %31 : vector<32x416xf32>
    %c0_32 = arith.constant 0 : index
    %c0_33 = arith.constant 0 : index
    %34 = vector.load %arg7[%c0_32, %c0_33] : memref<1x416xf32, #tpu.memory_space<vmem>>, vector<1x416xf32>
    %35 = vector.broadcast %34 : vector<1x416xf32> to vector<32x416xf32>
    %36 = arith.addf %33, %35 : vector<32x416xf32>
    %37 = arith.negf %36 : vector<32x416xf32>
    %38 = math.exp %37 : vector<32x416xf32>
    %cst_34 = arith.constant 1.000000e+00 : f32
    %39 = vector.broadcast %cst_34 : f32 to vector<32x416xf32>
    %40 = arith.addf %39, %38 : vector<32x416xf32>
    %41 = arith.divf %39, %40 : vector<32x416xf32>
    %c0_35 = arith.constant 0 : index
    %c0_36 = arith.constant 0 : index
    %42 = vector.load %arg8[%c0_35, %c0_36] : memref<16x32xf32, #tpu.memory_space<vmem>>, vector<16x32xf32>
    %cst_37 = arith.constant dense<0.000000e+00> : vector<16x416xf32>
    %43 = tpu.matmul %42, %41, %cst_37 {dimension_numbers = #tpu.dot_dimension_numbers<[1], [0], [0], [1], [0, 0, 1, 1], [], []>} : vector<16x32xf32>, vector<32x416xf32>, vector<16x416xf32> -> vector<16x416xf32>
    %c0_38 = arith.constant 0 : index
    %c0_39 = arith.constant 0 : index
    %44 = vector.load %arg9[%c0_38, %c0_39] : memref<416x192xf32, #tpu.memory_space<vmem>>, vector<416x192xf32>
    %cst_40 = arith.constant dense<0.000000e+00> : vector<16x192xf32>
    %45 = tpu.matmul %43, %44, %cst_40 {dimension_numbers = #tpu.dot_dimension_numbers<[1], [0], [0], [1], [0, 0, 1, 1], [], []>} : vector<16x416xf32>, vector<416x192xf32>, vector<16x192xf32> -> vector<16x192xf32>
    %c0_41 = arith.constant 0 : index
    %c0_42 = arith.constant 0 : index
    %c0_43 = arith.constant 0 : index
    %46 = vector.load %arg10[%c0_41, %c0_42, %c0_43] : memref<1x16x192xf32, #tpu.memory_space<vmem>>, vector<1x16x192xf32>
    %47 = vector.shape_cast %46 : vector<1x16x192xf32> to vector<16x192xf32>
    %48 = vector.shape_cast %45 : vector<16x192xf32> to vector<1x16x192xf32>
    tpu.vector_store %arg10[%c0_41, %c0_42, %c0_43], %48 {strides = array<i32>} : memref<1x16x192xf32, #tpu.memory_space<vmem>>, vector<1x16x192xf32>,
    return
  }
  func.func @transform_0(%arg0: i32) -> (i32, i32, i32) {
    %c0_i32 = arith.constant 0 : i32
    %c0_i32_0 = arith.constant 0 : i32
    %c0_i32_1 = arith.constant 0 : i32
    return %arg0, %c0_i32, %c0_i32_0 : i32, i32, i32
  }
  func.func @transform_1(%arg0: i32) -> (i32, i32) {
    %c0_i32 = arith.constant 0 : i32
    %c0_i32_0 = arith.constant 0 : i32
    %c0_i32_1 = arith.constant 0 : i32
    return %c0_i32, %c0_i32_0 : i32, i32
  }
  func.func @transform_2(%arg0: i32) -> (i32, i32) {
    %c0_i32 = arith.constant 0 : i32
    %c0_i32_0 = arith.constant 0 : i32
    %c0_i32_1 = arith.constant 0 : i32
    return %c0_i32, %c0_i32_0 : i32, i32
  }
  func.func @transform_3(%arg0: i32) -> (i32, i32) {
    %c0_i32 = arith.constant 0 : i32
    %c0_i32_0 = arith.constant 0 : i32
    %c0_i32_1 = arith.constant 0 : i32
    return %c0_i32, %c0_i32_0 : i32, i32
  }
  func.func @transform_4(%arg0: i32) -> (i32, i32, i32) {
    %c0_i32 = arith.constant 0 : i32
    %c0_i32_0 = arith.constant 0 : i32
    %c0_i32_1 = arith.constant 0 : i32
    %c0_i32_2 = arith.constant 0 : i32
    return %c0_i32, %c0_i32_0, %c0_i32_1 : i32, i32, i32
  }
  func.func @transform_5(%arg0: i32) -> (i32, i32, i32) {
    %c0_i32 = arith.constant 0 : i32
    %c0_i32_0 = arith.constant 0 : i32
    %c0_i32_1 = arith.constant 0 : i32
    %c0_i32_2 = arith.constant 0 : i32
    return %c0_i32, %c0_i32_0, %c0_i32_1 : i32, i32, i32
  }
  func.func @transform_6(%arg0: i32) -> (i32, i32) {
    %c0_i32 = arith.constant 0 : i32
    %c0_i32_0 = arith.constant 0 : i32
    %c0_i32_1 = arith.constant 0 : i32
    return %c0_i32, %c0_i32_0 : i32, i32
  }
  func.func @transform_7(%arg0: i32) -> (i32, i32) {
    %c0_i32 = arith.constant 0 : i32
    %c0_i32_0 = arith.constant 0 : i32
    %c0_i32_1 = arith.constant 0 : i32
    return %c0_i32, %c0_i32_0 : i32, i32
  }
  func.func @transform_8(%arg0: i32) -> (i32, i32) {
    %c0_i32 = arith.constant 0 : i32
    %c0_i32_0 = arith.constant 0 : i32
    %c0_i32_1 = arith.constant 0 : i32
    return %c0_i32, %c0_i32_0 : i32, i32
  }
  func.func @transform_9(%arg0: i32) -> (i32, i32, i32) {
    %c0_i32 = arith.constant 0 : i32
    %c0_i32_0 = arith.constant 0 : i32
    %c0_i32_1 = arith.constant 0 : i32
    return %arg0, %c0_i32, %c0_i32_0 : i32, i32, i32
  }
}

module attributes {stable_mosaic.version = 11 : i64} {
  func.func @_fc_kernel(%arg0: i32, %arg1: memref<2x1152xf32, #tpu.memory_space<vmem>>, %arg2: memref<1152x400xf32, #tpu.memory_space<vmem>>, %arg3: memref<1x400xf32, #tpu.memory_space<vmem>>, %arg4: memref<400x100xf32, #tpu.memory_space<vmem>>, %arg5: memref<1x100xf32, #tpu.memory_space<vmem>>, %arg6: memref<100x10xf32, #tpu.memory_space<vmem>>, %arg7: memref<1x10xf32, #tpu.memory_space<vmem>>, %arg8: memref<2x10xf32, #tpu.memory_space<vmem>>) attributes {dimension_semantics = [#tpu.dimension_semantics<parallel>], iteration_bounds = array<i64: 1>, scalar_prefetch = 0 : i64, scratch_operands = 0 : i64, tpu.core_type = #tpu.core_type<tc>, window_params = [{transform_indices = @transform_0, window_bounds = array<i64: 2, 1152>}, {pipeline_mode = #tpu.pipeline_mode<synchronous>, transform_indices = @transform_1, window_bounds = array<i64: 1152, 400>}, {pipeline_mode = #tpu.pipeline_mode<synchronous>, transform_indices = @transform_2, window_bounds = array<i64: 1, 400>}, {pipeline_mode = #tpu.pipeline_mode<synchronous>, transform_indices = @transform_3, window_bounds = array<i64: 400, 100>}, {pipeline_mode = #tpu.pipeline_mode<synchronous>, transform_indices = @transform_4, window_bounds = array<i64: 1, 100>}, {pipeline_mode = #tpu.pipeline_mode<synchronous>, transform_indices = @transform_5, window_bounds = array<i64: 100, 10>}, {pipeline_mode = #tpu.pipeline_mode<synchronous>, transform_indices = @transform_6, window_bounds = array<i64: 1, 10>}, {transform_indices = @transform_7, window_bounds = array<i64: 2, 10>}]} {
    %c0 = arith.constant 0 : index
    %c0_0 = arith.constant 0 : index
    %0 = vector.load %arg1[%c0, %c0_0] : memref<2x1152xf32, #tpu.memory_space<vmem>>, vector<2x1152xf32>
    %c0_1 = arith.constant 0 : index
    %c0_2 = arith.constant 0 : index
    %1 = vector.load %arg2[%c0_1, %c0_2] : memref<1152x400xf32, #tpu.memory_space<vmem>>, vector<1152x400xf32>
    %cst = arith.constant dense<0.000000e+00> : vector<2x400xf32>
    %2 = tpu.matmul %0, %1, %cst {dimension_numbers = #tpu.dot_dimension_numbers<[1], [0], [0], [1], [0, 0, 1, 1], [], []>} : vector<2x1152xf32>, vector<1152x400xf32>, vector<2x400xf32> -> vector<2x400xf32>
    %c0_3 = arith.constant 0 : index
    %c0_4 = arith.constant 0 : index
    %3 = vector.load %arg3[%c0_3, %c0_4] : memref<1x400xf32, #tpu.memory_space<vmem>>, vector<1x400xf32>
    %4 = vector.broadcast %3 : vector<1x400xf32> to vector<2x400xf32>
    %5 = arith.addf %2, %4 : vector<2x400xf32>
    %6 = arith.negf %5 : vector<2x400xf32>
    %7 = math.exp %6 : vector<2x400xf32>
    %cst_5 = arith.constant 1.000000e+00 : f32
    %8 = vector.broadcast %cst_5 : f32 to vector<2x400xf32>
    %9 = arith.addf %8, %7 : vector<2x400xf32>
    %10 = arith.divf %8, %9 : vector<2x400xf32>
    %c0_6 = arith.constant 0 : index
    %c0_7 = arith.constant 0 : index
    %11 = vector.load %arg4[%c0_6, %c0_7] : memref<400x100xf32, #tpu.memory_space<vmem>>, vector<400x100xf32>
    %cst_8 = arith.constant dense<0.000000e+00> : vector<2x100xf32>
    %12 = tpu.matmul %10, %11, %cst_8 {dimension_numbers = #tpu.dot_dimension_numbers<[1], [0], [0], [1], [0, 0, 1, 1], [], []>} : vector<2x400xf32>, vector<400x100xf32>, vector<2x100xf32> -> vector<2x100xf32>
    %c0_9 = arith.constant 0 : index
    %c0_10 = arith.constant 0 : index
    %13 = vector.load %arg5[%c0_9, %c0_10] : memref<1x100xf32, #tpu.memory_space<vmem>>, vector<1x100xf32>
    %14 = vector.broadcast %13 : vector<1x100xf32> to vector<2x100xf32>
    %15 = arith.addf %12, %14 : vector<2x100xf32>
    %16 = arith.negf %15 : vector<2x100xf32>
    %17 = math.exp %16 : vector<2x100xf32>
    %cst_11 = arith.constant 1.000000e+00 : f32
    %18 = vector.broadcast %cst_11 : f32 to vector<2x100xf32>
    %19 = arith.addf %18, %17 : vector<2x100xf32>
    %20 = arith.divf %18, %19 : vector<2x100xf32>
    %c0_12 = arith.constant 0 : index
    %c0_13 = arith.constant 0 : index
    %21 = vector.load %arg6[%c0_12, %c0_13] : memref<100x10xf32, #tpu.memory_space<vmem>>, vector<100x10xf32>
    %cst_14 = arith.constant dense<0.000000e+00> : vector<2x10xf32>
    %22 = tpu.matmul %20, %21, %cst_14 {dimension_numbers = #tpu.dot_dimension_numbers<[1], [0], [0], [1], [0, 0, 1, 1], [], []>} : vector<2x100xf32>, vector<100x10xf32>, vector<2x10xf32> -> vector<2x10xf32>
    %c0_15 = arith.constant 0 : index
    %c0_16 = arith.constant 0 : index
    %23 = vector.load %arg7[%c0_15, %c0_16] : memref<1x10xf32, #tpu.memory_space<vmem>>, vector<1x10xf32>
    %24 = vector.broadcast %23 : vector<1x10xf32> to vector<2x10xf32>
    %25 = arith.addf %22, %24 : vector<2x10xf32>
    %c0_17 = arith.constant 0 : index
    %c0_18 = arith.constant 0 : index
    %26 = vector.load %arg8[%c0_17, %c0_18] : memref<2x10xf32, #tpu.memory_space<vmem>>, vector<2x10xf32>
    tpu.vector_store %arg8[%c0_17, %c0_18], %25 {strides = array<i32>} : memref<2x10xf32, #tpu.memory_space<vmem>>, vector<2x10xf32>,
    return
  }
  func.func @transform_0(%arg0: i32) -> (i32, i32) {
    %c0_i32 = arith.constant 0 : i32
    %c0_i32_0 = arith.constant 0 : i32
    return %arg0, %c0_i32 : i32, i32
  }
  func.func @transform_1(%arg0: i32) -> (i32, i32) {
    %c0_i32 = arith.constant 0 : i32
    %c0_i32_0 = arith.constant 0 : i32
    %c0_i32_1 = arith.constant 0 : i32
    return %c0_i32, %c0_i32_0 : i32, i32
  }
  func.func @transform_2(%arg0: i32) -> (i32, i32) {
    %c0_i32 = arith.constant 0 : i32
    %c0_i32_0 = arith.constant 0 : i32
    %c0_i32_1 = arith.constant 0 : i32
    return %c0_i32, %c0_i32_0 : i32, i32
  }
  func.func @transform_3(%arg0: i32) -> (i32, i32) {
    %c0_i32 = arith.constant 0 : i32
    %c0_i32_0 = arith.constant 0 : i32
    %c0_i32_1 = arith.constant 0 : i32
    return %c0_i32, %c0_i32_0 : i32, i32
  }
  func.func @transform_4(%arg0: i32) -> (i32, i32) {
    %c0_i32 = arith.constant 0 : i32
    %c0_i32_0 = arith.constant 0 : i32
    %c0_i32_1 = arith.constant 0 : i32
    return %c0_i32, %c0_i32_0 : i32, i32
  }
  func.func @transform_5(%arg0: i32) -> (i32, i32) {
    %c0_i32 = arith.constant 0 : i32
    %c0_i32_0 = arith.constant 0 : i32
    %c0_i32_1 = arith.constant 0 : i32
    return %c0_i32, %c0_i32_0 : i32, i32
  }
  func.func @transform_6(%arg0: i32) -> (i32, i32) {
    %c0_i32 = arith.constant 0 : i32
    %c0_i32_0 = arith.constant 0 : i32
    %c0_i32_1 = arith.constant 0 : i32
    return %c0_i32, %c0_i32_0 : i32, i32
  }
  func.func @transform_7(%arg0: i32) -> (i32, i32) {
    %c0_i32 = arith.constant 0 : i32
    %c0_i32_0 = arith.constant 0 : i32
    return %arg0, %c0_i32 : i32, i32
  }
}

</mosaic_0001>

<bundles_post_ra>
// kernel: custom_net_forward.3
= control target key start
LH: loop header
LB: loop body
LE: loop exit
PB: predicated region body
PF: predicated region fallthrough
CT: control target
= control target key end

     0   :  { %s3952_s0 = inlined_call_operand.vmem [shape: f32[2,1152], index: 0, kind: input, shape index: {}]   ;;  %s3953_s1 = inlined_call_operand.vmem [shape: f32[1152,400], index: 1, kind: input, shape index: {}]   ;;  %s3954_s2 = inlined_call_operand.vmem [shape: f32[1,400], index: 2, kind: input, shape index: {}]   ;;  %s3955_s3 = inlined_call_operand.vmem [shape: f32[400,100], index: 3, kind: input, shape index: {}]   ;;  %s3956_s4 = inlined_call_operand.vmem [shape: f32[1,100], index: 4, kind: input, shape index: {}]   ;;  %s3957_s5 = inlined_call_operand.vmem [shape: f32[100,10], index: 5, kind: input, shape index: {}]   ;;  %s3958_s6 = inlined_call_operand.vmem [shape: f32[1,10], index: 6, kind: input, shape index: {}]   ;;  %s3959_s7 = inlined_call_operand.hbm [shape: f32[2,10], index: 7, kind: output, shape index: {}]  }
   0x1   :  { %v91_v0 = vld [vmem:[%s3953_s1 + $0x1e8] sm:$0xff]  ;;  %v90_v2 = vld [vmem:[%s3953_s1 + $0x1e0] sm:$0xff] }
   0x2   :  { %v219_v1 = vld [vmem:[%s3953_s1 + $0x5e8] sm:$0xff]  ;;  %681 = vmatprep.subr.mxu0 %v91_v0  ;;  %v218_v3 = vld [vmem:[%s3953_s1 + $0x5e0] sm:$0xff] }
   0x3   :  { %752 = vmatprep.subr.mxu1 %v219_v1  ;;  %v87_v4 = vld [vmem:[%s3953_s1 + $0x1c8] sm:$0xff]  ;;  %682 = vmatpush1.msra.mxu0 %v90_v2  ;;  %v86_v6 = vld [vmem:[%s3953_s1 + $0x1c0] sm:$0xff] }
   0x4   :  { %v215_v5 = vld [vmem:[%s3953_s1 + $0x5c8] sm:$0xff]  ;;  %753 = vmatpush1.msra.mxu1 %v218_v3  ;;  %v214_v7 = vld [vmem:[%s3953_s1 + $0x5c0] sm:$0xff]  ;;  %683 = vmatprep.subr.mxu0 %v87_v4 }
   0x5   :  { %v83_v8 = vld [vmem:[%s3953_s1 + $0x1a8] sm:$0xff]  ;;  %754 = vmatprep.subr.mxu1 %v215_v5  ;;  %v82_v10 = vld [vmem:[%s3953_s1 + $0x1a0] sm:$0xff]  ;;  %684 = vmatpush1.msra.mxu0 %v86_v6 }
   0x6   :  { %v211_v9 = vld [vmem:[%s3953_s1 + $0x5a8] sm:$0xff]  ;;  %v210_v11 = vld [vmem:[%s3953_s1 + $0x5a0] sm:$0xff]  ;;  %755 = vmatpush1.msra.mxu1 %v214_v7  ;;  %685 = vmatprep.subr.mxu0 %v83_v8 }
   0x7   :  { %v79_v12 = vld [vmem:[%s3953_s1 + $0x188] sm:$0xff]  ;;  %756 = vmatprep.subr.mxu1 %v211_v9  ;;  %v78_v14 = vld [vmem:[%s3953_s1 + $0x180] sm:$0xff]  ;;  %686 = vmatpush1.msra.mxu0 %v82_v10 }
   0x8   :  { %v207_v13 = vld [vmem:[%s3953_s1 + $0x588] sm:$0xff]  ;;  %v206_v15 = vld [vmem:[%s3953_s1 + $0x580] sm:$0xff]  ;;  %757 = vmatpush1.msra.mxu1 %v210_v11  ;;  %687 = vmatprep.subr.mxu0 %v79_v12 }
   0x9   :  { %v75_v16 = vld [vmem:[%s3953_s1 + $0x168] sm:$0xff]  ;;  %758 = vmatprep.subr.mxu1 %v207_v13  ;;  %v74_v18 = vld [vmem:[%s3953_s1 + $0x160] sm:$0xff]  ;;  %688 = vmatpush1.msra.mxu0 %v78_v14 }
   0xa   :  { %v203_v17 = vld [vmem:[%s3953_s1 + $0x568] sm:$0xff]  ;;  %v202_v19 = vld [vmem:[%s3953_s1 + $0x560] sm:$0xff]  ;;  %759 = vmatpush1.msra.mxu1 %v206_v15  ;;  %689 = vmatprep.subr.mxu0 %v75_v16 }
   0xb   :  { %v71_v20 = vld [vmem:[%s3953_s1 + $0x148] sm:$0xff]  ;;  %760 = vmatprep.subr.mxu1 %v203_v17  ;;  %v70_v22 = vld [vmem:[%s3953_s1 + $0x140] sm:$0xff]  ;;  %690 = vmatpush1.msra.mxu0 %v74_v18 }
   0xc   :  { %v199_v21 = vld [vmem:[%s3953_s1 + $0x548] sm:$0xff]  ;;  %v198_v23 = vld [vmem:[%s3953_s1 + $0x540] sm:$0xff]  ;;  %761 = vmatpush1.msra.mxu1 %v202_v19  ;;  %691 = vmatprep.subr.mxu0 %v71_v20 }
   0xd   :  { %v67_v24 = vld [vmem:[%s3953_s1 + $0x128] sm:$0xff]  ;;  %762 = vmatprep.subr.mxu1 %v199_v21  ;;  %v66_v26 = vld [vmem:[%s3953_s1 + $0x120] sm:$0xff]  ;;  %692 = vmatpush1.msra.mxu0 %v70_v22 }
   0xe   :  { %v195_v25 = vld [vmem:[%s3953_s1 + $0x528] sm:$0xff]  ;;  %v194_v27 = vld [vmem:[%s3953_s1 + $0x520] sm:$0xff]  ;;  %763 = vmatpush1.msra.mxu1 %v198_v23  ;;  %693 = vmatprep.subr.mxu0 %v67_v24 }
   0xf   :  { %v63_v28 = vld [vmem:[%s3953_s1 + $0x108] sm:$0xff]  ;;  %764 = vmatprep.subr.mxu1 %v195_v25  ;;  %v62_v30 = vld [vmem:[%s3953_s1 + $0x100] sm:$0xff]  ;;  %694 = vmatpush1.msra.mxu0 %v66_v26 }
  0x10   :  { %v191_v29 = vld [vmem:[%s3953_s1 + $0x508] sm:$0xff]  ;;  %v190_v31 = vld [vmem:[%s3953_s1 + $0x500] sm:$0xff]  ;;  %765 = vmatpush1.msra.mxu1 %v194_v27  ;;  %695 = vmatprep.subr.mxu0 %v63_v28 }
  0x11   :  { %v59_v32 = vld [vmem:[%s3953_s1 + $0xe8] sm:$0xff]  ;;  %766 = vmatprep.subr.mxu1 %v191_v29  ;;  %v58_v34 = vld [vmem:[%s3953_s1 + $0xe0] sm:$0xff]  ;;  %696 = vmatpush1.msra.mxu0 %v62_v30  ;;  %v608_v30 = vlaneseq }
  0x12   :  { %v187_v33 = vld [vmem:[%s3953_s1 + $0x4e8] sm:$0xff]  ;;  %v186_v35 = vld [vmem:[%s3953_s1 + $0x4e0] sm:$0xff]  ;;  %767 = vmatpush1.msra.mxu1 %v190_v31  ;;  %697 = vmatprep.subr.mxu0 %v59_v32  ;;  %v1874_v31 = vmov 1983009808  }
  0x13   :  { %v55_v36 = vld [vmem:[%s3953_s1 + $0xc8] sm:$0xff]  ;;  %768 = vmatprep.subr.mxu1 %v187_v33  ;;  %v54_v38 = vld [vmem:[%s3953_s1 + $0xc0] sm:$0xff]  ;;  %698 = vmatpush1.msra.mxu0 %v58_v34  ;;  %v633_v32 = vunpack.c.l.s4 %v1874_v31 }
  0x14   :  { %v183_v37 = vld [vmem:[%s3953_s1 + $0x4c8] sm:$0xff]  ;;  %v182_v39 = vld [vmem:[%s3953_s1 + $0x4c0] sm:$0xff]  ;;  %769 = vmatpush1.msra.mxu1 %v186_v35  ;;  %699 = vmatprep.subr.mxu0 %v55_v36 }
  0x15   :  { %v51_v40 = vld [vmem:[%s3953_s1 + $0xa8] sm:$0xff]  ;;  %770 = vmatprep.subr.mxu1 %v183_v37  ;;  %v50_v42 = vld [vmem:[%s3953_s1 + $0xa0] sm:$0xff]  ;;  %700 = vmatpush1.msra.mxu0 %v54_v38 }
  0x16   :  { %v179_v41 = vld [vmem:[%s3953_s1 + $0x4a8] sm:$0xff]  ;;  %v178_v43 = vld [vmem:[%s3953_s1 + $0x4a0] sm:$0xff]  ;;  %771 = vmatpush1.msra.mxu1 %v182_v39  ;;  %701 = vmatprep.subr.mxu0 %v51_v40 }
  0x17   :  { %v47_v44 = vld [vmem:[%s3953_s1 + $0x88] sm:$0xff]  ;;  %772 = vmatprep.subr.mxu1 %v179_v41  ;;  %v46_v46 = vld [vmem:[%s3953_s1 + $0x80] sm:$0xff]  ;;  %702 = vmatpush1.msra.mxu0 %v50_v42  ;;  %v2224_v41 = vshrl.u32 %v608_v30, 7  ;;  %v634_v42 = vunpack.c.0.s8 %v633_v32 }
  0x18   :  { %v175_v45 = vld [vmem:[%s3953_s1 + $0x488] sm:$0xff]  ;;  %v174_v47 = vld [vmem:[%s3953_s1 + $0x480] sm:$0xff]  ;;  %773 = vmatpush1.msra.mxu1 %v178_v43  ;;  %703 = vmatprep.subr.mxu0 %v47_v44 }
  0x19   :  { %v43_v48 = vld [vmem:[%s3953_s1 + $0x68] sm:$0xff]  ;;  %774 = vmatprep.subr.mxu1 %v175_v45  ;;  %v42_v50 = vld [vmem:[%s3953_s1 + $0x60] sm:$0xff]  ;;  %704 = vmatpush1.msra.mxu0 %v46_v46 }
  0x1a   :  { %v171_v49 = vld [vmem:[%s3953_s1 + $0x468] sm:$0xff]  ;;  %v170_v51 = vld [vmem:[%s3953_s1 + $0x460] sm:$0xff]  ;;  %775 = vmatpush1.msra.mxu1 %v174_v47  ;;  %705 = vmatprep.subr.mxu0 %v43_v48 }
  0x1b   :  { %v39_v52 = vld [vmem:[%s3953_s1 + $0x48] sm:$0xff]  ;;  %776 = vmatprep.subr.mxu1 %v171_v49  ;;  %v38_v54 = vld [vmem:[%s3953_s1 + $0x40] sm:$0xff]  ;;  %706 = vmatpush1.msra.mxu0 %v42_v50 }
  0x1c   :  { %v167_v53 = vld [vmem:[%s3953_s1 + $0x448] sm:$0xff]  ;;  %v166_v55 = vld [vmem:[%s3953_s1 + $0x440] sm:$0xff]  ;;  %777 = vmatpush1.msra.mxu1 %v170_v51  ;;  %707 = vmatprep.subr.mxu0 %v39_v52  ;;  %v2254_v52 = vsub.s32 %v634_v42, %v2224_v41 }
  0x1d   :  { %v35_v56 = vld [vmem:[%s3953_s1 + $0x28] sm:$0xff]  ;;  %778 = vmatprep.subr.mxu1 %v167_v53  ;;  %v34_v58 = vld [vmem:[%s3953_s1 + $0x20] sm:$0xff]  ;;  %708 = vmatpush1.msra.mxu0 %v38_v54 }
  0x1e   :  { %v163_v57 = vld [vmem:[%s3953_s1 + $0x428] sm:$0xff]  ;;  %v162_v59 = vld [vmem:[%s3953_s1 + $0x420] sm:$0xff]  ;;  %779 = vmatpush1.msra.mxu1 %v166_v55  ;;  %709 = vmatprep.subr.mxu0 %v35_v56 }
  0x1f   :  { %v31_v60 = vld [vmem:[%s3953_s1 + $0x8] sm:$0xff]  ;;  %780 = vmatprep.subr.mxu1 %v163_v57  ;;  %v30_v62 = vld [vmem:[%s3953_s1] sm:$0xff]  ;;  %710 = vmatpush1.msra.mxu0 %v34_v58 }
  0x20   :  { %v159_v61 = vld [vmem:[%s3953_s1 + $0x408] sm:$0xff]  ;;  %v158_v63 = vld [vmem:[%s3953_s1 + $0x400] sm:$0xff]  ;;  %781 = vmatpush1.msra.mxu1 %v162_v59  ;;  %711 = vmatprep.subr.mxu0 %v31_v60 }
  0x21   :  { %v155_v0 = vld [vmem:[%s3953_s1 + $0x3e8] sm:$0xff]  ;;  %782 = vmatprep.subr.mxu1 %v159_v61  ;;  %v154_v2 = vld [vmem:[%s3953_s1 + $0x3e0] sm:$0xff]  ;;  %712 = vmatpush1.msra.mxu0 %v30_v62 }
  0x22   :  { %v283_v1 = vld [vmem:[%s3953_s1 + $0x7e8] sm:$0xff]  ;;  %v282_v3 = vld [vmem:[%s3953_s1 + $0x7e0] sm:$0xff]  ;;  %783 = vmatpush1.msra.mxu1 %v158_v63  ;;  %713 = vmatprep.subr.mxu0 %v155_v0 }
  0x23   :  { %v151_v4 = vld [vmem:[%s3953_s1 + $0x3c8] sm:$0xff]  ;;  %784 = vmatprep.subr.mxu1 %v283_v1  ;;  %v150_v6 = vld [vmem:[%s3953_s1 + $0x3c0] sm:$0xff]  ;;  %714 = vmatpush2.msra.mxu0 %v154_v2 }
  0x24   :  { %v279_v5 = vld [vmem:[%s3953_s1 + $0x7c8] sm:$0xff]  ;;  %v278_v7 = vld [vmem:[%s3953_s1 + $0x7c0] sm:$0xff]  ;;  %785 = vmatpush2.msra.mxu1 %v282_v3  ;;  %715 = vmatprep.subr.mxu0 %v151_v4 }
  0x25   :  { %v147_v8 = vld [vmem:[%s3953_s1 + $0x3a8] sm:$0xff]  ;;  %786 = vmatprep.subr.mxu1 %v279_v5  ;;  %v146_v10 = vld [vmem:[%s3953_s1 + $0x3a0] sm:$0xff]  ;;  %716 = vmatpush2.msra.mxu0 %v150_v6 }
  0x26   :  { %v275_v9 = vld [vmem:[%s3953_s1 + $0x7a8] sm:$0xff]  ;;  %v274_v11 = vld [vmem:[%s3953_s1 + $0x7a0] sm:$0xff]  ;;  %787 = vmatpush2.msra.mxu1 %v278_v7  ;;  %717 = vmatprep.subr.mxu0 %v147_v8 }
  0x27   :  { %v143_v12 = vld [vmem:[%s3953_s1 + $0x388] sm:$0xff]  ;;  %788 = vmatprep.subr.mxu1 %v275_v9  ;;  %v142_v14 = vld [vmem:[%s3953_s1 + $0x380] sm:$0xff]  ;;  %718 = vmatpush2.msra.mxu0 %v146_v10 }
  0x28   :  { %v271_v13 = vld [vmem:[%s3953_s1 + $0x788] sm:$0xff]  ;;  %v270_v15 = vld [vmem:[%s3953_s1 + $0x780] sm:$0xff]  ;;  %789 = vmatpush2.msra.mxu1 %v274_v11  ;;  %719 = vmatprep.subr.mxu0 %v143_v12 }
  0x29   :  { %v139_v16 = vld [vmem:[%s3953_s1 + $0x368] sm:$0xff]  ;;  %790 = vmatprep.subr.mxu1 %v271_v13  ;;  %v138_v18 = vld [vmem:[%s3953_s1 + $0x360] sm:$0xff]  ;;  %720 = vmatpush2.msra.mxu0 %v142_v14 }
  0x2a   :  { %v267_v17 = vld [vmem:[%s3953_s1 + $0x768] sm:$0xff]  ;;  %v266_v19 = vld [vmem:[%s3953_s1 + $0x760] sm:$0xff]  ;;  %791 = vmatpush2.msra.mxu1 %v270_v15  ;;  %721 = vmatprep.subr.mxu0 %v139_v16 }
  0x2b   :  { %v135_v20 = vld [vmem:[%s3953_s1 + $0x348] sm:$0xff]  ;;  %792 = vmatprep.subr.mxu1 %v267_v17  ;;  %v134_v22 = vld [vmem:[%s3953_s1 + $0x340] sm:$0xff]  ;;  %722 = vmatpush2.msra.mxu0 %v138_v18 }
  0x2c   :  { %v263_v21 = vld [vmem:[%s3953_s1 + $0x748] sm:$0xff]  ;;  %v262_v23 = vld [vmem:[%s3953_s1 + $0x740] sm:$0xff]  ;;  %793 = vmatpush2.msra.mxu1 %v266_v19  ;;  %723 = vmatprep.subr.mxu0 %v135_v20 }
  0x2d   :  { %v131_v24 = vld [vmem:[%s3953_s1 + $0x328] sm:$0xff]  ;;  %794 = vmatprep.subr.mxu1 %v263_v21  ;;  %v130_v26 = vld [vmem:[%s3953_s1 + $0x320] sm:$0xff]  ;;  %724 = vmatpush2.msra.mxu0 %v134_v22 }
  0x2e   :  { %v259_v25 = vld [vmem:[%s3953_s1 + $0x728] sm:$0xff]  ;;  %v258_v27 = vld [vmem:[%s3953_s1 + $0x720] sm:$0xff]  ;;  %795 = vmatpush2.msra.mxu1 %v262_v23  ;;  %725 = vmatprep.subr.mxu0 %v131_v24 }
  0x2f   :  { %v127_v28 = vld [vmem:[%s3953_s1 + $0x308] sm:$0xff]  ;;  %796 = vmatprep.subr.mxu1 %v259_v25  ;;  %v126_v33 = vld [vmem:[%s3953_s1 + $0x300] sm:$0xff]  ;;  %726 = vmatpush2.msra.mxu0 %v130_v26 }
  0x30   :  { %v255_v29 = vld [vmem:[%s3953_s1 + $0x708] sm:$0xff]  ;;  %v254_v34 = vld [vmem:[%s3953_s1 + $0x700] sm:$0xff]  ;;  %797 = vmatpush2.msra.mxu1 %v258_v27  ;;  %727 = vmatprep.subr.mxu0 %v127_v28 }
  0x31   :  { %v123_v35 = vld [vmem:[%s3953_s1 + $0x2e8] sm:$0xff]  ;;  %798 = vmatprep.subr.mxu1 %v255_v29  ;;  %v122_v37 = vld [vmem:[%s3953_s1 + $0x2e0] sm:$0xff]  ;;  %728 = vmatpush2.msra.mxu0 %v126_v33 }
  0x32   :  { %v251_v36 = vld [vmem:[%s3953_s1 + $0x6e8] sm:$0xff]  ;;  %v250_v38 = vld [vmem:[%s3953_s1 + $0x6e0] sm:$0xff]  ;;  %799 = vmatpush2.msra.mxu1 %v254_v34  ;;  %729 = vmatprep.subr.mxu0 %v123_v35 }
  0x33   :  { %v119_v39 = vld [vmem:[%s3953_s1 + $0x2c8] sm:$0xff]  ;;  %800 = vmatprep.subr.mxu1 %v251_v36  ;;  %v118_v43 = vld [vmem:[%s3953_s1 + $0x2c0] sm:$0xff]  ;;  %730 = vmatpush2.msra.mxu0 %v122_v37 }
  0x34   :  { %v247_v40 = vld [vmem:[%s3953_s1 + $0x6c8] sm:$0xff]  ;;  %v246_v44 = vld [vmem:[%s3953_s1 + $0x6c0] sm:$0xff]  ;;  %801 = vmatpush2.msra.mxu1 %v250_v38  ;;  %731 = vmatprep.subr.mxu0 %v119_v39 }
  0x35   :  { %v115_v45 = vld [vmem:[%s3953_s1 + $0x2a8] sm:$0xff]  ;;  %802 = vmatprep.subr.mxu1 %v247_v40  ;;  %v114_v47 = vld [vmem:[%s3953_s1 + $0x2a0] sm:$0xff]  ;;  %732 = vmatpush2.msra.mxu0 %v118_v43 }
  0x36   :  { %v243_v46 = vld [vmem:[%s3953_s1 + $0x6a8] sm:$0xff]  ;;  %v242_v48 = vld [vmem:[%s3953_s1 + $0x6a0] sm:$0xff]  ;;  %803 = vmatpush2.msra.mxu1 %v246_v44  ;;  %733 = vmatprep.subr.mxu0 %v115_v45 }
  0x37   :  { %v27_v49 = vld [vmem:[%s3952_s0] sm:$0xff]  ;;  %v111_v50 = vld [vmem:[%s3953_s1 + $0x288] sm:$0xff]  ;;  %804 = vmatprep.subr.mxu1 %v243_v46  ;;  %734 = vmatpush2.msra.mxu0 %v114_v47 }
  0x38   :  { %v239_v51 = vld [vmem:[%s3953_s1 + $0x688] sm:$0xff]  ;;  %v110_v53 = vld [vmem:[%s3953_s1 + $0x280] sm:$0xff]  ;;  %805 = vmatpush2.msra.mxu1 %v242_v48  ;;  %v631_v57 = vcombine.high %v27_v49, %v27_v49  ;;  %735 = vmatprep.subr.mxu0 %v111_v50  ;;  %v2281_v62 = vrot.slane %v27_v49, %v2254_v52 }
  0x39   :  { %v238_v54 = vld [vmem:[%s3953_s1 + $0x680] sm:$0xff]  ;;  %v107_v55 = vld [vmem:[%s3953_s1 + $0x268] sm:$0xff]  ;;  %806 = vmatprep.subr.mxu1 %v239_v51  ;;  %736 = vmatpush2.msra.mxu0 %v110_v53 }
  0x3a   :  { %v235_v56 = vld [vmem:[%s3953_s1 + $0x668] sm:$0xff]  ;;  %v106_v58 = vld [vmem:[%s3953_s1 + $0x260] sm:$0xff]  ;;  %807 = vmatpush2.msra.mxu1 %v238_v54  ;;  %737 = vmatprep.subr.mxu0 %v107_v55  ;;  %v2296_v3 = vrot.slane %v631_v57, %v2254_v52  ;;  %v2312_v8 = vcombine.high %v2281_v62, %v2281_v62 }
  0x3b   :  { %v234_v59 = vld [vmem:[%s3953_s1 + $0x660] sm:$0xff]  ;;  %v103_v60 = vld [vmem:[%s3953_s1 + $0x248] sm:$0xff]  ;;  %808 = vmatprep.subr.mxu1 %v235_v56  ;;  %738 = vmatpush2.msra.mxu0 %v106_v58 }
  0x3c   :  { %v231_v61 = vld [vmem:[%s3953_s1 + $0x648] sm:$0xff]  ;;  %v102_v63 = vld [vmem:[%s3953_s1 + $0x240] sm:$0xff]  ;;  %809 = vmatpush2.msra.mxu1 %v234_v59  ;;  %739 = vmatprep.subr.mxu0 %v103_v60  ;;  %v2322_v11 = vcombine.high %v2296_v3, %v2296_v3 }
  0x3d   :  { %v230_v0 = vld [vmem:[%s3953_s1 + $0x640] sm:$0xff]  ;;  %v99_v1 = vld [vmem:[%s3953_s1 + $0x228] sm:$0xff]  ;;  %810 = vmatprep.subr.mxu1 %v231_v61  ;;  %740 = vmatpush2.msra.mxu0 %v102_v63 }
  0x3e   :  { %v227_v2 = vld [vmem:[%s3953_s1 + $0x628] sm:$0xff]  ;;  %v98_v4 = vld [vmem:[%s3953_s1 + $0x220] sm:$0xff]  ;;  %811 = vmatpush2.msra.mxu1 %v230_v0  ;;  %741 = vmatprep.subr.mxu0 %v99_v1 }
  0x3f   :  { %v226_v5 = vld [vmem:[%s3953_s1 + $0x620] sm:$0xff]  ;;  %v95_v6 = vld [vmem:[%s3953_s1 + $0x208] sm:$0xff]  ;;  %812 = vmatprep.subr.mxu1 %v227_v2  ;;  %742 = vmatpush2.msra.mxu0 %v98_v4 }
  0x40   :  { %v223_v7 = vld [vmem:[%s3953_s1 + $0x608] sm:$0xff]  ;;  %v94_v9 = vld [vmem:[%s3953_s1 + $0x200] sm:$0xff]  ;;  %813 = vmatpush2.msra.mxu1 %v226_v5  ;;  %743 = vmatprep.subr.mxu0 %v95_v6 }
  0x41   :  { %v222_v10 = vld [vmem:[%s3953_s1 + $0x600] sm:$0xff]  ;;  %814 = vmatprep.subr.mxu1 %v223_v7  ;;  %v347_v12 = vld [vmem:[%s3953_s1 + $0x9e8] sm:$0xff]  ;;  %744 = vmatpush2.msra.mxu0 %v94_v9 }
  0x42   :  { %745 = vmatprep.mubr.f32.mxu0 %v2312_v8  ;;  %v475_v13 = vld [vmem:[%s3953_s1 + $0xde8] sm:$0xff]  ;;  %815 = vmatpush2.msra.mxu1 %v222_v10  ;;  %v346_v14 = vld [vmem:[%s3953_s1 + $0x9e0] sm:$0xff] }
  0x43   :  { %746 = vmatmul.mubr.f32.vlgmr.msra.gmra.mxu0 %v2281_v62  ;;  %v474_v15 = vld [vmem:[%s3953_s1 + $0xde0] sm:$0xff]  ;;  %816 = vmatprep.mubr.f32.mxu1 %v2322_v11  ;;  %v343_v16 = vld [vmem:[%s3953_s1 + $0x9c8] sm:$0xff] }
  0x44   :  { %823 = vmatprep.subr.mxu0 %v347_v12  ;;  %v471_v17 = vld [vmem:[%s3953_s1 + $0xdc8] sm:$0xff]  ;;  %894 = vmatprep.subr.mxu1 %v475_v13  ;;  %v342_v18 = vld [vmem:[%s3953_s1 + $0x9c0] sm:$0xff] }
  0x45   :  { %817 = vmatmul.mubr.f32.vlgmr.msra.gmra.mxu1 %v2296_v3  ;;  %v470_v19 = vld [vmem:[%s3953_s1 + $0xdc0] sm:$0xff]  ;;  %824 = vmatpush1.msra.mxu0 %v346_v14  ;;  %v339_v20 = vld [vmem:[%s3953_s1 + $0x9a8] sm:$0xff] }
  0x46   :  { %895 = vmatpush1.msra.mxu1 %v474_v15  ;;  %v467_v21 = vld [vmem:[%s3953_s1 + $0xda8] sm:$0xff]  ;;  %825 = vmatprep.subr.mxu0 %v343_v16  ;;  %v338_v22 = vld [vmem:[%s3953_s1 + $0x9a0] sm:$0xff] }
  0x47   :  { %896 = vmatprep.subr.mxu1 %v471_v17  ;;  %v466_v23 = vld [vmem:[%s3953_s1 + $0xda0] sm:$0xff]  ;;  %826 = vmatpush1.msra.mxu0 %v342_v18  ;;  %v335_v24 = vld [vmem:[%s3953_s1 + $0x988] sm:$0xff] }
  0x48   :  { %897 = vmatpush1.msra.mxu1 %v470_v19  ;;  %v463_v25 = vld [vmem:[%s3953_s1 + $0xd88] sm:$0xff]  ;;  %827 = vmatprep.subr.mxu0 %v339_v20  ;;  %v334_v26 = vld [vmem:[%s3953_s1 + $0x980] sm:$0xff] }
  0x49   :  { %898 = vmatprep.subr.mxu1 %v467_v21  ;;  %v462_v27 = vld [vmem:[%s3953_s1 + $0xd80] sm:$0xff]  ;;  %828 = vmatpush1.msra.mxu0 %v338_v22  ;;  %v331_v28 = vld [vmem:[%s3953_s1 + $0x968] sm:$0xff] }
  0x4a   :  { %899 = vmatpush1.msra.mxu1 %v466_v23  ;;  %v459_v29 = vld [vmem:[%s3953_s1 + $0xd68] sm:$0xff]  ;;  %829 = vmatprep.subr.mxu0 %v335_v24  ;;  %v330_v30 = vld [vmem:[%s3953_s1 + $0x960] sm:$0xff] }
  0x4b   :  { %900 = vmatprep.subr.mxu1 %v463_v25  ;;  %v458_v31 = vld [vmem:[%s3953_s1 + $0xd60] sm:$0xff]  ;;  %830 = vmatpush1.msra.mxu0 %v334_v26  ;;  %v327_v32 = vld [vmem:[%s3953_s1 + $0x948] sm:$0xff] }
  0x4c   :  { %901 = vmatpush1.msra.mxu1 %v462_v27  ;;  %v455_v33 = vld [vmem:[%s3953_s1 + $0xd48] sm:$0xff]  ;;  %831 = vmatprep.subr.mxu0 %v331_v28  ;;  %v326_v34 = vld [vmem:[%s3953_s1 + $0x940] sm:$0xff] }
  0x4d   :  { %902 = vmatprep.subr.mxu1 %v459_v29  ;;  %v454_v35 = vld [vmem:[%s3953_s1 + $0xd40] sm:$0xff]  ;;  %832 = vmatpush1.msra.mxu0 %v330_v30  ;;  %v323_v36 = vld [vmem:[%s3953_s1 + $0x928] sm:$0xff] }
  0x4e   :  { %903 = vmatpush1.msra.mxu1 %v458_v31  ;;  %v451_v37 = vld [vmem:[%s3953_s1 + $0xd28] sm:$0xff]  ;;  %833 = vmatprep.subr.mxu0 %v327_v32  ;;  %v322_v38 = vld [vmem:[%s3953_s1 + $0x920] sm:$0xff] }
  0x4f   :  { %904 = vmatprep.subr.mxu1 %v455_v33  ;;  %v450_v39 = vld [vmem:[%s3953_s1 + $0xd20] sm:$0xff]  ;;  %834 = vmatpush1.msra.mxu0 %v326_v34  ;;  %v319_v40 = vld [vmem:[%s3953_s1 + $0x908] sm:$0xff] }
  0x50   :  { %905 = vmatpush1.msra.mxu1 %v454_v35  ;;  %v447_v42 = vld [vmem:[%s3953_s1 + $0xd08] sm:$0xff]  ;;  %835 = vmatprep.subr.mxu0 %v323_v36  ;;  %v318_v43 = vld [vmem:[%s3953_s1 + $0x900] sm:$0xff] }
  0x51   :  { %906 = vmatprep.subr.mxu1 %v451_v37  ;;  %v446_v44 = vld [vmem:[%s3953_s1 + $0xd00] sm:$0xff]  ;;  %836 = vmatpush1.msra.mxu0 %v322_v38  ;;  %v315_v45 = vld [vmem:[%s3953_s1 + $0x8e8] sm:$0xff] }
  0x52   :  { %907 = vmatpush1.msra.mxu1 %v450_v39  ;;  %v443_v46 = vld [vmem:[%s3953_s1 + $0xce8] sm:$0xff]  ;;  %837 = vmatprep.subr.mxu0 %v319_v40  ;;  %v314_v47 = vld [vmem:[%s3953_s1 + $0x8e0] sm:$0xff] }
  0x53   :  { %908 = vmatprep.subr.mxu1 %v447_v42  ;;  %v442_v48 = vld [vmem:[%s3953_s1 + $0xce0] sm:$0xff]  ;;  %838 = vmatpush1.msra.mxu0 %v318_v43  ;;  %v311_v49 = vld [vmem:[%s3953_s1 + $0x8c8] sm:$0xff] }
  0x54   :  { %909 = vmatpush1.msra.mxu1 %v446_v44  ;;  %v439_v50 = vld [vmem:[%s3953_s1 + $0xcc8] sm:$0xff]  ;;  %839 = vmatprep.subr.mxu0 %v315_v45  ;;  %v310_v51 = vld [vmem:[%s3953_s1 + $0x8c0] sm:$0xff] }
  0x55   :  { %910 = vmatprep.subr.mxu1 %v443_v46  ;;  %v438_v53 = vld [vmem:[%s3953_s1 + $0xcc0] sm:$0xff]  ;;  %840 = vmatpush1.msra.mxu0 %v314_v47  ;;  %v307_v54 = vld [vmem:[%s3953_s1 + $0x8a8] sm:$0xff] }
  0x56   :  { %911 = vmatpush1.msra.mxu1 %v442_v48  ;;  %v435_v55 = vld [vmem:[%s3953_s1 + $0xca8] sm:$0xff]  ;;  %841 = vmatprep.subr.mxu0 %v311_v49  ;;  %v306_v56 = vld [vmem:[%s3953_s1 + $0x8a0] sm:$0xff] }
  0x57   :  { %912 = vmatprep.subr.mxu1 %v439_v50  ;;  %v434_v57 = vld [vmem:[%s3953_s1 + $0xca0] sm:$0xff]  ;;  %842 = vmatpush1.msra.mxu0 %v310_v51  ;;  %v303_v58 = vld [vmem:[%s3953_s1 + $0x888] sm:$0xff] }
  0x58   :  { %913 = vmatpush1.msra.mxu1 %v438_v53  ;;  %v431_v59 = vld [vmem:[%s3953_s1 + $0xc88] sm:$0xff]  ;;  %843 = vmatprep.subr.mxu0 %v307_v54  ;;  %v302_v60 = vld [vmem:[%s3953_s1 + $0x880] sm:$0xff] }
  0x59   :  { %914 = vmatprep.subr.mxu1 %v435_v55  ;;  %v430_v61 = vld [vmem:[%s3953_s1 + $0xc80] sm:$0xff]  ;;  %844 = vmatpush1.msra.mxu0 %v306_v56  ;;  %v299_v63 = vld [vmem:[%s3953_s1 + $0x868] sm:$0xff] }
  0x5a   :  { %915 = vmatpush1.msra.mxu1 %v434_v57  ;;  %v427_v0 = vld [vmem:[%s3953_s1 + $0xc68] sm:$0xff]  ;;  %845 = vmatprep.subr.mxu0 %v303_v58  ;;  %v298_v1 = vld [vmem:[%s3953_s1 + $0x860] sm:$0xff] }
  0x5b   :  { %916 = vmatprep.subr.mxu1 %v431_v59  ;;  %v426_v2 = vld [vmem:[%s3953_s1 + $0xc60] sm:$0xff]  ;;  %846 = vmatpush1.msra.mxu0 %v302_v60  ;;  %v295_v4 = vld [vmem:[%s3953_s1 + $0x848] sm:$0xff] }
  0x5c   :  { %917 = vmatpush1.msra.mxu1 %v430_v61  ;;  %v423_v5 = vld [vmem:[%s3953_s1 + $0xc48] sm:$0xff]  ;;  %847 = vmatprep.subr.mxu0 %v299_v63  ;;  %v294_v6 = vld [vmem:[%s3953_s1 + $0x840] sm:$0xff] }
  0x5d   :  { %918 = vmatprep.subr.mxu1 %v427_v0  ;;  %v422_v7 = vld [vmem:[%s3953_s1 + $0xc40] sm:$0xff]  ;;  %848 = vmatpush1.msra.mxu0 %v298_v1  ;;  %v291_v9 = vld [vmem:[%s3953_s1 + $0x828] sm:$0xff] }
  0x5e   :  { %919 = vmatpush1.msra.mxu1 %v426_v2  ;;  %v419_v10 = vld [vmem:[%s3953_s1 + $0xc28] sm:$0xff]  ;;  %849 = vmatprep.subr.mxu0 %v295_v4  ;;  %v290_v12 = vld [vmem:[%s3953_s1 + $0x820] sm:$0xff] }
  0x5f   :  { %920 = vmatprep.subr.mxu1 %v423_v5  ;;  %v418_v13 = vld [vmem:[%s3953_s1 + $0xc20] sm:$0xff]  ;;  %850 = vmatpush1.msra.mxu0 %v294_v6  ;;  %v287_v14 = vld [vmem:[%s3953_s1 + $0x808] sm:$0xff] }
  0x60   :  { %921 = vmatpush1.msra.mxu1 %v422_v7  ;;  %v415_v15 = vld [vmem:[%s3953_s1 + $0xc08] sm:$0xff]  ;;  %851 = vmatprep.subr.mxu0 %v291_v9  ;;  %v286_v16 = vld [vmem:[%s3953_s1 + $0x800] sm:$0xff] }
  0x61   :  { %922 = vmatprep.subr.mxu1 %v419_v10  ;;  %v414_v17 = vld [vmem:[%s3953_s1 + $0xc00] sm:$0xff]  ;;  %852 = vmatpush1.msra.mxu0 %v290_v12  ;;  %v411_v18 = vld [vmem:[%s3953_s1 + $0xbe8] sm:$0xff] }
  0x62   :  { %923 = vmatpush1.msra.mxu1 %v418_v13  ;;  %v539_v19 = vld [vmem:[%s3953_s1 + $0xfe8] sm:$0xff]  ;;  %853 = vmatprep.subr.mxu0 %v287_v14  ;;  %v410_v20 = vld [vmem:[%s3953_s1 + $0xbe0] sm:$0xff] }
  0x63   :  { %924 = vmatprep.subr.mxu1 %v415_v15  ;;  %v538_v21 = vld [vmem:[%s3953_s1 + $0xfe0] sm:$0xff]  ;;  %854 = vmatpush1.msra.mxu0 %v286_v16  ;;  %v407_v22 = vld [vmem:[%s3953_s1 + $0xbc8] sm:$0xff] }
  0x64   :  { %925 = vmatpush1.msra.mxu1 %v414_v17  ;;  %v535_v23 = vld [vmem:[%s3953_s1 + $0xfc8] sm:$0xff]  ;;  %855 = vmatprep.subr.mxu0 %v411_v18  ;;  %v406_v24 = vld [vmem:[%s3953_s1 + $0xbc0] sm:$0xff] }
  0x65   :  { %926 = vmatprep.subr.mxu1 %v539_v19  ;;  %v534_v25 = vld [vmem:[%s3953_s1 + $0xfc0] sm:$0xff]  ;;  %856 = vmatpush2.msra.mxu0 %v410_v20  ;;  %v403_v26 = vld [vmem:[%s3953_s1 + $0xba8] sm:$0xff] }
  0x66   :  { %927 = vmatpush2.msra.mxu1 %v538_v21  ;;  %v531_v27 = vld [vmem:[%s3953_s1 + $0xfa8] sm:$0xff]  ;;  %857 = vmatprep.subr.mxu0 %v407_v22  ;;  %v402_v28 = vld [vmem:[%s3953_s1 + $0xba0] sm:$0xff] }
  0x67   :  { %928 = vmatprep.subr.mxu1 %v535_v23  ;;  %v530_v29 = vld [vmem:[%s3953_s1 + $0xfa0] sm:$0xff]  ;;  %858 = vmatpush2.msra.mxu0 %v406_v24  ;;  %v399_v30 = vld [vmem:[%s3953_s1 + $0xb88] sm:$0xff] }
  0x68   :  { %929 = vmatpush2.msra.mxu1 %v534_v25  ;;  %v527_v31 = vld [vmem:[%s3953_s1 + $0xf88] sm:$0xff]  ;;  %859 = vmatprep.subr.mxu0 %v403_v26  ;;  %v398_v32 = vld [vmem:[%s3953_s1 + $0xb80] sm:$0xff] }
  0x69   :  { %930 = vmatprep.subr.mxu1 %v531_v27  ;;  %v526_v33 = vld [vmem:[%s3953_s1 + $0xf80] sm:$0xff]  ;;  %860 = vmatpush2.msra.mxu0 %v402_v28  ;;  %v395_v34 = vld [vmem:[%s3953_s1 + $0xb68] sm:$0xff] }
  0x6a   :  { %931 = vmatpush2.msra.mxu1 %v530_v29  ;;  %v523_v35 = vld [vmem:[%s3953_s1 + $0xf68] sm:$0xff]  ;;  %861 = vmatprep.subr.mxu0 %v399_v30  ;;  %v394_v36 = vld [vmem:[%s3953_s1 + $0xb60] sm:$0xff]  ;;  %v93_v30 = vld [vmem:[%s3953_s1 + $0x1f8] sm:$0xff] }
  0x6b   :  { %932 = vmatprep.subr.mxu1 %v527_v31  ;;  %v522_v37 = vld [vmem:[%s3953_s1 + $0xf60] sm:$0xff]  ;;  %862 = vmatpush2.msra.mxu0 %v398_v32  ;;  %v391_v38 = vld [vmem:[%s3953_s1 + $0xb48] sm:$0xff]  ;;  %v92_v32 = vld [vmem:[%s3953_s1 + $0x1f0] sm:$0xff] }
  0x6c   :  { %933 = vmatpush2.msra.mxu1 %v526_v33  ;;  %v519_v39 = vld [vmem:[%s3953_s1 + $0xf48] sm:$0xff]  ;;  %863 = vmatprep.subr.mxu0 %v395_v34  ;;  %v390_v40 = vld [vmem:[%s3953_s1 + $0xb40] sm:$0xff]  ;;  %v89_v34 = vld [vmem:[%s3953_s1 + $0x1d8] sm:$0xff] }
  0x6d   :  { %934 = vmatprep.subr.mxu1 %v523_v35  ;;  %v518_v42 = vld [vmem:[%s3953_s1 + $0xf40] sm:$0xff]  ;;  %864 = vmatpush2.msra.mxu0 %v394_v36  ;;  %v387_v43 = vld [vmem:[%s3953_s1 + $0xb28] sm:$0xff]  ;;  %v88_v36 = vld [vmem:[%s3953_s1 + $0x1d0] sm:$0xff] }
  0x6e   :  { %935 = vmatpush2.msra.mxu1 %v522_v37  ;;  %v515_v44 = vld [vmem:[%s3953_s1 + $0xf28] sm:$0xff]  ;;  %865 = vmatprep.subr.mxu0 %v391_v38  ;;  %v386_v45 = vld [vmem:[%s3953_s1 + $0xb20] sm:$0xff]  ;;  %v85_v38 = vld [vmem:[%s3953_s1 + $0x1b8] sm:$0xff] }
  0x6f   :  { %936 = vmatprep.subr.mxu1 %v519_v39  ;;  %v514_v46 = vld [vmem:[%s3953_s1 + $0xf20] sm:$0xff]  ;;  %866 = vmatpush2.msra.mxu0 %v390_v40  ;;  %v383_v47 = vld [vmem:[%s3953_s1 + $0xb08] sm:$0xff]  ;;  %v84_v40 = vld [vmem:[%s3953_s1 + $0x1b0] sm:$0xff] }
  0x70   :  { %937 = vmatpush2.msra.mxu1 %v518_v42  ;;  %v511_v48 = vld [vmem:[%s3953_s1 + $0xf08] sm:$0xff]  ;;  %867 = vmatprep.subr.mxu0 %v387_v43  ;;  %v382_v49 = vld [vmem:[%s3953_s1 + $0xb00] sm:$0xff]  ;;  %v81_v43 = vld [vmem:[%s3953_s1 + $0x198] sm:$0xff] }
  0x71   :  { %938 = vmatprep.subr.mxu1 %v515_v44  ;;  %v510_v50 = vld [vmem:[%s3953_s1 + $0xf00] sm:$0xff]  ;;  %868 = vmatpush2.msra.mxu0 %v386_v45  ;;  %v379_v51 = vld [vmem:[%s3953_s1 + $0xae8] sm:$0xff]  ;;  %v80_v45 = vld [vmem:[%s3953_s1 + $0x190] sm:$0xff] }
  0x72   :  { %939 = vmatpush2.msra.mxu1 %v514_v46  ;;  %v507_v53 = vld [vmem:[%s3953_s1 + $0xee8] sm:$0xff]  ;;  %869 = vmatprep.subr.mxu0 %v383_v47  ;;  %v378_v54 = vld [vmem:[%s3953_s1 + $0xae0] sm:$0xff]  ;;  %v77_v47 = vld [vmem:[%s3953_s1 + $0x178] sm:$0xff] }
  0x73   :  { %940 = vmatprep.subr.mxu1 %v511_v48  ;;  %v506_v55 = vld [vmem:[%s3953_s1 + $0xee0] sm:$0xff]  ;;  %870 = vmatpush2.msra.mxu0 %v382_v49  ;;  %v375_v56 = vld [vmem:[%s3953_s1 + $0xac8] sm:$0xff]  ;;  %v76_v49 = vld [vmem:[%s3953_s1 + $0x170] sm:$0xff] }
  0x74   :  { %941 = vmatpush2.msra.mxu1 %v510_v50  ;;  %v503_v57 = vld [vmem:[%s3953_s1 + $0xec8] sm:$0xff]  ;;  %871 = vmatprep.subr.mxu0 %v379_v51  ;;  %v374_v58 = vld [vmem:[%s3953_s1 + $0xac0] sm:$0xff]  ;;  %v73_v51 = vld [vmem:[%s3953_s1 + $0x158] sm:$0xff] }
  0x75   :  { %942 = vmatprep.subr.mxu1 %v507_v53  ;;  %v502_v59 = vld [vmem:[%s3953_s1 + $0xec0] sm:$0xff]  ;;  %872 = vmatpush2.msra.mxu0 %v378_v54  ;;  %v371_v60 = vld [vmem:[%s3953_s1 + $0xaa8] sm:$0xff]  ;;  %v72_v54 = vld [vmem:[%s3953_s1 + $0x150] sm:$0xff] }
  0x76   :  { %943 = vmatpush2.msra.mxu1 %v506_v55  ;;  %v499_v61 = vld [vmem:[%s3953_s1 + $0xea8] sm:$0xff]  ;;  %873 = vmatprep.subr.mxu0 %v375_v56  ;;  %v370_v63 = vld [vmem:[%s3953_s1 + $0xaa0] sm:$0xff]  ;;  %v69_v56 = vld [vmem:[%s3953_s1 + $0x138] sm:$0xff] }
  0x77   :  { %944 = vmatprep.subr.mxu1 %v503_v57  ;;  %v498_v0 = vld [vmem:[%s3953_s1 + $0xea0] sm:$0xff]  ;;  %v28_v1 = vld [vmem:[%s3952_s0 + $0x8] sm:$0xff]  ;;  %874 = vmatpush2.msra.mxu0 %v374_v58  ;;  %v68_v58 = vld [vmem:[%s3953_s1 + $0x130] sm:$0xff] }
  0x78   :  { %945 = vmatpush2.msra.mxu1 %v502_v59  ;;  %v367_v2 = vld [vmem:[%s3953_s1 + $0xa88] sm:$0xff]  ;;  %875 = vmatprep.subr.mxu0 %v371_v60  ;;  %v366_v5 = vld [vmem:[%s3953_s1 + $0xa80] sm:$0xff]  ;;  %v648_v10 = vcombine.high %v28_v1, %v28_v1  ;;  %v2686_v16 = vrot.slane %v28_v1, %v2254_v52  ;;  %v65_v60 = vld [vmem:[%s3953_s1 + $0x118] sm:$0xff] }
  0x79   :  { %v495_v4 = vld [vmem:[%s3953_s1 + $0xe88] sm:$0xff]  ;;  %946 = vmatprep.subr.mxu1 %v499_v61  ;;  %v494_v6 = vld [vmem:[%s3953_s1 + $0xe80] sm:$0xff]  ;;  %876 = vmatpush2.msra.mxu0 %v370_v63  ;;  %v64_v63 = vld [vmem:[%s3953_s1 + $0x110] sm:$0xff] }
  0x7a   :  { %947 = vmatpush2.msra.mxu1 %v498_v0  ;;  %v363_v7 = vld [vmem:[%s3953_s1 + $0xa68] sm:$0xff]  ;;  %877 = vmatprep.subr.mxu0 %v367_v2  ;;  %v362_v12 = vld [vmem:[%s3953_s1 + $0xa60] sm:$0xff]  ;;  %v2701_v21 = vrot.slane %v648_v10, %v2254_v52  ;;  %v2717_v25 = vcombine.high %v2686_v16, %v2686_v16  ;;  %v61_v1 = vld [vmem:[%s3953_s1 + $0xf8] sm:$0xff] }
  0x7b   :  { %v491_v9 = vld [vmem:[%s3953_s1 + $0xe68] sm:$0xff]  ;;  %948 = vmatprep.subr.mxu1 %v495_v4  ;;  %v490_v13 = vld [vmem:[%s3953_s1 + $0xe60] sm:$0xff]  ;;  %878 = vmatpush2.msra.mxu0 %v366_v5  ;;  %v60_v4 = vld [vmem:[%s3953_s1 + $0xf0] sm:$0xff] }
  0x7c   :  { %949 = vmatpush2.msra.mxu1 %v494_v6  ;;  %v359_v14 = vld [vmem:[%s3953_s1 + $0xa48] sm:$0xff]  ;;  %879 = vmatprep.subr.mxu0 %v363_v7  ;;  %v358_v17 = vld [vmem:[%s3953_s1 + $0xa40] sm:$0xff]  ;;  %v2727_v28 = vcombine.high %v2701_v21, %v2701_v21  ;;  %v57_v6 = vld [vmem:[%s3953_s1 + $0xd8] sm:$0xff] }
  0x7d   :  { %v487_v15 = vld [vmem:[%s3953_s1 + $0xe48] sm:$0xff]  ;;  %950 = vmatprep.subr.mxu1 %v491_v9  ;;  %v486_v18 = vld [vmem:[%s3953_s1 + $0xe40] sm:$0xff]  ;;  %880 = vmatpush2.msra.mxu0 %v362_v12  ;;  %v56_v9 = vld [vmem:[%s3953_s1 + $0xd0] sm:$0xff] }
  0x7e   :  { %951 = vmatpush2.msra.mxu1 %v490_v13  ;;  %v355_v19 = vld [vmem:[%s3953_s1 + $0xa28] sm:$0xff]  ;;  %881 = vmatprep.subr.mxu0 %v359_v14  ;;  %v354_v22 = vld [vmem:[%s3953_s1 + $0xa20] sm:$0xff]  ;;  %v53_v12 = vld [vmem:[%s3953_s1 + $0xb8] sm:$0xff] }
  0x7f   :  { %v483_v20 = vld [vmem:[%s3953_s1 + $0xe28] sm:$0xff]  ;;  %952 = vmatprep.subr.mxu1 %v487_v15  ;;  %v482_v23 = vld [vmem:[%s3953_s1 + $0xe20] sm:$0xff]  ;;  %882 = vmatpush2.msra.mxu0 %v358_v17  ;;  %v52_v14 = vld [vmem:[%s3953_s1 + $0xb0] sm:$0xff] }
  0x80   :  { %953 = vmatpush2.msra.mxu1 %v486_v18  ;;  %v351_v24 = vld [vmem:[%s3953_s1 + $0xa08] sm:$0xff]  ;;  %883 = vmatprep.subr.mxu0 %v355_v19  ;;  %v350_v26 = vld [vmem:[%s3953_s1 + $0xa00] sm:$0xff]  ;;  %v49_v17 = vld [vmem:[%s3953_s1 + $0x98] sm:$0xff] }
  0x81   :  { %v479_v52 = vld [vmem:[%s3953_s1 + $0xe08] sm:$0xff]  ;;  %954 = vmatprep.subr.mxu1 %v483_v20  ;;  %884 = vmatpush2.msra.mxu0 %v354_v22  ;;  %v478_v27 = vld [vmem:[%s3953_s1 + $0xe00] sm:$0xff]  ;;  %v48_v19 = vld [vmem:[%s3953_s1 + $0x90] sm:$0xff] }
  0x82   :  { %955 = vmatpush2.msra.mxu1 %v482_v23  ;;  %885 = vmatprep.subr.mxu0 %v351_v24  ;;  %v603_v29 = vld [vmem:[%s3953_s1 + $0x11e8] sm:$0xff]  ;;  %v602_v31 = vld [vmem:[%s3953_s1 + $0x11e0] sm:$0xff]  ;;  %v45_v22 = vld [vmem:[%s3953_s1 + $0x78] sm:$0xff] }
  0x83   :  { %956 = vmatprep.subr.mxu1 %v479_v52  ;;  %886 = vmatpush2.msra.mxu0 %v350_v26  ;;  %v599_v33 = vld [vmem:[%s3953_s1 + $0x11c8] sm:$0xff]  ;;  %v598_v35 = vld [vmem:[%s3953_s1 + $0x11c0] sm:$0xff]  ;;  %v44_v24 = vld [vmem:[%s3953_s1 + $0x70] sm:$0xff] }
  0x84   :  { %887 = vmatprep.mubr.f32.mxu0 %v2717_v25  ;;  %957 = vmatpush2.msra.mxu1 %v478_v27  ;;  %v595_v37 = vld [vmem:[%s3953_s1 + $0x11a8] sm:$0xff]  ;;  %v594_v39 = vld [vmem:[%s3953_s1 + $0x11a0] sm:$0xff]  ;;  %v41_v26 = vld [vmem:[%s3953_s1 + $0x58] sm:$0xff] }
  0x85   :  { %888 = vmatmul.mubr.f32.vlgmr.msra.gmra.mxu0 %v2686_v16  ;;  %958 = vmatprep.mubr.f32.mxu1 %v2727_v28  ;;  %v591_v42 = vld [vmem:[%s3953_s1 + $0x1188] sm:$0xff]  ;;  %v590_v44 = vld [vmem:[%s3953_s1 + $0x1180] sm:$0xff] }
  0x86   :  { %965 = vmatprep.subr.mxu0 %v603_v29  ;;  %1036 = vmatprep.subr.mxu1 %v93_v30  ;;  %v587_v46 = vld [vmem:[%s3953_s1 + $0x1168] sm:$0xff]  ;;  %v586_v48 = vld [vmem:[%s3953_s1 + $0x1160] sm:$0xff]  ;;  %v40_v29 = vld [vmem:[%s3953_s1 + $0x50] sm:$0xff] }
  0x87   :  { %959 = vmatmul.mubr.f32.vlgmr.msra.gmra.mxu1 %v2701_v21  ;;  %966 = vmatpush1.msra.mxu0 %v602_v31  ;;  %v583_v50 = vld [vmem:[%s3953_s1 + $0x1148] sm:$0xff]  ;;  %v582_v53 = vld [vmem:[%s3953_s1 + $0x1140] sm:$0xff]  ;;  %v37_v31 = vld [vmem:[%s3953_s1 + $0x38] sm:$0xff] }
  0x88   :  { %1037 = vmatpush1.msra.mxu1 %v92_v32  ;;  %967 = vmatprep.subr.mxu0 %v599_v33  ;;  %v579_v55 = vld [vmem:[%s3953_s1 + $0x1128] sm:$0xff]  ;;  %v578_v57 = vld [vmem:[%s3953_s1 + $0x1120] sm:$0xff]  ;;  %v36_v33 = vld [vmem:[%s3953_s1 + $0x30] sm:$0xff] }
  0x89   :  { %1038 = vmatprep.subr.mxu1 %v89_v34  ;;  %968 = vmatpush1.msra.mxu0 %v598_v35  ;;  %v575_v59 = vld [vmem:[%s3953_s1 + $0x1108] sm:$0xff]  ;;  %v574_v61 = vld [vmem:[%s3953_s1 + $0x1100] sm:$0xff]  ;;  %v33_v35 = vld [vmem:[%s3953_s1 + $0x18] sm:$0xff] }
  0x8a   :  { %1039 = vmatpush1.msra.mxu1 %v88_v36  ;;  %969 = vmatprep.subr.mxu0 %v595_v37  ;;  %v571_v0 = vld [vmem:[%s3953_s1 + $0x10e8] sm:$0xff]  ;;  %v570_v2 = vld [vmem:[%s3953_s1 + $0x10e0] sm:$0xff]  ;;  %v32_v37 = vld [vmem:[%s3953_s1 + $0x10] sm:$0xff] }
  0x8b   :  { %1040 = vmatprep.subr.mxu1 %v85_v38  ;;  %970 = vmatpush1.msra.mxu0 %v594_v39  ;;  %v567_v5 = vld [vmem:[%s3953_s1 + $0x10c8] sm:$0xff]  ;;  %v566_v7 = vld [vmem:[%s3953_s1 + $0x10c0] sm:$0xff]  ;;  %v1736_v38 = vld.sshfl [vmem:[%s3952_s0 + $0x10] sm:$0x3 pattern:$0x76325410] }
  0x8c   :  { %1041 = vmatpush1.msra.mxu1 %v84_v40  ;;  %971 = vmatprep.subr.mxu0 %v591_v42  ;;  %v563_v10 = vld [vmem:[%s3953_s1 + $0x10a8] sm:$0xff]  ;;  %v562_v13 = vld [vmem:[%s3953_s1 + $0x10a0] sm:$0xff]  ;;  %v157_v39 = vld [vmem:[%s3953_s1 + $0x3f8] sm:$0xff]  ;;  %v1875_v42 = vmov 0.0  }
  0x8d   :  { %1042 = vmatprep.subr.mxu1 %v81_v43  ;;  %972 = vmatpush1.msra.mxu0 %v590_v44  ;;  %v559_v15 = vld [vmem:[%s3953_s1 + $0x1088] sm:$0xff]  ;;  %v558_v18 = vld [vmem:[%s3953_s1 + $0x1080] sm:$0xff]  ;;  %v221_v40 = vld [vmem:[%s3953_s1 + $0x5f8] sm:$0xff] }
  0x8e   :  { %1043 = vmatpush1.msra.mxu1 %v80_v45  ;;  %973 = vmatprep.subr.mxu0 %v587_v46  ;;  %v555_v20 = vld [vmem:[%s3953_s1 + $0x1068] sm:$0xff]  ;;  %v554_v23 = vld [vmem:[%s3953_s1 + $0x1060] sm:$0xff]  ;;  %v156_v43 = vld [vmem:[%s3953_s1 + $0x3f0] sm:$0xff] }
  0x8f   :  { %1044 = vmatprep.subr.mxu1 %v77_v47  ;;  %974 = vmatpush1.msra.mxu0 %v586_v48  ;;  %v551_v52 = vld [vmem:[%s3953_s1 + $0x1048] sm:$0xff]  ;;  %v550_v27 = vld [vmem:[%s3953_s1 + $0x1040] sm:$0xff]  ;;  %v220_v44 = vld [vmem:[%s3953_s1 + $0x5f0] sm:$0xff] }
  0x90   :  { %1045 = vmatpush1.msra.mxu1 %v76_v49  ;;  %975 = vmatprep.subr.mxu0 %v583_v50  ;;  %v547_v30 = vld [vmem:[%s3953_s1 + $0x1028] sm:$0xff]  ;;  %v546_v32 = vld [vmem:[%s3953_s1 + $0x1020] sm:$0xff]  ;;  %v153_v45 = vld [vmem:[%s3953_s1 + $0x3d8] sm:$0xff] }
  0x91   :  { %1046 = vmatprep.subr.mxu1 %v73_v51  ;;  %976 = vmatpush1.msra.mxu0 %v582_v53  ;;  %v543_v34 = vld [vmem:[%s3953_s1 + $0x1008] sm:$0xff]  ;;  %v542_v36 = vld [vmem:[%s3953_s1 + $0x1000] sm:$0xff]  ;;  %v217_v46 = vld [vmem:[%s3953_s1 + $0x5d8] sm:$0xff] }
  0x92   :  { %1047 = vmatpush1.msra.mxu1 %v72_v54  ;;  %977 = vmatprep.subr.mxu0 %v579_v55  ;;  %v152_v47 = vld [vmem:[%s3953_s1 + $0x3d0] sm:$0xff]  ;;  %v149_v49 = vld [vmem:[%s3953_s1 + $0x3b8] sm:$0xff] }
  0x93   :  { %1048 = vmatprep.subr.mxu1 %v69_v56  ;;  %978 = vmatpush1.msra.mxu0 %v578_v57  ;;  %v216_v48 = vld [vmem:[%s3953_s1 + $0x5d0] sm:$0xff]  ;;  %v213_v50 = vld [vmem:[%s3953_s1 + $0x5b8] sm:$0xff] }
  0x94   :  { %1049 = vmatpush1.msra.mxu1 %v68_v58  ;;  %979 = vmatprep.subr.mxu0 %v575_v59  ;;  %v148_v51 = vld [vmem:[%s3953_s1 + $0x3b0] sm:$0xff]  ;;  %v145_v54 = vld [vmem:[%s3953_s1 + $0x398] sm:$0xff] }
  0x95   :  { %1050 = vmatprep.subr.mxu1 %v65_v60  ;;  %980 = vmatpush1.msra.mxu0 %v574_v61  ;;  %v212_v53 = vld [vmem:[%s3953_s1 + $0x5b0] sm:$0xff]  ;;  %v209_v55 = vld [vmem:[%s3953_s1 + $0x598] sm:$0xff] }
  0x96   :  { %1051 = vmatpush1.msra.mxu1 %v64_v63  ;;  %981 = vmatprep.subr.mxu0 %v571_v0  ;;  %v144_v56 = vld [vmem:[%s3953_s1 + $0x390] sm:$0xff]  ;;  %v141_v58 = vld [vmem:[%s3953_s1 + $0x378] sm:$0xff] }
  0x97   :  { %1052 = vmatprep.subr.mxu1 %v61_v1  ;;  %982 = vmatpush1.msra.mxu0 %v570_v2  ;;  %v208_v57 = vld [vmem:[%s3953_s1 + $0x590] sm:$0xff]  ;;  %v205_v59 = vld [vmem:[%s3953_s1 + $0x578] sm:$0xff] }
  0x98   :  { %1053 = vmatpush1.msra.mxu1 %v60_v4  ;;  %983 = vmatprep.subr.mxu0 %v567_v5  ;;  %v140_v60 = vld [vmem:[%s3953_s1 + $0x370] sm:$0xff]  ;;  %v137_v63 = vld [vmem:[%s3953_s1 + $0x358] sm:$0xff] }
  0x99   :  { %1054 = vmatprep.subr.mxu1 %v57_v6  ;;  %984 = vmatpush1.msra.mxu0 %v566_v7  ;;  %v204_v61 = vld [vmem:[%s3953_s1 + $0x570] sm:$0xff]  ;;  %v201_v0 = vld [vmem:[%s3953_s1 + $0x558] sm:$0xff] }
  0x9a   :  { %1055 = vmatpush1.msra.mxu1 %v56_v9  ;;  %985 = vmatprep.subr.mxu0 %v563_v10  ;;  %v136_v1 = vld [vmem:[%s3953_s1 + $0x350] sm:$0xff]  ;;  %v133_v4 = vld [vmem:[%s3953_s1 + $0x338] sm:$0xff] }
  0x9b   :  { %1056 = vmatprep.subr.mxu1 %v53_v12  ;;  %986 = vmatpush1.msra.mxu0 %v562_v13  ;;  %v200_v2 = vld [vmem:[%s3953_s1 + $0x550] sm:$0xff]  ;;  %v197_v5 = vld [vmem:[%s3953_s1 + $0x538] sm:$0xff] }
  0x9c   :  { %1057 = vmatpush1.msra.mxu1 %v52_v14  ;;  %987 = vmatprep.subr.mxu0 %v559_v15  ;;  %v132_v6 = vld [vmem:[%s3953_s1 + $0x330] sm:$0xff]  ;;  %v129_v9 = vld [vmem:[%s3953_s1 + $0x318] sm:$0xff] }
  0x9d   :  { %1058 = vmatprep.subr.mxu1 %v49_v17  ;;  %988 = vmatpush1.msra.mxu0 %v558_v18  ;;  %v196_v7 = vld [vmem:[%s3953_s1 + $0x530] sm:$0xff]  ;;  %v193_v10 = vld [vmem:[%s3953_s1 + $0x518] sm:$0xff] }
  0x9e   :  { %1059 = vmatpush1.msra.mxu1 %v48_v19  ;;  %989 = vmatprep.subr.mxu0 %v555_v20  ;;  %v128_v12 = vld [vmem:[%s3953_s1 + $0x310] sm:$0xff]  ;;  %v125_v14 = vld [vmem:[%s3953_s1 + $0x2f8] sm:$0xff] }
  0x9f   :  { %1060 = vmatprep.subr.mxu1 %v45_v22  ;;  %990 = vmatpush1.msra.mxu0 %v554_v23  ;;  %v192_v13 = vld [vmem:[%s3953_s1 + $0x510] sm:$0xff]  ;;  %v189_v15 = vld [vmem:[%s3953_s1 + $0x4f8] sm:$0xff] }
  0xa0   :  { %1061 = vmatpush1.msra.mxu1 %v44_v24  ;;  %991 = vmatprep.subr.mxu0 %v551_v52  ;;  %v124_v17 = vld [vmem:[%s3953_s1 + $0x2f0] sm:$0xff]  ;;  %v121_v19 = vld [vmem:[%s3953_s1 + $0x2d8] sm:$0xff] }
  0xa1   :  { %1062 = vmatprep.subr.mxu1 %v41_v26  ;;  %992 = vmatpush1.msra.mxu0 %v550_v27  ;;  %v188_v18 = vld [vmem:[%s3953_s1 + $0x4f0] sm:$0xff]  ;;  %v185_v20 = vld [vmem:[%s3953_s1 + $0x4d8] sm:$0xff] }
  0xa2   :  { %1063 = vmatpush1.msra.mxu1 %v40_v29  ;;  %993 = vmatprep.subr.mxu0 %v547_v30  ;;  %v120_v22 = vld [vmem:[%s3953_s1 + $0x2d0] sm:$0xff]  ;;  %v117_v24 = vld [vmem:[%s3953_s1 + $0x2b8] sm:$0xff] }
  0xa3   :  { %1064 = vmatprep.subr.mxu1 %v37_v31  ;;  %994 = vmatpush1.msra.mxu0 %v546_v32  ;;  %v184_v23 = vld [vmem:[%s3953_s1 + $0x4d0] sm:$0xff]  ;;  %v181_v52 = vld [vmem:[%s3953_s1 + $0x4b8] sm:$0xff] }
  0xa4   :  { %1065 = vmatpush1.msra.mxu1 %v36_v33  ;;  %995 = vmatprep.subr.mxu0 %v543_v34  ;;  %v116_v26 = vld [vmem:[%s3953_s1 + $0x2b0] sm:$0xff]  ;;  %v113_v29 = vld [vmem:[%s3953_s1 + $0x298] sm:$0xff] }
  0xa5   :  { %1066 = vmatprep.subr.mxu1 %v33_v35  ;;  %996 = vmatpush1.msra.mxu0 %v542_v36  ;;  %v180_v27 = vld [vmem:[%s3953_s1 + $0x4b0] sm:$0xff]  ;;  %v177_v30 = vld [vmem:[%s3953_s1 + $0x498] sm:$0xff] }
  0xa6   :  { %1029 = vmatprep.mubr.f32.mxu0 %v1875_v42  ;;  %1067 = vmatpush1.msra.mxu1 %v32_v37  ;;  %v112_v31 = vld [vmem:[%s3953_s1 + $0x290] sm:$0xff]  ;;  %v109_v33 = vld [vmem:[%s3953_s1 + $0x278] sm:$0xff] }
  0xa7   :  { %1030 = vmatmul.mubr.f32.vlgmr.msra.gmra.mxu0 %v1736_v38  ;;  %1068 = vmatprep.subr.mxu1 %v157_v39  ;;  %v176_v32 = vld [vmem:[%s3953_s1 + $0x490] sm:$0xff]  ;;  %v173_v34 = vld [vmem:[%s3953_s1 + $0x478] sm:$0xff] }
  0xa8   :  { %1107 = vmatprep.subr.mxu0 %v221_v40  ;;  %1069 = vmatpush2.msra.mxu1 %v156_v43  ;;  %v108_v35 = vld [vmem:[%s3953_s1 + $0x270] sm:$0xff]  ;;  %v105_v37 = vld [vmem:[%s3953_s1 + $0x258] sm:$0xff] }
  0xa9   :  { %1108 = vmatpush1.msra.mxu0 %v220_v44  ;;  %1070 = vmatprep.subr.mxu1 %v153_v45  ;;  %v172_v36 = vld [vmem:[%s3953_s1 + $0x470] sm:$0xff]  ;;  %v169_v38 = vld [vmem:[%s3953_s1 + $0x458] sm:$0xff] }
  0xaa   :  { %1109 = vmatprep.subr.mxu0 %v217_v46  ;;  %1071 = vmatpush2.msra.mxu1 %v152_v47  ;;  %v104_v39 = vld [vmem:[%s3953_s1 + $0x250] sm:$0xff]  ;;  %v101_v43 = vld [vmem:[%s3953_s1 + $0x238] sm:$0xff] }
  0xab   :  { %1110 = vmatpush1.msra.mxu0 %v216_v48  ;;  %1072 = vmatprep.subr.mxu1 %v149_v49  ;;  %v168_v40 = vld [vmem:[%s3953_s1 + $0x450] sm:$0xff]  ;;  %v165_v44 = vld [vmem:[%s3953_s1 + $0x438] sm:$0xff] }
  0xac   :  { %1111 = vmatprep.subr.mxu0 %v213_v50  ;;  %1073 = vmatpush2.msra.mxu1 %v148_v51  ;;  %v100_v45 = vld [vmem:[%s3953_s1 + $0x230] sm:$0xff]  ;;  %v97_v47 = vld [vmem:[%s3953_s1 + $0x218] sm:$0xff] }
  0xad   :  { %1112 = vmatpush1.msra.mxu0 %v212_v53  ;;  %1074 = vmatprep.subr.mxu1 %v145_v54  ;;  %v164_v46 = vld [vmem:[%s3953_s1 + $0x430] sm:$0xff]  ;;  %v161_v48 = vld [vmem:[%s3953_s1 + $0x418] sm:$0xff] }
  0xae   :  { %1113 = vmatprep.subr.mxu0 %v209_v55  ;;  %1075 = vmatpush2.msra.mxu1 %v144_v56 }
  0xaf   :  { %1114 = vmatpush1.msra.mxu0 %v208_v57  ;;  %1076 = vmatprep.subr.mxu1 %v141_v58 }
  0xb0   :  { %1115 = vmatprep.subr.mxu0 %v205_v59  ;;  %1077 = vmatpush2.msra.mxu1 %v140_v60 }
  0xb1   :  { %1116 = vmatpush1.msra.mxu0 %v204_v61  ;;  %1078 = vmatprep.subr.mxu1 %v137_v63 }
  0xb2   :  { %1117 = vmatprep.subr.mxu0 %v201_v0  ;;  %1079 = vmatpush2.msra.mxu1 %v136_v1 }
  0xb3   :  { %1118 = vmatpush1.msra.mxu0 %v200_v2  ;;  %1080 = vmatprep.subr.mxu1 %v133_v4 }
  0xb4   :  { %1119 = vmatprep.subr.mxu0 %v197_v5  ;;  %1081 = vmatpush2.msra.mxu1 %v132_v6 }
  0xb5   :  { %1120 = vmatpush1.msra.mxu0 %v196_v7  ;;  %1082 = vmatprep.subr.mxu1 %v129_v9 }
  0xb6   :  { %1121 = vmatprep.subr.mxu0 %v193_v10  ;;  %1083 = vmatpush2.msra.mxu1 %v128_v12 }
  0xb7   :  { %1122 = vmatpush1.msra.mxu0 %v192_v13  ;;  %1084 = vmatprep.subr.mxu1 %v125_v14 }
  0xb8   :  { %1123 = vmatprep.subr.mxu0 %v189_v15  ;;  %1085 = vmatpush2.msra.mxu1 %v124_v17 }
  0xb9   :  { %1124 = vmatpush1.msra.mxu0 %v188_v18  ;;  %1086 = vmatprep.subr.mxu1 %v121_v19 }
  0xba   :  { %1125 = vmatprep.subr.mxu0 %v185_v20  ;;  %1087 = vmatpush2.msra.mxu1 %v120_v22 }
  0xbb   :  { %1126 = vmatpush1.msra.mxu0 %v184_v23  ;;  %1088 = vmatprep.subr.mxu1 %v117_v24 }
  0xbc   :  { %1127 = vmatprep.subr.mxu0 %v181_v52  ;;  %1089 = vmatpush2.msra.mxu1 %v116_v26 }
  0xbd   :  { %1128 = vmatpush1.msra.mxu0 %v180_v27  ;;  %1090 = vmatprep.subr.mxu1 %v113_v29 }
  0xbe   :  { %1129 = vmatprep.subr.mxu0 %v177_v30  ;;  %1091 = vmatpush2.msra.mxu1 %v112_v31 }
  0xbf   :  { %1130 = vmatpush1.msra.mxu0 %v176_v32  ;;  %1092 = vmatprep.subr.mxu1 %v109_v33 }
  0xc0   :  { %1131 = vmatprep.subr.mxu0 %v173_v34  ;;  %1093 = vmatpush2.msra.mxu1 %v108_v35 }
  0xc1   :  { %1132 = vmatpush1.msra.mxu0 %v172_v36  ;;  %1094 = vmatprep.subr.mxu1 %v105_v37 }
  0xc2   :  { %1133 = vmatprep.subr.mxu0 %v169_v38  ;;  %1095 = vmatpush2.msra.mxu1 %v104_v39 }
  0xc3   :  { %1134 = vmatpush1.msra.mxu0 %v168_v40 }
  0xc4   :  { %12 = vsyncpa [#allocation3], 0  ;;  %1096 = vmatprep.subr.mxu1 %v101_v43  ;;  %1135 = vmatprep.subr.mxu0 %v165_v44  ;;  %v96_v49 = vld [vmem:[%s3953_s1 + $0x210] sm:$0xff]  ;;  %v285_v51 = vld [vmem:[%s3953_s1 + $0x7f8] sm:$0xff]  ;;  %vm1472_vm0 = vcmask 130048   ;;  %vm1646_vm1 = vcmask 1043456  }
  0xc5   :  { %v160_v50 = vld [vmem:[%s3953_s1 + $0x410] sm:$0xff]  ;;  %1097 = vmatpush2.msra.mxu1 %v100_v45  ;;  %1136 = vmatpush1.msra.mxu0 %v164_v46  ;;  %v349_v53 = vld [vmem:[%s3953_s1 + $0x9f8] sm:$0xff]  ;;  %vm1876_vm2 = vmmov 0   ;;  %vm1642_vm3 = vcmask 818176   ;;  %s1877_s12 = smov [#allocation2]   ;;  %vm1720_vm4 = vcmask 74752  }
  0xc6   :  { %1098 = vmatprep.subr.mxu1 %v97_v47  ;;  %1137 = vmatprep.subr.mxu0 %v161_v48  ;;  %v284_v54 = vld [vmem:[%s3953_s1 + $0x7f0] sm:$0xff]  ;;  %v281_v56 = vld [vmem:[%s3953_s1 + $0x7d8] sm:$0xff]  ;;  %s1728_s13 = sshll.u32 %s1877_s12, 4  ;;  %s1729_s13 = int_to_ptr.vmem [resolvable:$true] %s1728_s13 }
  0xc7   :  { %1099 = vmatpush2.msra.mxu1 %v96_v49  ;;  %1138 = vmatpush1.msra.mxu0 %v160_v50  ;;  %v348_v55 = vld [vmem:[%s3953_s1 + $0x9f0] sm:$0xff]  ;;  %v345_v57 = vld [vmem:[%s3953_s1 + $0x9d8] sm:$0xff]  ;;  %p1857_p1 = scmp.lt.s32.totalorder %s1729_s13, %s1729_s13 }
  0xc8   :  { %1100 = vmatprep.mubr.f32.mxu1 %v2312_v8  ;;  %1139 = vmatprep.subr.mxu0 %v285_v51  ;;  %v280_v58 = vld [vmem:[%s3953_s1 + $0x7d0] sm:$0xff]  ;;  %v277_v59 = vld [vmem:[%s3953_s1 + $0x7b8] sm:$0xff] }
  0xc9   :  { %1178 = vmatprep.subr.mxu1 %v349_v53  ;;  %1101 = vmatmul.mubr.f32.vlgmr.msra.gmra.mxu1 %v2281_v62  ;;  %v344_v8 = vld [vmem:[%s3953_s1 + $0x9d0] sm:$0xff]  ;;  %v341_v60 = vld [vmem:[%s3953_s1 + $0x9b8] sm:$0xff] }
  0xca   :  { %1140 = vmatpush2.msra.mxu0 %v284_v54  ;;  %1179 = vmatpush1.msra.mxu1 %v348_v55  ;;  %v276_v62 = vld [vmem:[%s3953_s1 + $0x7b0] sm:$0xff]  ;;  %v273_v63 = vld [vmem:[%s3953_s1 + $0x798] sm:$0xff] }
  0xcb   :  { %1141 = vmatprep.subr.mxu0 %v281_v56  ;;  %1180 = vmatprep.subr.mxu1 %v345_v57  ;;  %v340_v61 = vld [vmem:[%s3953_s1 + $0x9b0] sm:$0xff]  ;;  %v337_v0 = vld [vmem:[%s3953_s1 + $0x998] sm:$0xff] }
  0xcc   :  { %1142 = vmatpush2.msra.mxu0 %v280_v58  ;;  %1181 = vmatpush1.msra.mxu1 %v344_v8  ;;  %v272_v1 = vld [vmem:[%s3953_s1 + $0x790] sm:$0xff]  ;;  %v269_v4 = vld [vmem:[%s3953_s1 + $0x778] sm:$0xff] }
  0xcd   :  { %1143 = vmatprep.subr.mxu0 %v277_v59  ;;  %1182 = vmatprep.subr.mxu1 %v341_v60  ;;  %v336_v2 = vld [vmem:[%s3953_s1 + $0x990] sm:$0xff]  ;;  %v333_v5 = vld [vmem:[%s3953_s1 + $0x978] sm:$0xff] }
  0xce   :  { %1144 = vmatpush2.msra.mxu0 %v276_v62  ;;  %1183 = vmatpush1.msra.mxu1 %v340_v61  ;;  %v268_v6 = vld [vmem:[%s3953_s1 + $0x770] sm:$0xff]  ;;  %v265_v9 = vld [vmem:[%s3953_s1 + $0x758] sm:$0xff] }
  0xcf   :  { %1145 = vmatprep.subr.mxu0 %v273_v63  ;;  %1184 = vmatprep.subr.mxu1 %v337_v0  ;;  %v332_v7 = vld [vmem:[%s3953_s1 + $0x970] sm:$0xff]  ;;  %v329_v10 = vld [vmem:[%s3953_s1 + $0x958] sm:$0xff] }
  0xd0   :  { %1146 = vmatpush2.msra.mxu0 %v272_v1  ;;  %1185 = vmatpush1.msra.mxu1 %v336_v2  ;;  %v264_v12 = vld [vmem:[%s3953_s1 + $0x750] sm:$0xff]  ;;  %v261_v14 = vld [vmem:[%s3953_s1 + $0x738] sm:$0xff] }
  0xd1   :  { %1147 = vmatprep.subr.mxu0 %v269_v4  ;;  %1186 = vmatprep.subr.mxu1 %v333_v5  ;;  %v328_v13 = vld [vmem:[%s3953_s1 + $0x950] sm:$0xff]  ;;  %v325_v15 = vld [vmem:[%s3953_s1 + $0x938] sm:$0xff] }
  0xd2   :  { %1148 = vmatpush2.msra.mxu0 %v268_v6  ;;  %1187 = vmatpush1.msra.mxu1 %v332_v7  ;;  %v260_v17 = vld [vmem:[%s3953_s1 + $0x730] sm:$0xff]  ;;  %v257_v19 = vld [vmem:[%s3953_s1 + $0x718] sm:$0xff] }
  0xd3   :  { %1149 = vmatprep.subr.mxu0 %v265_v9  ;;  %1188 = vmatprep.subr.mxu1 %v329_v10  ;;  %v324_v18 = vld [vmem:[%s3953_s1 + $0x930] sm:$0xff]  ;;  %v321_v20 = vld [vmem:[%s3953_s1 + $0x918] sm:$0xff] }
  0xd4   :  { %1150 = vmatpush2.msra.mxu0 %v264_v12  ;;  %1189 = vmatpush1.msra.mxu1 %v328_v13  ;;  %v256_v22 = vld [vmem:[%s3953_s1 + $0x710] sm:$0xff]  ;;  %v253_v24 = vld [vmem:[%s3953_s1 + $0x6f8] sm:$0xff] }
  0xd5   :  { %1151 = vmatprep.subr.mxu0 %v261_v14  ;;  %1190 = vmatprep.subr.mxu1 %v325_v15  ;;  %v320_v23 = vld [vmem:[%s3953_s1 + $0x910] sm:$0xff]  ;;  %v317_v52 = vld [vmem:[%s3953_s1 + $0x8f8] sm:$0xff] }
  0xd6   :  { %1152 = vmatpush2.msra.mxu0 %v260_v17  ;;  %1191 = vmatpush1.msra.mxu1 %v324_v18  ;;  %v252_v26 = vld [vmem:[%s3953_s1 + $0x6f0] sm:$0xff]  ;;  %v249_v29 = vld [vmem:[%s3953_s1 + $0x6d8] sm:$0xff] }
  0xd7   :  { %1153 = vmatprep.subr.mxu0 %v257_v19  ;;  %1192 = vmatprep.subr.mxu1 %v321_v20  ;;  %v316_v27 = vld [vmem:[%s3953_s1 + $0x8f0] sm:$0xff]  ;;  %v313_v30 = vld [vmem:[%s3953_s1 + $0x8d8] sm:$0xff] }
  0xd8   :  { %1154 = vmatpush2.msra.mxu0 %v256_v22  ;;  %1193 = vmatpush1.msra.mxu1 %v320_v23  ;;  %v248_v31 = vld [vmem:[%s3953_s1 + $0x6d0] sm:$0xff]  ;;  %v245_v33 = vld [vmem:[%s3953_s1 + $0x6b8] sm:$0xff] }
  0xd9   :  { %1155 = vmatprep.subr.mxu0 %v253_v24  ;;  %1194 = vmatprep.subr.mxu1 %v317_v52  ;;  %v312_v32 = vld [vmem:[%s3953_s1 + $0x8d0] sm:$0xff]  ;;  %v309_v34 = vld [vmem:[%s3953_s1 + $0x8b8] sm:$0xff] }
  0xda   :  { %1156 = vmatpush2.msra.mxu0 %v252_v26  ;;  %1195 = vmatpush1.msra.mxu1 %v316_v27  ;;  %v244_v35 = vld [vmem:[%s3953_s1 + $0x6b0] sm:$0xff]  ;;  %v241_v37 = vld [vmem:[%s3953_s1 + $0x698] sm:$0xff] }
  0xdb   :  { %1157 = vmatprep.subr.mxu0 %v249_v29  ;;  %1196 = vmatprep.subr.mxu1 %v313_v30  ;;  %v308_v36 = vld [vmem:[%s3953_s1 + $0x8b0] sm:$0xff]  ;;  %v305_v38 = vld [vmem:[%s3953_s1 + $0x898] sm:$0xff] }
  0xdc   :  { %1158 = vmatpush2.msra.mxu0 %v248_v31  ;;  %1197 = vmatpush1.msra.mxu1 %v312_v32  ;;  %v240_v39 = vld [vmem:[%s3953_s1 + $0x690] sm:$0xff]  ;;  %v237_v43 = vld [vmem:[%s3953_s1 + $0x678] sm:$0xff] }
  0xdd   :  { %1159 = vmatprep.subr.mxu0 %v245_v33  ;;  %1198 = vmatprep.subr.mxu1 %v309_v34  ;;  %v304_v40 = vld [vmem:[%s3953_s1 + $0x890] sm:$0xff]  ;;  %v301_v44 = vld [vmem:[%s3953_s1 + $0x878] sm:$0xff] }
  0xde   :  { %1160 = vmatpush2.msra.mxu0 %v244_v35  ;;  %1199 = vmatpush1.msra.mxu1 %v308_v36  ;;  %v236_v45 = vld [vmem:[%s3953_s1 + $0x670] sm:$0xff]  ;;  %v233_v47 = vld [vmem:[%s3953_s1 + $0x658] sm:$0xff] }
  0xdf   :  { %1161 = vmatprep.subr.mxu0 %v241_v37  ;;  %1200 = vmatprep.subr.mxu1 %v305_v38  ;;  %v300_v46 = vld [vmem:[%s3953_s1 + $0x870] sm:$0xff]  ;;  %v297_v48 = vld [vmem:[%s3953_s1 + $0x858] sm:$0xff] }
  0xe0   :  { %1162 = vmatpush2.msra.mxu0 %v240_v39  ;;  %1201 = vmatpush1.msra.mxu1 %v304_v40  ;;  %v232_v49 = vld [vmem:[%s3953_s1 + $0x650] sm:$0xff]  ;;  %v229_v51 = vld [vmem:[%s3953_s1 + $0x638] sm:$0xff] }
  0xe1   :  { %1163 = vmatprep.subr.mxu0 %v237_v43  ;;  %1202 = vmatprep.subr.mxu1 %v301_v44  ;;  %v296_v50 = vld [vmem:[%s3953_s1 + $0x850] sm:$0xff]  ;;  %v293_v53 = vld [vmem:[%s3953_s1 + $0x838] sm:$0xff] }
  0xe2   :  { %1164 = vmatpush2.msra.mxu0 %v236_v45  ;;  %1203 = vmatpush1.msra.mxu1 %v300_v46  ;;  %v228_v54 = vld [vmem:[%s3953_s1 + $0x630] sm:$0xff]  ;;  %v225_v56 = vld [vmem:[%s3953_s1 + $0x618] sm:$0xff] }
  0xe3   :  { %1165 = vmatprep.subr.mxu0 %v233_v47  ;;  %1204 = vmatprep.subr.mxu1 %v297_v48  ;;  %v292_v55 = vld [vmem:[%s3953_s1 + $0x830] sm:$0xff]  ;;  %v289_v57 = vld [vmem:[%s3953_s1 + $0x818] sm:$0xff] }
  0xe4   :  { %1166 = vmatpush2.msra.mxu0 %v232_v49  ;;  %1205 = vmatpush1.msra.mxu1 %v296_v50  ;;  %v224_v58 = vld [vmem:[%s3953_s1 + $0x610] sm:$0xff]  ;;  %v413_v59 = vld [vmem:[%s3953_s1 + $0xbf8] sm:$0xff] }
  0xe5   :  { %1167 = vmatprep.subr.mxu0 %v229_v51  ;;  %1206 = vmatprep.subr.mxu1 %v293_v53  ;;  %v288_v8 = vld [vmem:[%s3953_s1 + $0x810] sm:$0xff]  ;;  %v477_v60 = vld [vmem:[%s3953_s1 + $0xdf8] sm:$0xff] }
  0xe6   :  { %1168 = vmatpush2.msra.mxu0 %v228_v54  ;;  %1207 = vmatpush1.msra.mxu1 %v292_v55  ;;  %v412_v62 = vld [vmem:[%s3953_s1 + $0xbf0] sm:$0xff]  ;;  %v409_v63 = vld [vmem:[%s3953_s1 + $0xbd8] sm:$0xff] }
  0xe7   :  { %1169 = vmatprep.subr.mxu0 %v225_v56  ;;  %1208 = vmatprep.subr.mxu1 %v289_v57  ;;  %v476_v61 = vld [vmem:[%s3953_s1 + $0xdf0] sm:$0xff]  ;;  %v473_v0 = vld [vmem:[%s3953_s1 + $0xdd8] sm:$0xff] }
  0xe8   :  { %1170 = vmatpush2.msra.mxu0 %v224_v58  ;;  %1171 = vmatprep.mubr.f32.mxu0 %v2322_v11  ;;  %v408_v11 = vld [vmem:[%s3953_s1 + $0xbd0] sm:$0xff]  ;;  %v469_v2 = vld [vmem:[%s3953_s1 + $0xdb8] sm:$0xff] }
  0xe9   :  { %1209 = vmatpush1.msra.mxu1 %v288_v8  ;;  %1172 = vmatmul.mubr.f32.vlgmr.msra.gmra.mxu0 %v2296_v3  ;;  %v472_v1 = vld [vmem:[%s3953_s1 + $0xdd0] sm:$0xff]  ;;  %v405_v3 = vld [vmem:[%s3953_s1 + $0xbb8] sm:$0xff] }
  0xea   :  { %1210 = vmatprep.subr.mxu1 %v413_v59  ;;  %1249 = vmatprep.subr.mxu0 %v477_v60  ;;  %v404_v4 = vld [vmem:[%s3953_s1 + $0xbb0] sm:$0xff]  ;;  %v401_v6 = vld [vmem:[%s3953_s1 + $0xb98] sm:$0xff] }
  0xeb   :  { %1211 = vmatpush2.msra.mxu1 %v412_v62  ;;  %1250 = vmatpush1.msra.mxu0 %v476_v61  ;;  %v468_v5 = vld [vmem:[%s3953_s1 + $0xdb0] sm:$0xff]  ;;  %v465_v7 = vld [vmem:[%s3953_s1 + $0xd98] sm:$0xff] }
  0xec   :  { %1212 = vmatprep.subr.mxu1 %v409_v63  ;;  %1251 = vmatprep.subr.mxu0 %v473_v0  ;;  %v400_v9 = vld [vmem:[%s3953_s1 + $0xb90] sm:$0xff]  ;;  %v397_v12 = vld [vmem:[%s3953_s1 + $0xb78] sm:$0xff] }
  0xed   :  { %1213 = vmatpush2.msra.mxu1 %v408_v11  ;;  %1252 = vmatpush1.msra.mxu0 %v472_v1  ;;  %v464_v10 = vld [vmem:[%s3953_s1 + $0xd90] sm:$0xff]  ;;  %v461_v13 = vld [vmem:[%s3953_s1 + $0xd78] sm:$0xff] }
  0xee   :  { %1214 = vmatprep.subr.mxu1 %v405_v3  ;;  %1253 = vmatprep.subr.mxu0 %v469_v2  ;;  %v396_v14 = vld [vmem:[%s3953_s1 + $0xb70] sm:$0xff]  ;;  %v393_v17 = vld [vmem:[%s3953_s1 + $0xb58] sm:$0xff] }
  0xef   :  { %1215 = vmatpush2.msra.mxu1 %v404_v4  ;;  %1254 = vmatpush1.msra.mxu0 %v468_v5  ;;  %v460_v15 = vld [vmem:[%s3953_s1 + $0xd70] sm:$0xff]  ;;  %v457_v18 = vld [vmem:[%s3953_s1 + $0xd58] sm:$0xff] }
  0xf0   :  { %1216 = vmatprep.subr.mxu1 %v401_v6  ;;  %1255 = vmatprep.subr.mxu0 %v465_v7  ;;  %v392_v19 = vld [vmem:[%s3953_s1 + $0xb50] sm:$0xff]  ;;  %v389_v22 = vld [vmem:[%s3953_s1 + $0xb38] sm:$0xff] }
  0xf1   :  { %1217 = vmatpush2.msra.mxu1 %v400_v9  ;;  %1256 = vmatpush1.msra.mxu0 %v464_v10  ;;  %v456_v20 = vld [vmem:[%s3953_s1 + $0xd50] sm:$0xff]  ;;  %v453_v23 = vld [vmem:[%s3953_s1 + $0xd38] sm:$0xff] }
  0xf2   :  { %1218 = vmatprep.subr.mxu1 %v397_v12  ;;  %1257 = vmatprep.subr.mxu0 %v461_v13  ;;  %v388_v24 = vld [vmem:[%s3953_s1 + $0xb30] sm:$0xff]  ;;  %v385_v26 = vld [vmem:[%s3953_s1 + $0xb18] sm:$0xff] }
  0xf3   :  { %1219 = vmatpush2.msra.mxu1 %v396_v14  ;;  %1258 = vmatpush1.msra.mxu0 %v460_v15  ;;  %v452_v52 = vld [vmem:[%s3953_s1 + $0xd30] sm:$0xff]  ;;  %v449_v27 = vld [vmem:[%s3953_s1 + $0xd18] sm:$0xff] }
  0xf4   :  { %1220 = vmatprep.subr.mxu1 %v393_v17  ;;  %1259 = vmatprep.subr.mxu0 %v457_v18  ;;  %v384_v29 = vld [vmem:[%s3953_s1 + $0xb10] sm:$0xff]  ;;  %v381_v31 = vld [vmem:[%s3953_s1 + $0xaf8] sm:$0xff] }
  0xf5   :  { %1221 = vmatpush2.msra.mxu1 %v392_v19  ;;  %1260 = vmatpush1.msra.mxu0 %v456_v20  ;;  %v448_v30 = vld [vmem:[%s3953_s1 + $0xd10] sm:$0xff]  ;;  %v445_v32 = vld [vmem:[%s3953_s1 + $0xcf8] sm:$0xff] }
  0xf6   :  { %1222 = vmatprep.subr.mxu1 %v389_v22  ;;  %1261 = vmatprep.subr.mxu0 %v453_v23  ;;  %v380_v33 = vld [vmem:[%s3953_s1 + $0xaf0] sm:$0xff]  ;;  %v377_v35 = vld [vmem:[%s3953_s1 + $0xad8] sm:$0xff] }
  0xf7   :  { %1223 = vmatpush2.msra.mxu1 %v388_v24  ;;  %1262 = vmatpush1.msra.mxu0 %v452_v52  ;;  %v444_v34 = vld [vmem:[%s3953_s1 + $0xcf0] sm:$0xff]  ;;  %v441_v36 = vld [vmem:[%s3953_s1 + $0xcd8] sm:$0xff] }
  0xf8   :  { %1224 = vmatprep.subr.mxu1 %v385_v26  ;;  %1263 = vmatprep.subr.mxu0 %v449_v27  ;;  %v376_v37 = vld [vmem:[%s3953_s1 + $0xad0] sm:$0xff]  ;;  %v373_v39 = vld [vmem:[%s3953_s1 + $0xab8] sm:$0xff] }
  0xf9   :  { %1225 = vmatpush2.msra.mxu1 %v384_v29  ;;  %1264 = vmatpush1.msra.mxu0 %v448_v30  ;;  %v440_v38 = vld [vmem:[%s3953_s1 + $0xcd0] sm:$0xff]  ;;  %v437_v40 = vld [vmem:[%s3953_s1 + $0xcb8] sm:$0xff] }
  0xfa   :  { %1226 = vmatprep.subr.mxu1 %v381_v31  ;;  %1265 = vmatprep.subr.mxu0 %v445_v32  ;;  %v372_v43 = vld [vmem:[%s3953_s1 + $0xab0] sm:$0xff]  ;;  %v369_v45 = vld [vmem:[%s3953_s1 + $0xa98] sm:$0xff] }
  0xfb   :  { %1227 = vmatpush2.msra.mxu1 %v380_v33  ;;  %1266 = vmatpush1.msra.mxu0 %v444_v34  ;;  %v436_v44 = vld [vmem:[%s3953_s1 + $0xcb0] sm:$0xff]  ;;  %v433_v46 = vld [vmem:[%s3953_s1 + $0xc98] sm:$0xff] }
  0xfc   :  { %1228 = vmatprep.subr.mxu1 %v377_v35  ;;  %1267 = vmatprep.subr.mxu0 %v441_v36  ;;  %v368_v47 = vld [vmem:[%s3953_s1 + $0xa90] sm:$0xff]  ;;  %v365_v49 = vld [vmem:[%s3953_s1 + $0xa78] sm:$0xff] }
  0xfd   :  { %1229 = vmatpush2.msra.mxu1 %v376_v37  ;;  %1268 = vmatpush1.msra.mxu0 %v440_v38  ;;  %v432_v48 = vld [vmem:[%s3953_s1 + $0xc90] sm:$0xff]  ;;  %v429_v50 = vld [vmem:[%s3953_s1 + $0xc78] sm:$0xff] }
  0xfe   :  { %1230 = vmatprep.subr.mxu1 %v373_v39  ;;  %1269 = vmatprep.subr.mxu0 %v437_v40  ;;  %v364_v51 = vld [vmem:[%s3953_s1 + $0xa70] sm:$0xff]  ;;  %v361_v54 = vld [vmem:[%s3953_s1 + $0xa58] sm:$0xff] }
  0xff   :  { %1231 = vmatpush2.msra.mxu1 %v372_v43  ;;  %1270 = vmatpush1.msra.mxu0 %v436_v44  ;;  %v428_v53 = vld [vmem:[%s3953_s1 + $0xc70] sm:$0xff]  ;;  %v425_v55 = vld [vmem:[%s3953_s1 + $0xc58] sm:$0xff] }
 0x100   :  { %1232 = vmatprep.subr.mxu1 %v369_v45  ;;  %1271 = vmatprep.subr.mxu0 %v433_v46  ;;  %v360_v56 = vld [vmem:[%s3953_s1 + $0xa50] sm:$0xff]  ;;  %v357_v58 = vld [vmem:[%s3953_s1 + $0xa38] sm:$0xff] }
 0x101   :  { %1233 = vmatpush2.msra.mxu1 %v368_v47  ;;  %1272 = vmatpush1.msra.mxu0 %v432_v48  ;;  %v424_v57 = vld [vmem:[%s3953_s1 + $0xc50] sm:$0xff]  ;;  %v421_v8 = vld [vmem:[%s3953_s1 + $0xc38] sm:$0xff] }
 0x102   :  { %1234 = vmatprep.subr.mxu1 %v365_v49  ;;  %1273 = vmatprep.subr.mxu0 %v429_v50  ;;  %v356_v59 = vld [vmem:[%s3953_s1 + $0xa30] sm:$0xff]  ;;  %v353_v62 = vld [vmem:[%s3953_s1 + $0xa18] sm:$0xff] }
 0x103   :  { %1235 = vmatpush2.msra.mxu1 %v364_v51  ;;  %1274 = vmatpush1.msra.mxu0 %v428_v53  ;;  %v420_v60 = vld [vmem:[%s3953_s1 + $0xc30] sm:$0xff]  ;;  %v417_v61 = vld [vmem:[%s3953_s1 + $0xc18] sm:$0xff] }
 0x104   :  { %1236 = vmatprep.subr.mxu1 %v361_v54  ;;  %1275 = vmatprep.subr.mxu0 %v425_v55  ;;  %v352_v63 = vld [vmem:[%s3953_s1 + $0xa10] sm:$0xff]  ;;  %v541_v11 = vld [vmem:[%s3953_s1 + $0xff8] sm:$0xff] }
 0x105   :  { %1237 = vmatpush2.msra.mxu1 %v360_v56  ;;  %1276 = vmatpush1.msra.mxu0 %v424_v57  ;;  %v416_v0 = vld [vmem:[%s3953_s1 + $0xc10] sm:$0xff]  ;;  %v605_v1 = vld [vmem:[%s3953_s1 + $0x11f8] sm:$0xff] }
 0x106   :  { %1238 = vmatprep.subr.mxu1 %v357_v58  ;;  %1277 = vmatprep.subr.mxu0 %v421_v8  ;;  %v540_v3 = vld [vmem:[%s3953_s1 + $0xff0] sm:$0xff]  ;;  %v537_v4 = vld [vmem:[%s3953_s1 + $0xfd8] sm:$0xff] }
 0x107   :  { %1239 = vmatpush2.msra.mxu1 %v356_v59  ;;  %1278 = vmatpush1.msra.mxu0 %v420_v60  ;;  %v604_v2 = vld [vmem:[%s3953_s1 + $0x11f0] sm:$0xff]  ;;  %v601_v5 = vld [vmem:[%s3953_s1 + $0x11d8] sm:$0xff] }
 0x108   :  { %1240 = vmatprep.subr.mxu1 %v353_v62  ;;  %1279 = vmatprep.subr.mxu0 %v417_v61  ;;  %v600_v6 = vld [vmem:[%s3953_s1 + $0x11d0] sm:$0xff]  ;;  %v597_v7 = vld [vmem:[%s3953_s1 + $0x11b8] sm:$0xff] }
 0x109   :  { %1241 = vmatpush2.msra.mxu1 %v352_v63  ;;  %1242 = vmatprep.mubr.f32.mxu1 %v2717_v25  ;;  %v536_v25 = vld [vmem:[%s3953_s1 + $0xfd0] sm:$0xff]  ;;  %v529_v12 = vld [vmem:[%s3953_s1 + $0xf98] sm:$0xff] }
 0x10a   :  { %1280 = vmatpush1.msra.mxu0 %v416_v0  ;;  %1243 = vmatmul.mubr.f32.vlgmr.msra.gmra.mxu1 %v2686_v16  ;;  %v533_v16 = vld [vmem:[%s3953_s1 + $0xfb8] sm:$0xff]  ;;  %v532_v9 = vld [vmem:[%s3953_s1 + $0xfb0] sm:$0xff] }
 0x10b   :  { %1281 = vmatprep.subr.mxu0 %v541_v11  ;;  %1320 = vmatprep.subr.mxu1 %v605_v1  ;;  %v596_v10 = vld [vmem:[%s3953_s1 + $0x11b0] sm:$0xff]  ;;  %v593_v13 = vld [vmem:[%s3953_s1 + $0x1198] sm:$0xff] }
 0x10c   :  { %1282 = vmatpush2.msra.mxu0 %v540_v3  ;;  %1321 = vmatpush1.msra.mxu1 %v604_v2  ;;  %v528_v14 = vld [vmem:[%s3953_s1 + $0xf90] sm:$0xff]  ;;  %v525_v17 = vld [vmem:[%s3953_s1 + $0xf78] sm:$0xff] }
 0x10d   :  { %1283 = vmatprep.subr.mxu0 %v537_v4  ;;  %1322 = vmatprep.subr.mxu1 %v601_v5  ;;  %v592_v15 = vld [vmem:[%s3953_s1 + $0x1190] sm:$0xff]  ;;  %v589_v18 = vld [vmem:[%s3953_s1 + $0x1178] sm:$0xff] }
 0x10e   :  { %1284 = vmatpush2.msra.mxu0 %v536_v25  ;;  %1323 = vmatpush1.msra.mxu1 %v600_v6  ;;  %v524_v19 = vld [vmem:[%s3953_s1 + $0xf70] sm:$0xff]  ;;  %v521_v22 = vld [vmem:[%s3953_s1 + $0xf58] sm:$0xff] }
 0x10f   :  { %1285 = vmatprep.subr.mxu0 %v533_v16  ;;  %1324 = vmatprep.subr.mxu1 %v597_v7  ;;  %v588_v20 = vld [vmem:[%s3953_s1 + $0x1170] sm:$0xff]  ;;  %v585_v23 = vld [vmem:[%s3953_s1 + $0x1158] sm:$0xff]  ;;  %v1428_v16 = vld [vmem:[%s3955_s3 + $0x68] sm:$0xff] }
 0x110   :  { %1286 = vmatpush2.msra.mxu0 %v532_v9  ;;  %1325 = vmatpush1.msra.mxu1 %v596_v10  ;;  %v520_v24 = vld [vmem:[%s3953_s1 + $0xf50] sm:$0xff]  ;;  %v517_v26 = vld [vmem:[%s3953_s1 + $0xf38] sm:$0xff]  ;;  %v1443_v7 = vld [vmem:[%s3955_s3 + $0xe0] sm:$0xff] }
 0x111   :  { %1287 = vmatprep.subr.mxu0 %v529_v12  ;;  %1326 = vmatprep.subr.mxu1 %v593_v13  ;;  %v584_v52 = vld [vmem:[%s3953_s1 + $0x1150] sm:$0xff]  ;;  %v581_v27 = vld [vmem:[%s3953_s1 + $0x1138] sm:$0xff]  ;;  %v1427_v9 = vld [vmem:[%s3955_s3 + $0x60] sm:$0xff] }
 0x112   :  { %1288 = vmatpush2.msra.mxu0 %v528_v14  ;;  %1327 = vmatpush1.msra.mxu1 %v592_v15  ;;  %v516_v29 = vld [vmem:[%s3953_s1 + $0xf30] sm:$0xff]  ;;  %v513_v31 = vld [vmem:[%s3953_s1 + $0xf18] sm:$0xff]  ;;  %v1440_v15 = vld [vmem:[%s3955_s3 + $0xc8] sm:$0xff] }
 0x113   :  { %1289 = vmatprep.subr.mxu0 %v525_v17  ;;  %1328 = vmatprep.subr.mxu1 %v589_v18  ;;  %v580_v30 = vld [vmem:[%s3953_s1 + $0x1130] sm:$0xff]  ;;  %v577_v32 = vld [vmem:[%s3953_s1 + $0x1118] sm:$0xff]  ;;  %v1424_v17 = vld [vmem:[%s3955_s3 + $0x48] sm:$0xff] }
 0x114   :  { %1290 = vmatpush2.msra.mxu0 %v524_v19  ;;  %1329 = vmatpush1.msra.mxu1 %v588_v20  ;;  %v512_v33 = vld [vmem:[%s3953_s1 + $0xf10] sm:$0xff]  ;;  %v509_v35 = vld [vmem:[%s3953_s1 + $0xef8] sm:$0xff]  ;;  %v1439_v18 = vld [vmem:[%s3955_s3 + $0xc0] sm:$0xff] }
 0x115   :  { %1291 = vmatprep.subr.mxu0 %v521_v22  ;;  %1330 = vmatprep.subr.mxu1 %v585_v23  ;;  %v576_v34 = vld [vmem:[%s3953_s1 + $0x1110] sm:$0xff]  ;;  %v573_v36 = vld [vmem:[%s3953_s1 + $0x10f8] sm:$0xff]  ;;  %v1423_v19 = vld [vmem:[%s3955_s3 + $0x40] sm:$0xff] }
 0x116   :  { %1292 = vmatpush2.msra.mxu0 %v520_v24  ;;  %1331 = vmatpush1.msra.mxu1 %v584_v52  ;;  %v508_v37 = vld [vmem:[%s3953_s1 + $0xef0] sm:$0xff]  ;;  %v505_v39 = vld [vmem:[%s3953_s1 + $0xed8] sm:$0xff]  ;;  %v1436_v52 = vld [vmem:[%s3955_s3 + $0xa8] sm:$0xff] }
 0x117   :  { %1293 = vmatprep.subr.mxu0 %v517_v26  ;;  %1332 = vmatprep.subr.mxu1 %v581_v27  ;;  %v572_v38 = vld [vmem:[%s3953_s1 + $0x10f0] sm:$0xff]  ;;  %v569_v40 = vld [vmem:[%s3953_s1 + $0x10d8] sm:$0xff]  ;;  %v1420_v26 = vld [vmem:[%s3955_s3 + $0x28] sm:$0xff] }
 0x118   :  { %1294 = vmatpush2.msra.mxu0 %v516_v29  ;;  %1333 = vmatpush1.msra.mxu1 %v580_v30  ;;  %v504_v43 = vld [vmem:[%s3953_s1 + $0xed0] sm:$0xff]  ;;  %v501_v45 = vld [vmem:[%s3953_s1 + $0xeb8] sm:$0xff]  ;;  %v1435_v27 = vld [vmem:[%s3955_s3 + $0xa0] sm:$0xff] }
 0x119   :  { %1295 = vmatprep.subr.mxu0 %v513_v31  ;;  %1334 = vmatprep.subr.mxu1 %v577_v32  ;;  %v568_v44 = vld [vmem:[%s3953_s1 + $0x10d0] sm:$0xff]  ;;  %v565_v46 = vld [vmem:[%s3953_s1 + $0x10b8] sm:$0xff]  ;;  %v1419_v29 = vld [vmem:[%s3955_s3 + $0x20] sm:$0xff] }
 0x11a   :  { %1296 = vmatpush2.msra.mxu0 %v512_v33  ;;  %1335 = vmatpush1.msra.mxu1 %v576_v34  ;;  %v500_v47 = vld [vmem:[%s3953_s1 + $0xeb0] sm:$0xff]  ;;  %v497_v49 = vld [vmem:[%s3953_s1 + $0xe98] sm:$0xff]  ;;  %v1432_v34 = vld [vmem:[%s3955_s3 + $0x88] sm:$0xff] }
 0x11b   :  { %1297 = vmatprep.subr.mxu0 %v509_v35  ;;  %1336 = vmatprep.subr.mxu1 %v573_v36  ;;  %v564_v48 = vld [vmem:[%s3953_s1 + $0x10b0] sm:$0xff]  ;;  %v561_v50 = vld [vmem:[%s3953_s1 + $0x1098] sm:$0xff]  ;;  %v1416_v35 = vld [vmem:[%s3955_s3 + $0x8] sm:$0xff] }
 0x11c   :  { %1298 = vmatpush2.msra.mxu0 %v508_v37  ;;  %1337 = vmatpush1.msra.mxu1 %v572_v38  ;;  %v496_v51 = vld [vmem:[%s3953_s1 + $0xe90] sm:$0xff]  ;;  %v493_v54 = vld [vmem:[%s3953_s1 + $0xe78] sm:$0xff]  ;;  %v1431_v36 = vld [vmem:[%s3955_s3 + $0x80] sm:$0xff]  ;;  %v610_v38 = vsub.s32 0, %v2224_v41 }
 0x11d   :  { %1299 = vmatprep.subr.mxu0 %v505_v39  ;;  %1338 = vmatprep.subr.mxu1 %v569_v40  ;;  %v560_v53 = vld [vmem:[%s3953_s1 + $0x1090] sm:$0xff]  ;;  %v557_v55 = vld [vmem:[%s3953_s1 + $0x1078] sm:$0xff]  ;;  %v1415_v37 = vld [vmem:[%s3955_s3] sm:$0xff]  ;;  %v614_v40 = vsub.s32 1, %v2224_v41 }
 0x11e   :  { %1300 = vmatpush2.msra.mxu0 %v504_v43  ;;  %1339 = vmatpush1.msra.mxu1 %v568_v44  ;;  %v492_v56 = vld [vmem:[%s3953_s1 + $0xe70] sm:$0xff]  ;;  %v489_v58 = vld [vmem:[%s3953_s1 + $0xe58] sm:$0xff]  ;;  %v3811_v39 = vld [vmem:[%s3954_s2] sm:$0xf]  ;;  %v747_v43 = vpop.f32.mrf.mxu0 }
 0x11f   :  { %1301 = vmatprep.subr.mxu0 %v501_v45  ;;  %1340 = vmatprep.subr.mxu1 %v565_v46  ;;  %v556_v57 = vld [vmem:[%s3953_s1 + $0x1070] sm:$0xff]  ;;  %v553_v8 = vld [vmem:[%s3953_s1 + $0x1058] sm:$0xff]  ;;  %v611_v44 = vrot.slane %v3811_v39, %v610_v38  ;;  %v615_v45 = vrot.slane %v3811_v39, %v614_v40  ;;  %v818_v46 = vpop.f32.mrf.mxu1 }
 0x120   :  { %1302 = vmatpush2.msra.mxu0 %v500_v47  ;;  %1341 = vmatpush1.msra.mxu1 %v564_v48  ;;  %v488_v59 = vld [vmem:[%s3953_s1 + $0xe50] sm:$0xff]  ;;  %v485_v62 = vld [vmem:[%s3953_s1 + $0xe38] sm:$0xff]  ;;  %v749_v47 = vpop.f32.mrf.mxu0 }
 0x121   :  { %1303 = vmatprep.subr.mxu0 %v497_v49  ;;  %1342 = vmatprep.subr.mxu1 %v561_v50  ;;  %v552_v60 = vld [vmem:[%s3953_s1 + $0x1050] sm:$0xff]  ;;  %v549_v61 = vld [vmem:[%s3953_s1 + $0x1038] sm:$0xff]  ;;  %v748_v48 = vadd.f32 %v747_v43, %v611_v44  ;;  %v750_v50 = vadd.f32 %v749_v47, %v615_v45 }
 0x122   :  { %1304 = vmatpush2.msra.mxu0 %v496_v51  ;;  %1343 = vmatpush1.msra.mxu1 %v560_v53  ;;  %v484_v63 = vld [vmem:[%s3953_s1 + $0xe30] sm:$0xff]  ;;  %v481_v11 = vld [vmem:[%s3953_s1 + $0xe18] sm:$0xff]  ;;  %v820_v51 = vpop.f32.mrf.mxu1 }
 0x123   :  { %1305 = vmatprep.subr.mxu0 %v493_v54  ;;  %1344 = vmatprep.subr.mxu1 %v557_v55  ;;  %v548_v0 = vld [vmem:[%s3953_s1 + $0x1030] sm:$0xff]  ;;  %v545_v1 = vld [vmem:[%s3953_s1 + $0x1018] sm:$0xff]  ;;  %v819_v53 = vadd.f32 %v818_v46, %v748_v48 }
 0x124   :  { %1306 = vmatpush2.msra.mxu0 %v492_v56  ;;  %1345 = vmatpush1.msra.mxu1 %v556_v57  ;;  %v480_v3 = vld [vmem:[%s3953_s1 + $0xe10] sm:$0xff]  ;;  %v1446_v4 = vld [vmem:[%s3955_s3 + $0xf8] sm:$0xff]  ;;  %v821_v56 = vadd.f32 %v820_v51, %v750_v50 }
 0x125   :  { %1307 = vmatprep.subr.mxu0 %v489_v58  ;;  %1346 = vmatprep.subr.mxu1 %v553_v8  ;;  %v544_v2 = vld [vmem:[%s3953_s1 + $0x1010] sm:$0xff]  ;;  %v1430_v5 = vld [vmem:[%s3955_s3 + $0x78] sm:$0xff] }
 0x126   :  { %1308 = vmatpush2.msra.mxu0 %v488_v59  ;;  %1347 = vmatpush1.msra.mxu1 %v552_v60  ;;  %v1851_v25 = vld.sshfl [vmem:[%s3952_s0 + $0x10] sm:$0x3 pattern:$0x76325410]  ;;  %v1442_v10 = vld [vmem:[%s3955_s3 + $0xd8] sm:$0xff] }
 0x127   :  { %1309 = vmatprep.subr.mxu0 %v485_v62  ;;  %1348 = vmatprep.subr.mxu1 %v549_v61  ;;  %v1429_v6 = vld [vmem:[%s3955_s3 + $0x70] sm:$0xff]  ;;  %v1426_v12 = vld [vmem:[%s3955_s3 + $0x58] sm:$0xff] }
 0x128   :  { %1310 = vmatpush2.msra.mxu0 %v484_v63  ;;  %1349 = vmatpush1.msra.mxu1 %v548_v0  ;;  %v1441_v13 = vld [vmem:[%s3955_s3 + $0xd0] sm:$0xff]  ;;  %v1438_v20 = vld [vmem:[%s3955_s3 + $0xb8] sm:$0xff] }
 0x129   :  { %1311 = vmatprep.subr.mxu0 %v481_v11  ;;  %1350 = vmatprep.subr.mxu1 %v545_v1  ;;  %v1425_v14 = vld [vmem:[%s3955_s3 + $0x50] sm:$0xff]  ;;  %v1422_v22 = vld [vmem:[%s3955_s3 + $0x38] sm:$0xff] }
 0x12a   :  { %1312 = vmatpush2.msra.mxu0 %v480_v3  ;;  %1313 = vmatprep.mubr.f32.mxu0 %v2727_v28  ;;  %v1445_v28 = vld [vmem:[%s3955_s3 + $0xf0] sm:$0xff]  ;;  %v1434_v30 = vld [vmem:[%s3955_s3 + $0x98] sm:$0xff] }
 0x12b   :  { %1351 = vmatpush1.msra.mxu1 %v544_v2  ;;  %1384 = vmatprep.mubr.f32.mxu1 %v1875_v42  ;;  %v1437_v23 = vld [vmem:[%s3955_s3 + $0xb0] sm:$0xff]  ;;  %v1418_v31 = vld [vmem:[%s3955_s3 + $0x18] sm:$0xff] }
 0x12c   :  { %1314 = vmatmul.mubr.f32.vlgmr.msra.gmra.mxu0 %v2701_v21  ;;  %1385 = vmatmul.mubr.f32.vlgmr.msra.gmra.mxu1 %v1851_v25  ;;  %v1444_v21 = vld [vmem:[%s3955_s3 + $0xe8] sm:$0xff]  ;;  %v1421_v24 = vld [vmem:[%s3955_s3 + $0x30] sm:$0xff]  ;;  %v1462_v3 = vld [vmem:[%s3955_s3 + $0x178] sm:$0xff] }
 0x12d   :  { %1747 = vmatprep.subr.mxu0 %v1446_v4  ;;  %1546 = vmatprep.subr.mxu1 %v1875_v42  ;;  %v1433_v32 = vld [vmem:[%s3955_s3 + $0x90] sm:$0xff]  ;;  %v1460_v4 = vld [vmem:[%s3955_s3 + $0x168] sm:$0xff]  ;;  %v1458_v25 = vld [vmem:[%s3955_s3 + $0x158] sm:$0xff] }
 0x12e   :  { %1748 = vmatpush3.msra.mxu0 %v1430_v5  ;;  %v1417_v33 = vld [vmem:[%s3955_s3 + $0x10] sm:$0xff]  ;;  %1547 = vmatpush1.msra.mxu1 %v1462_v3  ;;  %v1459_v5 = vld [vmem:[%s3955_s3 + $0x160] sm:$0xff]  ;;  %v1627_v3 = vld [vmem:[%s3957_s5 + $0x28] sm:$0xff] }
 0x12f   :  { %1749 = vmatprep.subr.mxu0 %v1445_v28  ;;  %1548 = vmatprep.subr.mxu1 %v1875_v42  ;;  %v1461_v2 = vld [vmem:[%s3955_s3 + $0x170] sm:$0xff] }
 0x130   :  { %1750 = vmatpush3.msra.mxu0 %v1429_v6  ;;  %1549 = vmatpush1.msra.mxu1 %v1461_v2  ;;  %v1457_v6 = vld [vmem:[%s3955_s3 + $0x150] sm:$0xff]  ;;  %v1626_v2 = vld [vmem:[%s3957_s5 + $0x20] sm:$0xff] }
 0x131   :  { %1751 = vmatprep.subr.mxu0 %v1444_v21  ;;  %1550 = vmatprep.subr.mxu1 %v1875_v42 }
 0x132   :  { %1752 = vmatpush3.msra.mxu0 %v1428_v16  ;;  %1551 = vmatpush1.msra.mxu1 %v1460_v4  ;;  %v1625_v4 = vld [vmem:[%s3957_s5 + $0x18] sm:$0xff] }
 0x133   :  { %1753 = vmatprep.subr.mxu0 %v1443_v7  ;;  %1552 = vmatprep.subr.mxu1 %v1875_v42 }
 0x134   :  { %1754 = vmatpush3.msra.mxu0 %v1427_v9  ;;  %1553 = vmatpush1.msra.mxu1 %v1459_v5  ;;  %v1456_v9 = vld [vmem:[%s3955_s3 + $0x148] sm:$0xff]  ;;  %v1624_v5 = vld [vmem:[%s3957_s5 + $0x10] sm:$0xff] }
 0x135   :  { %1755 = vmatprep.subr.mxu0 %v1442_v10  ;;  %1554 = vmatprep.subr.mxu1 %v1875_v42  ;;  %v1455_v10 = vld [vmem:[%s3955_s3 + $0x140] sm:$0xff] }
 0x136   :  { %1756 = vmatpush3.msra.mxu0 %v1426_v12  ;;  %1555 = vmatpush1.msra.mxu1 %v1458_v25  ;;  %v1454_v12 = vld [vmem:[%s3955_s3 + $0x138] sm:$0xff]  ;;  %v1623_v25 = vld [vmem:[%s3957_s5 + $0x8] sm:$0xff] }
 0x137   :  { %1757 = vmatprep.subr.mxu0 %v1441_v13  ;;  %1556 = vmatprep.subr.mxu1 %v1875_v42  ;;  %v1453_v13 = vld [vmem:[%s3955_s3 + $0x130] sm:$0xff] }
 0x138   :  { %1758 = vmatpush3.msra.mxu0 %v1425_v14  ;;  %1557 = vmatpush1.msra.mxu1 %v1457_v6  ;;  %v1452_v14 = vld [vmem:[%s3955_s3 + $0x128] sm:$0xff] }
 0x139   :  { %1759 = vmatprep.subr.mxu0 %v1440_v15  ;;  %1558 = vmatprep.subr.mxu1 %v1875_v42  ;;  %v1451_v15 = vld [vmem:[%s3955_s3 + $0x120] sm:$0xff] }
 0x13a   :  { %1760 = vmatpush3.msra.mxu0 %v1424_v17  ;;  %1559 = vmatpush1.msra.mxu1 %v1456_v9  ;;  %v1450_v17 = vld [vmem:[%s3955_s3 + $0x118] sm:$0xff] }
 0x13b   :  { %1761 = vmatprep.subr.mxu0 %v1439_v18  ;;  %1560 = vmatprep.subr.mxu1 %v1875_v42  ;;  %v1449_v18 = vld [vmem:[%s3955_s3 + $0x110] sm:$0xff] }
 0x13c   :  { %1762 = vmatpush3.msra.mxu0 %v1423_v19  ;;  %1561 = vmatpush1.msra.mxu1 %v1455_v10  ;;  %v1448_v19 = vld [vmem:[%s3955_s3 + $0x108] sm:$0xff] }
 0x13d   :  { %1763 = vmatprep.subr.mxu0 %v1438_v20  ;;  %1562 = vmatprep.subr.mxu1 %v1875_v42 }
 0x13e   :  { %1764 = vmatpush3.msra.mxu0 %v1422_v22  ;;  %1563 = vmatpush1.msra.mxu1 %v1454_v12 }
 0x13f   :  { %1765 = vmatprep.subr.mxu0 %v1437_v23  ;;  %1564 = vmatprep.subr.mxu1 %v1875_v42  ;;  %v1447_v23 = vld [vmem:[%s3955_s3 + $0x100] sm:$0xff] }
 0x140   :  { %1766 = vmatpush3.msra.mxu0 %v1421_v24  ;;  %1565 = vmatpush1.msra.mxu1 %v1453_v13  ;;  %v1464_v24 = vld [vmem:[%s3955_s3 + $0x188] sm:$0xff] }
 0x141   :  { %1767 = vmatprep.subr.mxu0 %v1436_v52  ;;  %1566 = vmatprep.subr.mxu1 %v1875_v42  ;;  %v1463_v52 = vld [vmem:[%s3955_s3 + $0x180] sm:$0xff] }
 0x142   :  { %1768 = vmatpush3.msra.mxu0 %v1420_v26  ;;  %1567 = vmatpush1.msra.mxu1 %v1452_v14  ;;  %v618_v26 = vsub.s32 2, %v2224_v41 }
 0x143   :  { %1769 = vmatprep.subr.mxu0 %v1435_v27  ;;  %1568 = vmatprep.subr.mxu1 %v1875_v42 }
 0x144   :  { %1770 = vmatpush3.msra.mxu0 %v1419_v29  ;;  %1569 = vmatpush1.msra.mxu1 %v1451_v15  ;;  %v622_v29 = vsub.s32 3, %v2224_v41 }
 0x145   :  { %1771 = vmatprep.subr.mxu0 %v1434_v30  ;;  %v889_v49 = vpop.f32.mrf.mxu0  ;;  %1570 = vmatprep.subr.mxu1 %v1875_v42  ;;  %v619_v30 = vrot.slane %v3811_v39, %v618_v26 }
 0x146   :  { %1772 = vmatpush3.msra.mxu0 %v1418_v31  ;;  %v890_v57 = vadd.f32 %v889_v49, %v819_v53  ;;  %1571 = vmatpush1.msra.mxu1 %v1450_v17 }
 0x147   :  { %1773 = vmatprep.subr.mxu0 %v1433_v32  ;;  %v960_v54 = vpop.f32.mrf.mxu1  ;;  %v891_v55 = vpop.f32.mrf.mxu0  ;;  %1572 = vmatprep.subr.mxu1 %v1875_v42 }
 0x148   :  { %1774 = vmatpush3.msra.mxu0 %v1417_v33  ;;  %v892_v58 = vadd.f32 %v891_v55, %v821_v56  ;;  %v961_v59 = vadd.f32 %v960_v54, %v890_v57  ;;  %1573 = vmatpush1.msra.mxu1 %v1449_v18  ;;  %v623_v33 = vrot.slane %v3811_v39, %v622_v29 }
 0x149   :  { %1775 = vmatprep.subr.mxu0 %v1432_v34  ;;  %v962_v8 = vpop.f32.mrf.mxu1  ;;  %1574 = vmatprep.subr.mxu1 %v1875_v42 }
 0x14a   :  { %1776 = vmatpush3.msra.mxu0 %v1416_v35  ;;  %v963_v62 = vadd.f32 %v962_v8, %v892_v58  ;;  %1575 = vmatpush1.msra.mxu1 %v1448_v19 }
 0x14b   :  { %1777 = vmatprep.subr.mxu0 %v1431_v36  ;;  %1576 = vmatprep.subr.mxu1 %v1875_v42 }
 0x14c   :  { %1778 = vmatpush3.msra.mxu0 %v1415_v37  ;;  %1577 = vmatpush1.msra.mxu1 %v1447_v23 }
 0x14d   :  { %1796 = vmatprep.subr.mxu0 %v1875_v42  ;;  %1606 = vmatprep.subr.mxu1 %v1875_v42 }
 0x14e   :  { %1607 = vmatpush2.msra.mxu1 %v1464_v24 }
 0x14f   :  { %1608 = vmatprep.subr.mxu1 %v1875_v42 }
 0x150   :  { %1609 = vmatpush2.msra.mxu1 %v1463_v52 }
 0x167   :  { %v1031_v60 = vpop.f32.mrf.mxu0 }
 0x168   :  { %v1032_v61 = vadd.f32 %v1031_v60, %v961_v59  ;;  %v1634_v60 = vld [vmem:[%s3957_s5 + $0x60] sm:$0xf] }
 0x169   :  { %v1033_v63 = vpop.f32.mrf.mxu0 }
 0x16a   :  { %v1737_v0 = vmul.f32 -1.442695, %v1032_v61  ;;  %v1034_v11 = vadd.f32 %v1033_v63, %v963_v62  ;;  %v1633_v62 = vld [vmem:[%s3957_s5 + $0x58] sm:$0xff]  ;;  %v1632_v61 = vld [vmem:[%s3957_s5 + $0x50] sm:$0xff]  ;;  %v1631_v63 = vld [vmem:[%s3957_s5 + $0x48] sm:$0xff] }
 0x16c   :  { %1831 = vpow2.f32 %v1737_v0  ;;  %v1738_v1 = vmul.f32 -1.442695, %v1034_v11  ;;  %v1630_v0 = vld [vmem:[%s3957_s5 + $0x40] sm:$0xff]  ;;  %v1629_v11 = vld [vmem:[%s3957_s5 + $0x38] sm:$0xff] }
 0x16e   :  { %1833 = vpow2.f32 %v1738_v1  ;;  %v1628_v1 = vld [vmem:[%s3957_s5 + $0x30] sm:$0xff] }
 0x179   :  { %v1832_v28 = vpop.eup %1831 }
 0x17a   :  { %v1403_v16 = vadd.f32 1.0, %v1832_v28  ;;  %v1622_v28 = vld [vmem:[%s3957_s5] sm:$0xff] }
 0x17b   :  { %v1834_v21 = vpop.eup %1833 }
 0x17c   :  { %v1404_v7 = vadd.f32 1.0, %v1834_v21 }
 0x17e   :  { %1835 = vrcp.f32 %v1404_v7  ;;  %v1741_v7 = vld [vmem:[%s3956_s4] ss:$0 sm:$0xff]  ;;  %s1852_s4 = scalar_lea.vmem %s1729_s13, 32 }
 0x17f   :  { %1837 = vrcp.f32 %v1403_v16  ;;  %p1853_p0 = scmp.ne.s32.totalorder %s1729_s13, %s1852_s4  ;;  %p1858_p2 = scmp.lt.s32.totalorder %s1852_s4, %s1852_s4 }
 0x181   :  { %p1859_p3 = por %p1858_p2, %p1857_p1 }
 0x183   :  { %p1860_p4 = pnand %p1859_p3, %p1853_p0 }
 0x189   :  { %v1102_v27 = vpop.f32.mrf.mxu1 }
 0x18a   :  { %v1103_v35 = vadd.f32 %v1102_v27, %v619_v30 }
 0x18b   :  { %v1836_v20 = vpop.eup %1835  ;;  %v1104_v31 = vpop.f32.mrf.mxu1 }
 0x18c   :  { %v1838_v22 = vpop.eup %1837  ;;  %1540 = vmatprep.mubr.f32.mxu0 %v1836_v20  ;;  %v1105_v37 = vadd.f32 %v1104_v31, %v623_v33 }
 0x18d   :  { %1541 = vmatmul.mubr.f32.vlgmr.msra.gmra.mxu0 %v1838_v22 }
 0x18e   :  { %1797 = vmatpush3.msk.msra.mxu0 %vm1646_vm1, %v1634_v60  ;;  %1822 = vmatprep.mubr.msk.f32.mxu0 %vm1876_vm2, %v1875_v42 }
 0x18f   :  { %1798 = vmatprep.subr.mxu0 %v1875_v42 }
 0x190   :  { %1799 = vmatpush3.msra.mxu0 %v1633_v62 }
 0x191   :  { %1800 = vmatprep.subr.mxu0 %v1875_v42 }
 0x192   :  { %1801 = vmatpush3.msra.mxu0 %v1632_v61 }
 0x193   :  { %1802 = vmatprep.subr.mxu0 %v1875_v42 }
 0x194   :  { %1803 = vmatpush3.msra.mxu0 %v1631_v63 }
 0x195   :  { %1804 = vmatprep.subr.mxu0 %v1875_v42 }
 0x196   :  { %1805 = vmatpush3.msra.mxu0 %v1630_v0 }
 0x197   :  { %1806 = vmatprep.subr.mxu0 %v1875_v42 }
 0x198   :  { %1807 = vmatpush3.msra.mxu0 %v1629_v11 }
 0x199   :  { %1808 = vmatprep.subr.mxu0 %v1875_v42 }
 0x19a   :  { %1809 = vmatpush3.msra.mxu0 %v1628_v1 }
 0x19b   :  { %1810 = vmatprep.subr.mxu0 %v1875_v42 }
 0x19c   :  { %1811 = vmatpush3.msra.mxu0 %v1627_v3 }
 0x19d   :  { %1812 = vmatprep.subr.mxu0 %v1875_v42 }
 0x19e   :  { %1813 = vmatpush3.msra.mxu0 %v1626_v2 }
 0x19f   :  { %1814 = vmatprep.subr.mxu0 %v1875_v42 }
 0x1a0   :  { %1815 = vmatpush3.msra.mxu0 %v1625_v4 }
 0x1a1   :  { %1816 = vmatprep.subr.mxu0 %v1875_v42 }
 0x1a2   :  { %1817 = vmatpush3.msra.mxu0 %v1624_v5 }
 0x1a3   :  { %1818 = vmatprep.subr.mxu0 %v1875_v42 }
 0x1a4   :  { %1819 = vmatpush3.msra.mxu0 %v1623_v25 }
 0x1a5   :  { %1820 = vmatprep.subr.mxu0 %v1875_v42  ;;  %v1744_v42 = vld [vmem:[%s3958_s6] ss:$0 sm:$0xff] }
 0x1a6   :  { %1821 = vmatpush3.msra.mxu0 %v1622_v28 }
 0x1a9   :  { %v1173_v32 = vpop.f32.mrf.mxu0 }
 0x1aa   :  { %v1174_v38 = vadd.f32 %v1173_v32, %v1103_v35 }
 0x1ab   :  { %v1175_v36 = vpop.f32.mrf.mxu0 }
 0x1ac   :  { %v1176_v43 = vadd.f32 %v1175_v36, %v1105_v37 }
 0x1ca   :  { %v1244_v34 = vpop.f32.mrf.mxu1 }
 0x1cb   :  { %v1245_v44 = vadd.f32 %v1244_v34, %v1174_v38 }
 0x1cc   :  { %v1246_v40 = vpop.f32.mrf.mxu1 }
 0x1cd   :  { %v1247_v47 = vadd.f32 %v1246_v40, %v1176_v43 }
 0x1ec   :  { %v1315_v45 = vpop.f32.mrf.mxu0  ;;  %v1386_v46 = vpop.f32.mrf.mxu1 }
 0x1ed   :  { %v1316_v48 = vadd.f32 %v1315_v45, %v1245_v44 }
 0x1ee   :  { %v1317_v49 = vpop.f32.mrf.mxu0  ;;  %v1388_v51 = vpop.f32.mrf.mxu1 }
 0x1ef   :  { %v1387_v41 = vadd.f32 %v1386_v46, %v1316_v48  ;;  %v1318_v50 = vadd.f32 %v1317_v49, %v1247_v47 }
 0x1f1   :  { %v1739_v53 = vmul.f32 -1.442695, %v1387_v41  ;;  %v1389_v54 = vadd.f32 %v1388_v51, %v1318_v50 }
 0x1f3   :  { %1839 = vpow2.f32 %v1739_v53  ;;  %v1740_v39 = vmul.f32 -1.442695, %v1389_v54 }
 0x1f5   :  { %1841 = vpow2.f32 %v1740_v39 }
 0x200   :  { %v1840_v55 = vpop.eup %1839 }
 0x201   :  { %v1405_v57 = vadd.f32 1.0, %v1840_v55 }
 0x202   :  { %v1842_v56 = vpop.eup %1841 }
 0x203   :  { %v1406_v58 = vadd.f32 1.0, %v1842_v56 }
 0x205   :  { %1843 = vrcp.f32 %v1406_v58 }
 0x206   :  { %1845 = vrcp.f32 %v1405_v57 }
 0x212   :  { %v1844_v8 = vpop.eup %1843 }
 0x213   :  { %v1846_v59 = vpop.eup %1845  ;;  %1742 = vmatprep.mubr.msk.f32.mxu1 %vm1472_vm0, %v1844_v8 }
 0x214   :  { %1611 = vmatmul.mubr.f32.vlgmr.msra.gmra.mxu1 %v1846_v59 }
 0x24d   :  { %v1779_v6 = vpop.f32.mrf.mxu0 }
 0x24f   :  { %v1780_v21 = vpop.f32.mrf.mxu0 }
 0x250   :  { %v1781_v16 = vadd.f32 %v1780_v21, %v1779_v6 }
 0x252   :  { %v1543_v9 = vadd.f32 %v1781_v16, %v1741_v7 }
 0x2d4   :  { %v1612_v10 = vpop.f32.mrf.mxu1 }
 0x2d5   :  { %v1613_v12 = vadd.f32 %v1612_v10, %v1543_v9 }
 0x2d6   :  { %v1614_v13 = vpop.f32.mrf.mxu1 }
 0x2d7   :  { %v1743_v14 = vmul.f32 -1.442695, %v1613_v12 }
 0x2d9   :  { %1847 = vpow2.f32 %v1743_v14 }
 0x2e6   :  { %v1848_v15 = vpop.eup %1847 }
 0x2e7   :  { %v1619_v17 = vadd.f32 1.0, %v1848_v15 }
 0x2e9   :  { %1849 = vrcp.f32 %v1619_v17 }
 0x2f6   :  { %v1850_v18 = vpop.eup %1849 }
 0x2f7   :  { %1823 = vmatmul.mubr.msk.f32.vlgmr.msra.gmra.mxu0 %vm1642_vm3, %v1850_v18 }
 0x3b7   :  { %v1716_v19 = vpop.f32.mrf.mxu0 }
 0x3b8   :  { %v1717_v20 = vadd.f32 %v1744_v42, %v1716_v19 }
 0x3b9   :  { %v1824_v22 = vpop.f32.mrf.mxu0 }
 0x3ba   :  { %1721 = vst.msk [vmem:[#allocation2] sm:$0x3] %vm1720_vm4, %v1717_v20 }
 0x3bb   :  { %1863 = shalt.err (!%p1860_p4)
}
 0x3bc   :  { %1731 = dma.vmem_to_hbm [thread:$0]  %s1729_s13, 32, %s3959_s7, [#allocation3]  }
 0x3bd   :  { %1872 = dma.done.wait [#allocation3], 32  }
 0x3be   :  { %1873 = vsyncadd [#allocation3], 4294967264 }
 0x3bf   :  { %1735 = vsyncpa [#allocation3], 1 }

// kernel: custom_net_forward.2
= control target key start
LH: loop header
LB: loop body
LE: loop exit
PB: predicated region body
PF: predicated region fallthrough
CT: control target
= control target key end

     0   :  { %vm218_vm0 = vcmask 1043456   ;;  %vm196_vm1 = vcmask 1014784   ;;  %vm725_vm2 = vcmask 523264   ;;  %vm965_vm3 = vcmask 457728   ;;  %s5968_s1 = inlined_call_operand.vmem [shape: f32[252,448], index: 1, kind: input, shape index: {}]   ;;  %s5969_s0 = inlined_call_operand.vmem [shape: f32[1,56,252], index: 0, kind: input, shape index: {}]   ;;  %s5970_s3 = inlined_call_operand.vmem [shape: f32[448,256], index: 3, kind: input, shape index: {}]   ;;  %s5971_s2 = inlined_call_operand.vmem [shape: f32[1,448], index: 2, kind: input, shape index: {}]   ;;  %s5972_s4 = inlined_call_operand.vmem [shape: f32[3,32,56], index: 4, kind: input, shape index: {}]   ;;  %s5973_s5 = inlined_call_operand.vmem [shape: f32[3,256,416], index: 5, kind: input, shape index: {}]   ;;  %s5974_s8 = inlined_call_operand.vmem [shape: f32[416,192], index: 8, kind: input, shape index: {}]   ;;  %s5975_s6 = inlined_call_operand.vmem [shape: f32[1,416], index: 6, kind: input, shape index: {}]   ;;  %s5976_s7 = inlined_call_operand.vmem [shape: f32[16,32], index: 7, kind: input, shape index: {}]   ;;  %s5977_s9 = inlined_call_operand.vmem [shape: f32[1,16,192], index: 9, kind: output, shape index: {}]  }
   0x1   :  { %v107_v0 = vld [vmem:[%s5968_s1 + $0x1e8] sm:$0xff]  ;;  %v109_v1 = vld [vmem:[%s5968_s1 + $0x1f8] sm:$0xff]  ;;  %v106_v2 = vld [vmem:[%s5968_s1 + $0x1e0] sm:$0xff]  ;;  %vm2351_vm4 = vcmask 261120  }
   0x2   :  { %231 = vmatprep.subr.mxu0 %v107_v0  ;;  %338 = vmatprep.subr.mxu1 %v109_v1  ;;  %v108_v3 = vld [vmem:[%s5968_s1 + $0x1f0] sm:$0xff]  ;;  %v103_v4 = vld [vmem:[%s5968_s1 + $0x1c8] sm:$0xff]  ;;  %v105_v5 = vld [vmem:[%s5968_s1 + $0x1d8] sm:$0xff] }
   0x3   :  { %232 = vmatpush1.msra.mxu0 %v106_v2  ;;  %339 = vmatpush1.msra.mxu1 %v108_v3  ;;  %v102_v6 = vld [vmem:[%s5968_s1 + $0x1c0] sm:$0xff]  ;;  %v104_v7 = vld [vmem:[%s5968_s1 + $0x1d0] sm:$0xff]  ;;  %v99_v8 = vld [vmem:[%s5968_s1 + $0x1a8] sm:$0xff] }
   0x4   :  { %233 = vmatprep.subr.mxu0 %v103_v4  ;;  %340 = vmatprep.subr.mxu1 %v105_v5  ;;  %v101_v9 = vld [vmem:[%s5968_s1 + $0x1b8] sm:$0xff]  ;;  %v98_v10 = vld [vmem:[%s5968_s1 + $0x1a0] sm:$0xff]  ;;  %v100_v11 = vld [vmem:[%s5968_s1 + $0x1b0] sm:$0xff] }
   0x5   :  { %234 = vmatpush1.msra.mxu0 %v102_v6  ;;  %341 = vmatpush1.msra.mxu1 %v104_v7  ;;  %v95_v12 = vld [vmem:[%s5968_s1 + $0x188] sm:$0xff]  ;;  %v97_v13 = vld [vmem:[%s5968_s1 + $0x198] sm:$0xff]  ;;  %v94_v14 = vld [vmem:[%s5968_s1 + $0x180] sm:$0xff] }
   0x6   :  { %235 = vmatprep.subr.mxu0 %v99_v8  ;;  %342 = vmatprep.subr.mxu1 %v101_v9  ;;  %v96_v15 = vld [vmem:[%s5968_s1 + $0x190] sm:$0xff]  ;;  %v91_v16 = vld [vmem:[%s5968_s1 + $0x168] sm:$0xff]  ;;  %v93_v17 = vld [vmem:[%s5968_s1 + $0x178] sm:$0xff] }
   0x7   :  { %236 = vmatpush1.msra.mxu0 %v98_v10  ;;  %343 = vmatpush1.msra.mxu1 %v100_v11  ;;  %v90_v18 = vld [vmem:[%s5968_s1 + $0x160] sm:$0xff]  ;;  %v92_v19 = vld [vmem:[%s5968_s1 + $0x170] sm:$0xff]  ;;  %v87_v20 = vld [vmem:[%s5968_s1 + $0x148] sm:$0xff] }
   0x8   :  { %237 = vmatprep.subr.mxu0 %v95_v12  ;;  %344 = vmatprep.subr.mxu1 %v97_v13  ;;  %v89_v21 = vld [vmem:[%s5968_s1 + $0x158] sm:$0xff]  ;;  %v86_v22 = vld [vmem:[%s5968_s1 + $0x140] sm:$0xff]  ;;  %v88_v23 = vld [vmem:[%s5968_s1 + $0x150] sm:$0xff] }
   0x9   :  { %238 = vmatpush1.msra.mxu0 %v94_v14  ;;  %345 = vmatpush1.msra.mxu1 %v96_v15  ;;  %v83_v24 = vld [vmem:[%s5968_s1 + $0x128] sm:$0xff]  ;;  %v85_v25 = vld [vmem:[%s5968_s1 + $0x138] sm:$0xff]  ;;  %v82_v26 = vld [vmem:[%s5968_s1 + $0x120] sm:$0xff] }
   0xa   :  { %239 = vmatprep.subr.mxu0 %v91_v16  ;;  %346 = vmatprep.subr.mxu1 %v93_v17  ;;  %v84_v27 = vld [vmem:[%s5968_s1 + $0x130] sm:$0xff]  ;;  %v79_v28 = vld [vmem:[%s5968_s1 + $0x108] sm:$0xff]  ;;  %v81_v29 = vld [vmem:[%s5968_s1 + $0x118] sm:$0xff] }
   0xb   :  { %240 = vmatpush1.msra.mxu0 %v90_v18  ;;  %347 = vmatpush1.msra.mxu1 %v92_v19  ;;  %v78_v30 = vld [vmem:[%s5968_s1 + $0x100] sm:$0xff]  ;;  %v80_v31 = vld [vmem:[%s5968_s1 + $0x110] sm:$0xff]  ;;  %v75_v32 = vld [vmem:[%s5968_s1 + $0xe8] sm:$0xff] }
   0xc   :  { %241 = vmatprep.subr.mxu0 %v87_v20  ;;  %348 = vmatprep.subr.mxu1 %v89_v21  ;;  %v77_v33 = vld [vmem:[%s5968_s1 + $0xf8] sm:$0xff]  ;;  %v74_v34 = vld [vmem:[%s5968_s1 + $0xe0] sm:$0xff]  ;;  %v76_v35 = vld [vmem:[%s5968_s1 + $0xf0] sm:$0xff] }
   0xd   :  { %242 = vmatpush1.msra.mxu0 %v86_v22  ;;  %349 = vmatpush1.msra.mxu1 %v88_v23  ;;  %v71_v36 = vld [vmem:[%s5968_s1 + $0xc8] sm:$0xff]  ;;  %v73_v37 = vld [vmem:[%s5968_s1 + $0xd8] sm:$0xff]  ;;  %v70_v38 = vld [vmem:[%s5968_s1 + $0xc0] sm:$0xff] }
   0xe   :  { %243 = vmatprep.subr.mxu0 %v83_v24  ;;  %350 = vmatprep.subr.mxu1 %v85_v25  ;;  %v72_v39 = vld [vmem:[%s5968_s1 + $0xd0] sm:$0xff]  ;;  %v67_v40 = vld [vmem:[%s5968_s1 + $0xa8] sm:$0xff]  ;;  %v69_v41 = vld [vmem:[%s5968_s1 + $0xb8] sm:$0xff] }
   0xf   :  { %244 = vmatpush1.msra.mxu0 %v82_v26  ;;  %351 = vmatpush1.msra.mxu1 %v84_v27  ;;  %v66_v42 = vld [vmem:[%s5968_s1 + $0xa0] sm:$0xff]  ;;  %v68_v43 = vld [vmem:[%s5968_s1 + $0xb0] sm:$0xff]  ;;  %v63_v44 = vld [vmem:[%s5968_s1 + $0x88] sm:$0xff] }
  0x10   :  { %245 = vmatprep.subr.mxu0 %v79_v28  ;;  %352 = vmatprep.subr.mxu1 %v81_v29  ;;  %v65_v45 = vld [vmem:[%s5968_s1 + $0x98] sm:$0xff]  ;;  %v62_v46 = vld [vmem:[%s5968_s1 + $0x80] sm:$0xff]  ;;  %v64_v47 = vld [vmem:[%s5968_s1 + $0x90] sm:$0xff] }
  0x11   :  { %246 = vmatpush1.msra.mxu0 %v78_v30  ;;  %353 = vmatpush1.msra.mxu1 %v80_v31  ;;  %v59_v48 = vld [vmem:[%s5968_s1 + $0x68] sm:$0xff]  ;;  %v61_v49 = vld [vmem:[%s5968_s1 + $0x78] sm:$0xff]  ;;  %v58_v50 = vld [vmem:[%s5968_s1 + $0x60] sm:$0xff] }
  0x12   :  { %247 = vmatprep.subr.mxu0 %v75_v32  ;;  %354 = vmatprep.subr.mxu1 %v77_v33  ;;  %v60_v51 = vld [vmem:[%s5968_s1 + $0x70] sm:$0xff]  ;;  %v55_v52 = vld [vmem:[%s5968_s1 + $0x48] sm:$0xff]  ;;  %v57_v53 = vld [vmem:[%s5968_s1 + $0x58] sm:$0xff] }
  0x13   :  { %248 = vmatpush1.msra.mxu0 %v74_v34  ;;  %355 = vmatpush1.msra.mxu1 %v76_v35  ;;  %v54_v54 = vld [vmem:[%s5968_s1 + $0x40] sm:$0xff]  ;;  %v56_v55 = vld [vmem:[%s5968_s1 + $0x50] sm:$0xff]  ;;  %v51_v56 = vld [vmem:[%s5968_s1 + $0x28] sm:$0xff] }
  0x14   :  { %249 = vmatprep.subr.mxu0 %v71_v36  ;;  %356 = vmatprep.subr.mxu1 %v73_v37  ;;  %v53_v57 = vld [vmem:[%s5968_s1 + $0x38] sm:$0xff]  ;;  %v50_v58 = vld [vmem:[%s5968_s1 + $0x20] sm:$0xff]  ;;  %v52_v59 = vld [vmem:[%s5968_s1 + $0x30] sm:$0xff] }
  0x15   :  { %250 = vmatpush1.msra.mxu0 %v70_v38  ;;  %357 = vmatpush1.msra.mxu1 %v72_v39  ;;  %v47_v60 = vld [vmem:[%s5968_s1 + $0x8] sm:$0xff]  ;;  %v49_v61 = vld [vmem:[%s5968_s1 + $0x18] sm:$0xff]  ;;  %v46_v62 = vld [vmem:[%s5968_s1] sm:$0xff] }
  0x16   :  { %251 = vmatprep.subr.mxu0 %v67_v40  ;;  %358 = vmatprep.subr.mxu1 %v69_v41  ;;  %v48_v63 = vld [vmem:[%s5968_s1 + $0x10] sm:$0xff]  ;;  %v171_v0 = vld [vmem:[%s5968_s1 + $0x3e8] sm:$0xf]  ;;  %v173_v1 = vld [vmem:[%s5968_s1 + $0x3f8] sm:$0xf] }
  0x17   :  { %252 = vmatpush1.msra.mxu0 %v66_v42  ;;  %359 = vmatpush1.msra.mxu1 %v68_v43  ;;  %v170_v2 = vld [vmem:[%s5968_s1 + $0x3e0] sm:$0xf]  ;;  %v172_v3 = vld [vmem:[%s5968_s1 + $0x3f0] sm:$0xf]  ;;  %v167_v4 = vld [vmem:[%s5968_s1 + $0x3c8] sm:$0xff] }
  0x18   :  { %253 = vmatprep.subr.mxu0 %v63_v44  ;;  %360 = vmatprep.subr.mxu1 %v65_v45  ;;  %v169_v5 = vld [vmem:[%s5968_s1 + $0x3d8] sm:$0xff]  ;;  %v166_v6 = vld [vmem:[%s5968_s1 + $0x3c0] sm:$0xff]  ;;  %v168_v7 = vld [vmem:[%s5968_s1 + $0x3d0] sm:$0xff] }
  0x19   :  { %254 = vmatpush1.msra.mxu0 %v62_v46  ;;  %361 = vmatpush1.msra.mxu1 %v64_v47  ;;  %v163_v8 = vld [vmem:[%s5968_s1 + $0x3a8] sm:$0xff]  ;;  %v165_v9 = vld [vmem:[%s5968_s1 + $0x3b8] sm:$0xff]  ;;  %v162_v10 = vld [vmem:[%s5968_s1 + $0x3a0] sm:$0xff] }
  0x1a   :  { %255 = vmatprep.subr.mxu0 %v59_v48  ;;  %362 = vmatprep.subr.mxu1 %v61_v49  ;;  %v164_v11 = vld [vmem:[%s5968_s1 + $0x3b0] sm:$0xff]  ;;  %v159_v12 = vld [vmem:[%s5968_s1 + $0x388] sm:$0xff]  ;;  %v161_v13 = vld [vmem:[%s5968_s1 + $0x398] sm:$0xff] }
  0x1b   :  { %256 = vmatpush1.msra.mxu0 %v58_v50  ;;  %363 = vmatpush1.msra.mxu1 %v60_v51  ;;  %v158_v14 = vld [vmem:[%s5968_s1 + $0x380] sm:$0xff]  ;;  %v160_v15 = vld [vmem:[%s5968_s1 + $0x390] sm:$0xff]  ;;  %v155_v16 = vld [vmem:[%s5968_s1 + $0x368] sm:$0xff] }
  0x1c   :  { %257 = vmatprep.subr.mxu0 %v55_v52  ;;  %364 = vmatprep.subr.mxu1 %v57_v53  ;;  %v157_v17 = vld [vmem:[%s5968_s1 + $0x378] sm:$0xff]  ;;  %v154_v18 = vld [vmem:[%s5968_s1 + $0x360] sm:$0xff]  ;;  %v156_v19 = vld [vmem:[%s5968_s1 + $0x370] sm:$0xff] }
  0x1d   :  { %258 = vmatpush1.msra.mxu0 %v54_v54  ;;  %365 = vmatpush1.msra.mxu1 %v56_v55  ;;  %v151_v20 = vld [vmem:[%s5968_s1 + $0x348] sm:$0xff]  ;;  %v153_v21 = vld [vmem:[%s5968_s1 + $0x358] sm:$0xff]  ;;  %v150_v22 = vld [vmem:[%s5968_s1 + $0x340] sm:$0xff] }
  0x1e   :  { %259 = vmatprep.subr.mxu0 %v51_v56  ;;  %366 = vmatprep.subr.mxu1 %v53_v57  ;;  %v152_v23 = vld [vmem:[%s5968_s1 + $0x350] sm:$0xff]  ;;  %v147_v24 = vld [vmem:[%s5968_s1 + $0x328] sm:$0xff]  ;;  %v149_v25 = vld [vmem:[%s5968_s1 + $0x338] sm:$0xff] }
  0x1f   :  { %260 = vmatpush1.msra.mxu0 %v50_v58  ;;  %367 = vmatpush1.msra.mxu1 %v52_v59  ;;  %v146_v26 = vld [vmem:[%s5968_s1 + $0x320] sm:$0xff]  ;;  %v148_v27 = vld [vmem:[%s5968_s1 + $0x330] sm:$0xff]  ;;  %v143_v28 = vld [vmem:[%s5968_s1 + $0x308] sm:$0xff] }
  0x20   :  { %261 = vmatprep.subr.mxu0 %v47_v60  ;;  %368 = vmatprep.subr.mxu1 %v49_v61  ;;  %v145_v29 = vld [vmem:[%s5968_s1 + $0x318] sm:$0xff]  ;;  %v142_v30 = vld [vmem:[%s5968_s1 + $0x300] sm:$0xff]  ;;  %v144_v31 = vld [vmem:[%s5968_s1 + $0x310] sm:$0xff] }
  0x21   :  { %262 = vmatpush1.msra.mxu0 %v46_v62  ;;  %369 = vmatpush1.msra.mxu1 %v48_v63  ;;  %v139_v32 = vld [vmem:[%s5968_s1 + $0x2e8] sm:$0xff]  ;;  %v141_v33 = vld [vmem:[%s5968_s1 + $0x2f8] sm:$0xff]  ;;  %v138_v34 = vld [vmem:[%s5968_s1 + $0x2e0] sm:$0xff] }
  0x22   :  { %2784 = vmatprep.subr.msk.mxu0 %vm218_vm0, %v171_v0  ;;  %2793 = vmatprep.subr.msk.mxu1 %vm218_vm0, %v173_v1  ;;  %v140_v35 = vld [vmem:[%s5968_s1 + $0x2f0] sm:$0xff]  ;;  %v135_v36 = vld [vmem:[%s5968_s1 + $0x2c8] sm:$0xff]  ;;  %v137_v37 = vld [vmem:[%s5968_s1 + $0x2d8] sm:$0xff] }
  0x23   :  { %2785 = vmatpush2.msk.msra.mxu0 %vm218_vm0, %v170_v2  ;;  %2794 = vmatpush2.msk.msra.mxu1 %vm218_vm0, %v172_v3  ;;  %v134_v38 = vld [vmem:[%s5968_s1 + $0x2c0] sm:$0xff]  ;;  %v136_v39 = vld [vmem:[%s5968_s1 + $0x2d0] sm:$0xff]  ;;  %v131_v40 = vld [vmem:[%s5968_s1 + $0x2a8] sm:$0xff] }
  0x24   :  { %265 = vmatprep.subr.mxu0 %v167_v4  ;;  %372 = vmatprep.subr.mxu1 %v169_v5  ;;  %v133_v41 = vld [vmem:[%s5968_s1 + $0x2b8] sm:$0xff]  ;;  %v130_v42 = vld [vmem:[%s5968_s1 + $0x2a0] sm:$0xff]  ;;  %v132_v43 = vld [vmem:[%s5968_s1 + $0x2b0] sm:$0xff] }
  0x25   :  { %266 = vmatpush2.msra.mxu0 %v166_v6  ;;  %373 = vmatpush2.msra.mxu1 %v168_v7  ;;  %v127_v44 = vld [vmem:[%s5968_s1 + $0x288] sm:$0xff]  ;;  %v129_v45 = vld [vmem:[%s5968_s1 + $0x298] sm:$0xff]  ;;  %v126_v46 = vld [vmem:[%s5968_s1 + $0x280] sm:$0xff] }
  0x26   :  { %267 = vmatprep.subr.mxu0 %v163_v8  ;;  %374 = vmatprep.subr.mxu1 %v165_v9  ;;  %v128_v47 = vld [vmem:[%s5968_s1 + $0x290] sm:$0xff]  ;;  %v123_v48 = vld [vmem:[%s5968_s1 + $0x268] sm:$0xff]  ;;  %v125_v49 = vld [vmem:[%s5968_s1 + $0x278] sm:$0xff] }
  0x27   :  { %268 = vmatpush2.msra.mxu0 %v162_v10  ;;  %375 = vmatpush2.msra.mxu1 %v164_v11  ;;  %v122_v50 = vld [vmem:[%s5968_s1 + $0x260] sm:$0xff]  ;;  %v124_v51 = vld [vmem:[%s5968_s1 + $0x270] sm:$0xff]  ;;  %v119_v52 = vld [vmem:[%s5968_s1 + $0x248] sm:$0xff] }
  0x28   :  { %269 = vmatprep.subr.mxu0 %v159_v12  ;;  %376 = vmatprep.subr.mxu1 %v161_v13  ;;  %v121_v53 = vld [vmem:[%s5968_s1 + $0x258] sm:$0xff]  ;;  %v118_v54 = vld [vmem:[%s5968_s1 + $0x240] sm:$0xff]  ;;  %v120_v55 = vld [vmem:[%s5968_s1 + $0x250] sm:$0xff] }
  0x29   :  { %270 = vmatpush2.msra.mxu0 %v158_v14  ;;  %377 = vmatpush2.msra.mxu1 %v160_v15  ;;  %v115_v56 = vld [vmem:[%s5968_s1 + $0x228] sm:$0xff]  ;;  %v117_v57 = vld [vmem:[%s5968_s1 + $0x238] sm:$0xff]  ;;  %v114_v58 = vld [vmem:[%s5968_s1 + $0x220] sm:$0xff] }
  0x2a   :  { %271 = vmatprep.subr.mxu0 %v155_v16  ;;  %378 = vmatprep.subr.mxu1 %v157_v17  ;;  %v116_v59 = vld [vmem:[%s5968_s1 + $0x230] sm:$0xff]  ;;  %v111_v60 = vld [vmem:[%s5968_s1 + $0x208] sm:$0xff]  ;;  %v113_v61 = vld [vmem:[%s5968_s1 + $0x218] sm:$0xff] }
  0x2b   :  { %272 = vmatpush2.msra.mxu0 %v154_v18  ;;  %379 = vmatpush2.msra.mxu1 %v156_v19  ;;  %v110_v62 = vld [vmem:[%s5968_s1 + $0x200] sm:$0xff]  ;;  %v33_v63 = vld [vmem:[%s5969_s0 + $0x8] sm:$0xff]  ;;  %v112_v0 = vld [vmem:[%s5968_s1 + $0x210] sm:$0xff] }
  0x2c   :  { %273 = vmatprep.subr.mxu0 %v151_v20  ;;  %380 = vmatprep.subr.mxu1 %v153_v21  ;;  %v32_v1 = vld [vmem:[%s5969_s0] sm:$0xff]  ;;  %v35_v2 = vld [vmem:[%s5969_s0 + $0x18] sm:$0xff]  ;;  %v643_v5 = vld [vmem:[%s5970_s3 + $0xf0] sm:$0xff] }
  0x2d   :  { %274 = vmatpush2.msra.mxu0 %v150_v22  ;;  %381 = vmatpush2.msra.mxu1 %v152_v23  ;;  %v644_v3 = vld [vmem:[%s5970_s3 + $0xf8] sm:$0xff]  ;;  %v707_v6 = vld [vmem:[%s5970_s3 + $0x2f0] sm:$0xff]  ;;  %v37_v8 = vld [vmem:[%s5969_s0 + $0x28] sm:$0xff] }
  0x2e   :  { %275 = vmatprep.subr.mxu0 %v147_v24  ;;  %382 = vmatprep.subr.mxu1 %v149_v25  ;;  %v708_v4 = vld [vmem:[%s5970_s3 + $0x2f8] sm:$0xff]  ;;  %v34_v7 = vld [vmem:[%s5969_s0 + $0x10] sm:$0xff]  ;;  %v642_v9 = vld [vmem:[%s5970_s3 + $0xe8] sm:$0xff] }
  0x2f   :  { %276 = vmatpush2.msra.mxu0 %v146_v26  ;;  %383 = vmatpush2.msra.mxu1 %v148_v27  ;;  %v706_v10 = vld [vmem:[%s5970_s3 + $0x2e8] sm:$0xff]  ;;  %v641_v11 = vld [vmem:[%s5970_s3 + $0xe0] sm:$0xff]  ;;  %v39_v14 = vld [vmem:[%s5969_s0 + $0x38] sm:$0xff] }
  0x30   :  { %277 = vmatprep.subr.mxu0 %v143_v28  ;;  %384 = vmatprep.subr.mxu1 %v145_v29  ;;  %v705_v12 = vld [vmem:[%s5970_s3 + $0x2e0] sm:$0xff]  ;;  %v640_v15 = vld [vmem:[%s5970_s3 + $0xd8] sm:$0xff]  ;;  %v639_v17 = vld [vmem:[%s5970_s3 + $0xd0] sm:$0xff] }
  0x31   :  { %278 = vmatpush2.msra.mxu0 %v142_v30  ;;  %385 = vmatpush2.msra.mxu1 %v144_v31  ;;  %v36_v13 = vld [vmem:[%s5969_s0 + $0x20] sm:$0xff]  ;;  %v704_v16 = vld [vmem:[%s5970_s3 + $0x2d8] sm:$0xff]  ;;  %v703_v18 = vld [vmem:[%s5970_s3 + $0x2d0] sm:$0xff] }
  0x32   :  { %279 = vmatprep.subr.mxu0 %v139_v32  ;;  %386 = vmatprep.subr.mxu1 %v141_v33  ;;  %v38_v19 = vld [vmem:[%s5969_s0 + $0x30] sm:$0xff]  ;;  %v41_v20 = vld [vmem:[%s5969_s0 + $0x48] sm:$0xff]  ;;  %v637_v23 = vld [vmem:[%s5970_s3 + $0xc0] sm:$0xff] }
  0x33   :  { %280 = vmatpush2.msra.mxu0 %v138_v34  ;;  %387 = vmatpush2.msra.mxu1 %v140_v35  ;;  %v638_v21 = vld [vmem:[%s5970_s3 + $0xc8] sm:$0xff]  ;;  %v701_v24 = vld [vmem:[%s5970_s3 + $0x2c0] sm:$0xff]  ;;  %v43_v26 = vld [vmem:[%s5969_s0 + $0x58] sm:$0xff] }
  0x34   :  { %281 = vmatprep.subr.mxu0 %v135_v36  ;;  %388 = vmatprep.subr.mxu1 %v137_v37  ;;  %v702_v22 = vld [vmem:[%s5970_s3 + $0x2c8] sm:$0xff]  ;;  %v40_v25 = vld [vmem:[%s5969_s0 + $0x40] sm:$0xff]  ;;  %v636_v27 = vld [vmem:[%s5970_s3 + $0xb8] sm:$0xff] }
  0x35   :  { %282 = vmatpush2.msra.mxu0 %v134_v38  ;;  %389 = vmatpush2.msra.mxu1 %v136_v39  ;;  %v700_v28 = vld [vmem:[%s5970_s3 + $0x2b8] sm:$0xff]  ;;  %v635_v29 = vld [vmem:[%s5970_s3 + $0xb0] sm:$0xff]  ;;  %v45_v32 = vld [vmem:[%s5969_s0 + $0x68] sm:$0xff] }
  0x36   :  { %283 = vmatprep.subr.mxu0 %v131_v40  ;;  %390 = vmatprep.subr.mxu1 %v133_v41  ;;  %v699_v30 = vld [vmem:[%s5970_s3 + $0x2b0] sm:$0xff]  ;;  %v634_v33 = vld [vmem:[%s5970_s3 + $0xa8] sm:$0xff]  ;;  %v633_v34 = vld [vmem:[%s5970_s3 + $0xa0] sm:$0xff] }
  0x37   :  { %284 = vmatpush2.msra.mxu0 %v130_v42  ;;  %391 = vmatpush2.msra.mxu1 %v132_v43  ;;  %v42_v31 = vld [vmem:[%s5969_s0 + $0x50] sm:$0xff]  ;;  %v44_v35 = vld [vmem:[%s5969_s0 + $0x60] sm:$0xff]  ;;  %v632_v36 = vld [vmem:[%s5970_s3 + $0x98] sm:$0xff] }
  0x38   :  { %285 = vmatprep.subr.mxu0 %v127_v44  ;;  %392 = vmatprep.subr.mxu1 %v129_v45  ;;  %v631_v37 = vld [vmem:[%s5970_s3 + $0x90] sm:$0xff]  ;;  %v630_v38 = vld [vmem:[%s5970_s3 + $0x88] sm:$0xff]  ;;  %v629_v39 = vld [vmem:[%s5970_s3 + $0x80] sm:$0xff] }
  0x39   :  { %286 = vmatpush2.msra.mxu0 %v126_v46  ;;  %393 = vmatpush2.msra.mxu1 %v128_v47  ;;  %v628_v40 = vld [vmem:[%s5970_s3 + $0x78] sm:$0xff]  ;;  %v627_v41 = vld [vmem:[%s5970_s3 + $0x70] sm:$0xff]  ;;  %v626_v42 = vld [vmem:[%s5970_s3 + $0x68] sm:$0xff] }
  0x3a   :  { %287 = vmatprep.subr.mxu0 %v123_v48  ;;  %394 = vmatprep.subr.mxu1 %v125_v49  ;;  %v625_v43 = vld [vmem:[%s5970_s3 + $0x60] sm:$0xff]  ;;  %v624_v44 = vld [vmem:[%s5970_s3 + $0x58] sm:$0xff]  ;;  %v623_v45 = vld [vmem:[%s5970_s3 + $0x50] sm:$0xff] }
  0x3b   :  { %288 = vmatpush2.msra.mxu0 %v122_v50  ;;  %395 = vmatpush2.msra.mxu1 %v124_v51  ;;  %v622_v46 = vld [vmem:[%s5970_s3 + $0x48] sm:$0xff]  ;;  %v621_v47 = vld [vmem:[%s5970_s3 + $0x40] sm:$0xff]  ;;  %v620_v48 = vld [vmem:[%s5970_s3 + $0x38] sm:$0xff] }
  0x3c   :  { %289 = vmatprep.subr.mxu0 %v119_v52  ;;  %396 = vmatprep.subr.mxu1 %v121_v53  ;;  %v619_v49 = vld [vmem:[%s5970_s3 + $0x30] sm:$0xff]  ;;  %v618_v50 = vld [vmem:[%s5970_s3 + $0x28] sm:$0xff]  ;;  %v617_v52 = vld [vmem:[%s5970_s3 + $0x20] sm:$0xff] }
  0x3d   :  { %290 = vmatpush2.msra.mxu0 %v118_v54  ;;  %397 = vmatpush2.msra.mxu1 %v120_v55  ;;  %v698_v51 = vld [vmem:[%s5970_s3 + $0x2a8] sm:$0xff]  ;;  %v697_v53 = vld [vmem:[%s5970_s3 + $0x2a0] sm:$0xff]  ;;  %v616_v54 = vld [vmem:[%s5970_s3 + $0x18] sm:$0xff] }
  0x3e   :  { %291 = vmatprep.subr.mxu0 %v115_v56  ;;  %398 = vmatprep.subr.mxu1 %v117_v57  ;;  %v696_v55 = vld [vmem:[%s5970_s3 + $0x298] sm:$0xff]  ;;  %v615_v56 = vld [vmem:[%s5970_s3 + $0x10] sm:$0xff] }
  0x3f   :  { %292 = vmatpush2.msra.mxu0 %v114_v58  ;;  %399 = vmatpush2.msra.mxu1 %v116_v59  ;;  %v695_v57 = vld [vmem:[%s5970_s3 + $0x290] sm:$0xff]  ;;  %v614_v58 = vld [vmem:[%s5970_s3 + $0x8] sm:$0xff] }
  0x40   :  { %293 = vmatprep.subr.mxu0 %v111_v60  ;;  %400 = vmatprep.subr.mxu1 %v113_v61  ;;  %v694_v59 = vld [vmem:[%s5970_s3 + $0x288] sm:$0xff]  ;;  %v613_v60 = vld [vmem:[%s5970_s3] sm:$0xff] }
  0x41   :  { %294 = vmatpush2.msra.mxu0 %v110_v62  ;;  %2786 = vmatprep.mubr.msk.f32.mxu0 %vm196_vm1, %v33_v63  ;;  %v693_v61 = vld [vmem:[%s5970_s3 + $0x280] sm:$0xff]  ;;  %v676_v62 = vld [vmem:[%s5970_s3 + $0x1f8] sm:$0xff] }
  0x42   :  { %401 = vmatpush2.msra.mxu1 %v112_v0  ;;  %2795 = vmatprep.mubr.msk.f32.mxu1 %vm196_vm1, %v33_v63  ;;  %v692_v63 = vld [vmem:[%s5970_s3 + $0x278] sm:$0xff]  ;;  %v675_v0 = vld [vmem:[%s5970_s3 + $0x1f0] sm:$0xff] }
  0x43   :  { %296 = vmatmul.mubr.f32.vlgmr.msra.gmra.mxu0 %v32_v1  ;;  %403 = vmatmul.mubr.f32.vlgmr.msra.gmra.mxu1 %v32_v1  ;;  %v691_v1 = vld [vmem:[%s5970_s3 + $0x270] sm:$0xff] }
  0x44   :  { %2787 = vmatprep.mubr.msk.f32.mxu0 %vm196_vm1, %v35_v2  ;;  %2796 = vmatprep.mubr.msk.f32.mxu1 %vm196_vm1, %v35_v2  ;;  %v674_v2 = vld [vmem:[%s5970_s3 + $0x1e8] sm:$0xff] }
  0x45   :  { %747 = vmatprep.subr.mxu0 %v644_v3  ;;  %854 = vmatprep.subr.mxu1 %v708_v4  ;;  %v690_v3 = vld [vmem:[%s5970_s3 + $0x268] sm:$0xff]  ;;  %v673_v4 = vld [vmem:[%s5970_s3 + $0x1e0] sm:$0xff] }
  0x46   :  { %748 = vmatpush1.msra.mxu0 %v643_v5  ;;  %855 = vmatpush1.msra.mxu1 %v707_v6  ;;  %v689_v5 = vld [vmem:[%s5970_s3 + $0x260] sm:$0xff]  ;;  %v672_v6 = vld [vmem:[%s5970_s3 + $0x1d8] sm:$0xff] }
  0x47   :  { %302 = vmatmul.mubr.f32.gmra.mxu0 %v34_v7  ;;  %409 = vmatmul.mubr.f32.gmra.mxu1 %v34_v7  ;;  %v688_v7 = vld [vmem:[%s5970_s3 + $0x258] sm:$0xff] }
  0x48   :  { %2788 = vmatprep.mubr.msk.f32.mxu0 %vm196_vm1, %v37_v8  ;;  %2797 = vmatprep.mubr.msk.f32.mxu1 %vm196_vm1, %v37_v8  ;;  %v671_v8 = vld [vmem:[%s5970_s3 + $0x1d0] sm:$0xff] }
  0x49   :  { %749 = vmatprep.subr.mxu0 %v642_v9  ;;  %856 = vmatprep.subr.mxu1 %v706_v10  ;;  %v687_v9 = vld [vmem:[%s5970_s3 + $0x250] sm:$0xff]  ;;  %v670_v10 = vld [vmem:[%s5970_s3 + $0x1c8] sm:$0xff] }
  0x4a   :  { %750 = vmatpush1.msra.mxu0 %v641_v11  ;;  %857 = vmatpush1.msra.mxu1 %v705_v12  ;;  %v686_v11 = vld [vmem:[%s5970_s3 + $0x248] sm:$0xff]  ;;  %v669_v12 = vld [vmem:[%s5970_s3 + $0x1c0] sm:$0xff] }
  0x4b   :  { %308 = vmatmul.mubr.f32.gmra.mxu0 %v36_v13  ;;  %415 = vmatmul.mubr.f32.gmra.mxu1 %v36_v13  ;;  %v685_v13 = vld [vmem:[%s5970_s3 + $0x240] sm:$0xff] }
  0x4c   :  { %2789 = vmatprep.mubr.msk.f32.mxu0 %vm196_vm1, %v39_v14  ;;  %2798 = vmatprep.mubr.msk.f32.mxu1 %vm196_vm1, %v39_v14  ;;  %v668_v14 = vld [vmem:[%s5970_s3 + $0x1b8] sm:$0xff] }
  0x4d   :  { %751 = vmatprep.subr.mxu0 %v640_v15  ;;  %858 = vmatprep.subr.mxu1 %v704_v16  ;;  %v684_v15 = vld [vmem:[%s5970_s3 + $0x238] sm:$0xff]  ;;  %v667_v16 = vld [vmem:[%s5970_s3 + $0x1b0] sm:$0xff] }
  0x4e   :  { %752 = vmatpush1.msra.mxu0 %v639_v17  ;;  %859 = vmatpush1.msra.mxu1 %v703_v18  ;;  %v683_v17 = vld [vmem:[%s5970_s3 + $0x230] sm:$0xff]  ;;  %v666_v18 = vld [vmem:[%s5970_s3 + $0x1a8] sm:$0xff] }
  0x4f   :  { %314 = vmatmul.mubr.f32.gmra.mxu0 %v38_v19  ;;  %421 = vmatmul.mubr.f32.gmra.mxu1 %v38_v19  ;;  %v682_v19 = vld [vmem:[%s5970_s3 + $0x228] sm:$0xff] }
  0x50   :  { %2790 = vmatprep.mubr.msk.f32.mxu0 %vm196_vm1, %v41_v20  ;;  %2799 = vmatprep.mubr.msk.f32.mxu1 %vm196_vm1, %v41_v20  ;;  %v665_v20 = vld [vmem:[%s5970_s3 + $0x1a0] sm:$0xff] }
  0x51   :  { %753 = vmatprep.subr.mxu0 %v638_v21  ;;  %860 = vmatprep.subr.mxu1 %v702_v22  ;;  %v681_v21 = vld [vmem:[%s5970_s3 + $0x220] sm:$0xff]  ;;  %v664_v22 = vld [vmem:[%s5970_s3 + $0x198] sm:$0xff] }
  0x52   :  { %754 = vmatpush1.msra.mxu0 %v637_v23  ;;  %861 = vmatpush1.msra.mxu1 %v701_v24  ;;  %v680_v23 = vld [vmem:[%s5970_s3 + $0x218] sm:$0xff]  ;;  %v663_v24 = vld [vmem:[%s5970_s3 + $0x190] sm:$0xff] }
  0x53   :  { %320 = vmatmul.mubr.f32.gmra.mxu0 %v40_v25  ;;  %427 = vmatmul.mubr.f32.gmra.mxu1 %v40_v25  ;;  %v679_v25 = vld [vmem:[%s5970_s3 + $0x210] sm:$0xff] }
  0x54   :  { %2791 = vmatprep.mubr.msk.f32.mxu0 %vm196_vm1, %v43_v26  ;;  %2800 = vmatprep.mubr.msk.f32.mxu1 %vm196_vm1, %v43_v26  ;;  %v662_v26 = vld [vmem:[%s5970_s3 + $0x188] sm:$0xff] }
  0x55   :  { %755 = vmatprep.subr.mxu0 %v636_v27  ;;  %862 = vmatprep.subr.mxu1 %v700_v28  ;;  %v678_v27 = vld [vmem:[%s5970_s3 + $0x208] sm:$0xff]  ;;  %v661_v28 = vld [vmem:[%s5970_s3 + $0x180] sm:$0xff] }
  0x56   :  { %756 = vmatpush1.msra.mxu0 %v635_v29  ;;  %863 = vmatpush1.msra.mxu1 %v699_v30  ;;  %v677_v29 = vld [vmem:[%s5970_s3 + $0x200] sm:$0xff]  ;;  %v660_v30 = vld [vmem:[%s5970_s3 + $0x178] sm:$0xff] }
  0x57   :  { %326 = vmatmul.mubr.f32.gmra.mxu0 %v42_v31  ;;  %433 = vmatmul.mubr.f32.gmra.mxu1 %v42_v31  ;;  %v724_v31 = vld [vmem:[%s5970_s3 + $0x378] sm:$0xff] }
  0x58   :  { %2792 = vmatprep.mubr.msk.f32.mxu0 %vm196_vm1, %v45_v32  ;;  %2801 = vmatprep.mubr.msk.f32.mxu1 %vm196_vm1, %v45_v32  ;;  %v659_v32 = vld [vmem:[%s5970_s3 + $0x170] sm:$0xff] }
  0x59   :  { %757 = vmatprep.subr.mxu0 %v634_v33  ;;  %864 = vmatprep.subr.mxu1 %v698_v51  ;;  %v723_v33 = vld [vmem:[%s5970_s3 + $0x370] sm:$0xff]  ;;  %v714_v51 = vld [vmem:[%s5970_s3 + $0x328] sm:$0xff] }
  0x5a   :  { %758 = vmatpush1.msra.mxu0 %v633_v34  ;;  %865 = vmatpush1.msra.mxu1 %v697_v53  ;;  %v658_v34 = vld [vmem:[%s5970_s3 + $0x168] sm:$0xff]  ;;  %v713_v53 = vld [vmem:[%s5970_s3 + $0x320] sm:$0xff] }
  0x5b   :  { %332 = vmatmul.mubr.f32.gmra.mxu0 %v44_v35  ;;  %439 = vmatmul.mubr.f32.gmra.mxu1 %v44_v35  ;;  %v722_v35 = vld [vmem:[%s5970_s3 + $0x368] sm:$0xff] }
  0x5c   :  { %759 = vmatprep.subr.mxu0 %v632_v36  ;;  %866 = vmatprep.subr.mxu1 %v696_v55  ;;  %v657_v36 = vld [vmem:[%s5970_s3 + $0x160] sm:$0xff]  ;;  %v712_v55 = vld [vmem:[%s5970_s3 + $0x318] sm:$0xff] }
  0x5d   :  { %760 = vmatpush1.msra.mxu0 %v631_v37  ;;  %867 = vmatpush1.msra.mxu1 %v695_v57  ;;  %v721_v37 = vld [vmem:[%s5970_s3 + $0x360] sm:$0xff]  ;;  %v711_v57 = vld [vmem:[%s5970_s3 + $0x310] sm:$0xff] }
  0x5e   :  { %761 = vmatprep.subr.mxu0 %v630_v38  ;;  %868 = vmatprep.subr.mxu1 %v694_v59  ;;  %v656_v38 = vld [vmem:[%s5970_s3 + $0x158] sm:$0xff]  ;;  %v710_v59 = vld [vmem:[%s5970_s3 + $0x308] sm:$0xff] }
  0x5f   :  { %762 = vmatpush1.msra.mxu0 %v629_v39  ;;  %869 = vmatpush1.msra.mxu1 %v693_v61  ;;  %v720_v39 = vld [vmem:[%s5970_s3 + $0x358] sm:$0xff]  ;;  %v709_v61 = vld [vmem:[%s5970_s3 + $0x300] sm:$0xff] }
  0x60   :  { %763 = vmatprep.subr.mxu0 %v628_v40  ;;  %870 = vmatprep.subr.mxu1 %v692_v63  ;;  %v655_v40 = vld [vmem:[%s5970_s3 + $0x150] sm:$0xff] }
  0x61   :  { %764 = vmatpush1.msra.mxu0 %v627_v41  ;;  %871 = vmatpush1.msra.mxu1 %v691_v1  ;;  %v719_v41 = vld [vmem:[%s5970_s3 + $0x350] sm:$0xff] }
  0x62   :  { %765 = vmatprep.subr.mxu0 %v626_v42  ;;  %872 = vmatprep.subr.mxu1 %v690_v3  ;;  %v654_v42 = vld [vmem:[%s5970_s3 + $0x148] sm:$0xff] }
  0x63   :  { %766 = vmatpush1.msra.mxu0 %v625_v43  ;;  %873 = vmatpush1.msra.mxu1 %v689_v5  ;;  %v718_v43 = vld [vmem:[%s5970_s3 + $0x348] sm:$0xff] }
  0x64   :  { %767 = vmatprep.subr.mxu0 %v624_v44  ;;  %874 = vmatprep.subr.mxu1 %v688_v7  ;;  %v653_v44 = vld [vmem:[%s5970_s3 + $0x140] sm:$0xff] }
  0x65   :  { %768 = vmatpush1.msra.mxu0 %v623_v45  ;;  %875 = vmatpush1.msra.mxu1 %v687_v9  ;;  %v717_v45 = vld [vmem:[%s5970_s3 + $0x340] sm:$0xff] }
  0x66   :  { %769 = vmatprep.subr.mxu0 %v622_v46  ;;  %876 = vmatprep.subr.mxu1 %v686_v11  ;;  %v652_v46 = vld [vmem:[%s5970_s3 + $0x138] sm:$0xff] }
  0x67   :  { %770 = vmatpush1.msra.mxu0 %v621_v47  ;;  %877 = vmatpush1.msra.mxu1 %v685_v13  ;;  %v716_v47 = vld [vmem:[%s5970_s3 + $0x338] sm:$0xff] }
  0x68   :  { %771 = vmatprep.subr.mxu0 %v620_v48  ;;  %878 = vmatprep.subr.mxu1 %v684_v15  ;;  %v651_v48 = vld [vmem:[%s5970_s3 + $0x130] sm:$0xff] }
  0x69   :  { %772 = vmatpush1.msra.mxu0 %v619_v49  ;;  %879 = vmatpush1.msra.mxu1 %v683_v17  ;;  %v715_v49 = vld [vmem:[%s5970_s3 + $0x330] sm:$0xff] }
  0x6a   :  { %773 = vmatprep.subr.mxu0 %v618_v50  ;;  %880 = vmatprep.subr.mxu1 %v682_v19  ;;  %v650_v50 = vld [vmem:[%s5970_s3 + $0x128] sm:$0xff] }
  0x6b   :  { %774 = vmatpush1.msra.mxu0 %v617_v52  ;;  %881 = vmatpush1.msra.mxu1 %v681_v21  ;;  %v649_v52 = vld [vmem:[%s5970_s3 + $0x120] sm:$0xff] }
  0x6c   :  { %775 = vmatprep.subr.mxu0 %v616_v54  ;;  %882 = vmatprep.subr.mxu1 %v680_v23  ;;  %v648_v54 = vld [vmem:[%s5970_s3 + $0x118] sm:$0xff] }
  0x6d   :  { %776 = vmatpush1.msra.mxu0 %v615_v56  ;;  %883 = vmatpush1.msra.mxu1 %v679_v25  ;;  %v647_v56 = vld [vmem:[%s5970_s3 + $0x110] sm:$0xff] }
  0x6e   :  { %777 = vmatprep.subr.mxu0 %v614_v58  ;;  %884 = vmatprep.subr.mxu1 %v678_v27  ;;  %v646_v58 = vld [vmem:[%s5970_s3 + $0x108] sm:$0xff] }
  0x6f   :  { %778 = vmatpush1.msra.mxu0 %v613_v60  ;;  %885 = vmatpush1.msra.mxu1 %v677_v29  ;;  %v645_v60 = vld [vmem:[%s5970_s3 + $0x100] sm:$0xff] }
  0x70   :  { %779 = vmatprep.subr.mxu0 %v676_v62  ;;  %902 = vmatprep.subr.mxu1 %v724_v31  ;;  %v176_v62 = vlaneseq }
  0x71   :  { %780 = vmatpush2.msra.mxu0 %v675_v0  ;;  %903 = vmatpush2.msra.mxu1 %v723_v33 }
  0x72   :  { %781 = vmatprep.subr.mxu0 %v674_v2  ;;  %904 = vmatprep.subr.mxu1 %v722_v35  ;;  %v4139_v63 = vshrl.u32 %v176_v62, 7  ;;  %v174_v2 = vld [vmem:[%s5971_s2] sm:$0xf] }
  0x73   :  { %782 = vmatpush2.msra.mxu0 %v673_v4  ;;  %905 = vmatpush2.msra.mxu1 %v721_v37 }
  0x74   :  { %783 = vmatprep.subr.mxu0 %v672_v6  ;;  %906 = vmatprep.subr.mxu1 %v720_v39  ;;  %v178_v0 = vsub.s32 0, %v4139_v63  ;;  %v186_v1 = vsub.s32 2, %v4139_v63  ;;  %v182_v3 = vsub.s32 1, %v4139_v63  ;;  %v190_v4 = vsub.s32 3, %v4139_v63 }
  0x75   :  { %784 = vmatpush2.msra.mxu0 %v671_v8  ;;  %907 = vmatpush2.msra.mxu1 %v719_v41 }
  0x76   :  { %785 = vmatprep.subr.mxu0 %v670_v10  ;;  %908 = vmatprep.subr.mxu1 %v718_v43  ;;  %v4150_v5 = vrot.slane %v174_v2, %v178_v0  ;;  %v4154_v6 = vrot.slane %v174_v2, %v186_v1  ;;  %v4158_v7 = vrot.slane %v174_v2, %v182_v3 }
  0x77   :  { %786 = vmatpush2.msra.mxu0 %v669_v12  ;;  %909 = vmatpush2.msra.mxu1 %v717_v45  ;;  %v4162_v8 = vrot.slane %v174_v2, %v190_v4 }
  0x78   :  { %787 = vmatprep.subr.mxu0 %v668_v14  ;;  %910 = vmatprep.subr.mxu1 %v716_v47 }
  0x79   :  { %788 = vmatpush2.msra.mxu0 %v667_v16  ;;  %911 = vmatpush2.msra.mxu1 %v715_v49 }
  0x7a   :  { %789 = vmatprep.subr.mxu0 %v666_v18  ;;  %912 = vmatprep.subr.mxu1 %v714_v51 }
  0x7b   :  { %790 = vmatpush2.msra.mxu0 %v665_v20  ;;  %913 = vmatpush2.msra.mxu1 %v713_v53 }
  0x7c   :  { %791 = vmatprep.subr.mxu0 %v664_v22  ;;  %914 = vmatprep.subr.mxu1 %v712_v55 }
  0x7d   :  { %792 = vmatpush2.msra.mxu0 %v663_v24  ;;  %915 = vmatpush2.msra.mxu1 %v711_v57 }
  0x7e   :  { %793 = vmatprep.subr.mxu0 %v662_v26  ;;  %916 = vmatprep.subr.mxu1 %v710_v59 }
  0x7f   :  { %794 = vmatpush2.msra.mxu0 %v661_v28  ;;  %917 = vmatpush2.msra.mxu1 %v709_v61 }
  0x80   :  { %795 = vmatprep.subr.mxu0 %v660_v30 }
  0x81   :  { %796 = vmatpush2.msra.mxu0 %v659_v32 }
  0x82   :  { %797 = vmatprep.subr.mxu0 %v658_v34 }
  0x83   :  { %798 = vmatpush2.msra.mxu0 %v657_v36 }
  0x84   :  { %799 = vmatprep.subr.mxu0 %v656_v38 }
  0x85   :  { %800 = vmatpush2.msra.mxu0 %v655_v40 }
  0x86   :  { %801 = vmatprep.subr.mxu0 %v654_v42 }
  0x87   :  { %802 = vmatpush2.msra.mxu0 %v653_v44 }
  0x88   :  { %803 = vmatprep.subr.mxu0 %v652_v46 }
  0x89   :  { %804 = vmatpush2.msra.mxu0 %v651_v48 }
  0x8a   :  { %805 = vmatprep.subr.mxu0 %v650_v50 }
  0x8b   :  { %806 = vmatpush2.msra.mxu0 %v649_v52 }
  0x8c   :  { %807 = vmatprep.subr.mxu0 %v648_v54 }
  0x8d   :  { %808 = vmatpush2.msra.mxu0 %v647_v56 }
  0x8e   :  { %809 = vmatprep.subr.mxu0 %v646_v58 }
  0x8f   :  { %810 = vmatpush2.msra.mxu0 %v645_v60 }
 0x103   :  { %v297_v9 = vpop.f32.mrf.mxu0  ;;  %v404_v10 = vpop.f32.mrf.mxu1 }
 0x104   :  { %v298_v11 = vadd.f32 %v297_v9, %v4150_v5  ;;  %v405_v12 = vadd.f32 %v404_v10, %v4154_v6 }
 0x105   :  { %v299_v13 = vpop.f32.mrf.mxu0  ;;  %v406_v14 = vpop.f32.mrf.mxu1 }
 0x106   :  { %v2802_v15 = vmul.f32 -1.442695, %v298_v11  ;;  %v2804_v16 = vmul.f32 -1.442695, %v405_v12  ;;  %v300_v17 = vadd.f32 %v299_v13, %v4158_v7  ;;  %v407_v18 = vadd.f32 %v406_v14, %v4162_v8 }
 0x107   :  { %v303_v19 = vpop.f32.mrf.mxu0  ;;  %v410_v20 = vpop.f32.mrf.mxu1 }
 0x108   :  { %3136 = vpow2.f32 %v2802_v15  ;;  %v2803_v21 = vmul.f32 -1.442695, %v300_v17  ;;  %v2805_v22 = vmul.f32 -1.442695, %v407_v18  ;;  %v304_v23 = vadd.f32 %v303_v19, %v4150_v5 }
 0x109   :  { %3138 = vpow2.f32 %v2804_v16  ;;  %v411_v24 = vadd.f32 %v410_v20, %v4154_v6  ;;  %v305_v25 = vpop.f32.mrf.mxu0  ;;  %v412_v26 = vpop.f32.mrf.mxu1 }
 0x10a   :  { %3140 = vpow2.f32 %v2803_v21  ;;  %v2806_v27 = vmul.f32 -1.442695, %v304_v23  ;;  %v306_v28 = vadd.f32 %v305_v25, %v4158_v7  ;;  %v413_v29 = vadd.f32 %v412_v26, %v4162_v8 }
 0x10b   :  { %3142 = vpow2.f32 %v2805_v22  ;;  %v2808_v30 = vmul.f32 -1.442695, %v411_v24  ;;  %v309_v31 = vpop.f32.mrf.mxu0  ;;  %v416_v32 = vpop.f32.mrf.mxu1 }
 0x10c   :  { %3144 = vpow2.f32 %v2806_v27  ;;  %v2807_v33 = vmul.f32 -1.442695, %v306_v28  ;;  %v2809_v34 = vmul.f32 -1.442695, %v413_v29  ;;  %v310_v35 = vadd.f32 %v309_v31, %v4150_v5 }
 0x10d   :  { %3146 = vpow2.f32 %v2808_v30  ;;  %v417_v36 = vadd.f32 %v416_v32, %v4154_v6  ;;  %v311_v37 = vpop.f32.mrf.mxu0  ;;  %v418_v38 = vpop.f32.mrf.mxu1 }
 0x10e   :  { %3148 = vpow2.f32 %v2807_v33  ;;  %v2810_v39 = vmul.f32 -1.442695, %v310_v35  ;;  %v312_v40 = vadd.f32 %v311_v37, %v4158_v7  ;;  %v419_v41 = vadd.f32 %v418_v38, %v4162_v8 }
 0x10f   :  { %3150 = vpow2.f32 %v2809_v34  ;;  %v2812_v42 = vmul.f32 -1.442695, %v417_v36  ;;  %v315_v43 = vpop.f32.mrf.mxu0  ;;  %v422_v44 = vpop.f32.mrf.mxu1 }
 0x110   :  { %3152 = vpow2.f32 %v2810_v39  ;;  %v2811_v45 = vmul.f32 -1.442695, %v312_v40  ;;  %v2813_v46 = vmul.f32 -1.442695, %v419_v41  ;;  %v316_v47 = vadd.f32 %v315_v43, %v4150_v5 }
 0x111   :  { %3154 = vpow2.f32 %v2812_v42  ;;  %v423_v48 = vadd.f32 %v422_v44, %v4154_v6  ;;  %v317_v49 = vpop.f32.mrf.mxu0  ;;  %v424_v50 = vpop.f32.mrf.mxu1 }
 0x112   :  { %3156 = vpow2.f32 %v2811_v45  ;;  %v2814_v51 = vmul.f32 -1.442695, %v316_v47  ;;  %v318_v52 = vadd.f32 %v317_v49, %v4158_v7  ;;  %v425_v53 = vadd.f32 %v424_v50, %v4162_v8 }
 0x113   :  { %3158 = vpow2.f32 %v2813_v46  ;;  %v2816_v54 = vmul.f32 -1.442695, %v423_v48  ;;  %v321_v55 = vpop.f32.mrf.mxu0  ;;  %v428_v58 = vpop.f32.mrf.mxu1 }
 0x114   :  { %3160 = vpow2.f32 %v2814_v51  ;;  %v2815_v56 = vmul.f32 -1.442695, %v318_v52  ;;  %v2817_v57 = vmul.f32 -1.442695, %v425_v53  ;;  %v322_v32 = vadd.f32 %v321_v55, %v4150_v5 }
 0x115   :  { %v3137_v59 = vpop.eup %3136  ;;  %3162 = vpow2.f32 %v2816_v54  ;;  %v323_v9 = vpop.f32.mrf.mxu0  ;;  %v429_v36 = vadd.f32 %v428_v58, %v4154_v6 }
 0x116   :  { %v3139_v60 = vpop.eup %3138  ;;  %v529_v61 = vadd.f32 1.0, %v3137_v59  ;;  %3164 = vpow2.f32 %v2815_v56  ;;  %v430_v12 = vpop.f32.mrf.mxu1  ;;  %v324_v39 = vadd.f32 %v323_v9, %v4158_v7  ;;  %v2818_v46 = vmul.f32 -1.442695, %v322_v32 }
 0x117   :  { %v3141_v62 = vpop.eup %3140  ;;  %v531_v2 = vadd.f32 1.0, %v3139_v60  ;;  %3166 = vpow2.f32 %v2817_v57  ;;  %v327_v19 = vpop.f32.mrf.mxu0  ;;  %v431_v42 = vadd.f32 %v430_v12, %v4162_v8  ;;  %v2820_v51 = vmul.f32 -1.442695, %v429_v36 }
 0x118   :  { %v3143_v10 = vpop.eup %3142  ;;  %3168 = vrcp.f32 %v529_v61  ;;  %v530_v11 = vadd.f32 1.0, %v3141_v62  ;;  %v434_v22 = vpop.f32.mrf.mxu1  ;;  %v328_v47 = vadd.f32 %v327_v19, %v4150_v5  ;;  %v2819_v54 = vmul.f32 -1.442695, %v324_v39 }
 0x119   :  { %v3145_v13 = vpop.eup %3144  ;;  %3170 = vrcp.f32 %v531_v2  ;;  %v532_v14 = vadd.f32 1.0, %v3143_v10  ;;  %v329_v29 = vpop.f32.mrf.mxu0  ;;  %v435_v52 = vadd.f32 %v434_v22, %v4154_v6  ;;  %v2821_v57 = vmul.f32 -1.442695, %v431_v42 }
 0x11a   :  { %v3147_v15 = vpop.eup %3146  ;;  %3172 = vrcp.f32 %v530_v11  ;;  %v533_v16 = vadd.f32 1.0, %v3145_v13  ;;  %v436_v33 = vpop.f32.mrf.mxu1  ;;  %v330_v55 = vadd.f32 %v329_v29, %v4158_v7  ;;  %v2822_v61 = vmul.f32 -1.442695, %v328_v47 }
 0x11b   :  { %v3149_v17 = vpop.eup %3148  ;;  %3174 = vrcp.f32 %v532_v14  ;;  %v535_v18 = vadd.f32 1.0, %v3147_v15  ;;  %v333_v43 = vpop.f32.mrf.mxu0  ;;  %v437_v58 = vadd.f32 %v436_v33, %v4162_v8  ;;  %v2824_v10 = vmul.f32 -1.442695, %v435_v52 }
 0x11c   :  { %v3151_v20 = vpop.eup %3150  ;;  %3176 = vrcp.f32 %v533_v16  ;;  %v534_v21 = vadd.f32 1.0, %v3149_v17  ;;  %v440_v48 = vpop.f32.mrf.mxu1  ;;  %v334_v62 = vadd.f32 %v333_v43, %v4150_v5  ;;  %v2823_v13 = vmul.f32 -1.442695, %v330_v55 }
 0x11d   :  { %v3153_v23 = vpop.eup %3152  ;;  %3178 = vrcp.f32 %v535_v18  ;;  %v536_v24 = vadd.f32 1.0, %v3151_v20  ;;  %v335_v59 = vpop.f32.mrf.mxu0  ;;  %v441_v11 = vadd.f32 %v440_v48, %v4154_v6  ;;  %v2825_v16 = vmul.f32 -1.442695, %v437_v58 }
 0x11e   :  { %v3155_v25 = vpop.eup %3154  ;;  %3180 = vrcp.f32 %v534_v21  ;;  %v537_v26 = vadd.f32 1.0, %v3153_v23  ;;  %v442_v2 = vpop.f32.mrf.mxu1  ;;  %v336_v14 = vadd.f32 %v335_v59, %v4158_v7  ;;  %v2826_v18 = vmul.f32 -1.442695, %v334_v62 }
 0x11f   :  { %v3157_v27 = vpop.eup %3156  ;;  %3182 = vrcp.f32 %v536_v24  ;;  %v539_v28 = vadd.f32 1.0, %v3155_v25  ;;  %v443_v5 = vadd.f32 %v442_v2, %v4162_v8  ;;  %v2828_v6 = vmul.f32 -1.442695, %v441_v11 }
 0x120   :  { %v3159_v30 = vpop.eup %3158  ;;  %3184 = vrcp.f32 %v537_v26  ;;  %v538_v31 = vadd.f32 1.0, %v3157_v27  ;;  %v2827_v21 = vmul.f32 -1.442695, %v336_v14  ;;  %v3312_v2 = vmov 0.0  }
 0x121   :  { %v3161_v34 = vpop.eup %3160  ;;  %3186 = vrcp.f32 %v539_v28  ;;  %v540_v35 = vadd.f32 1.0, %v3159_v30  ;;  %v2829_v22 = vmul.f32 -1.442695, %v443_v5 }
 0x122   :  { %v3163_v37 = vpop.eup %3162  ;;  %3188 = vrcp.f32 %v538_v31  ;;  %v541_v38 = vadd.f32 1.0, %v3161_v34 }
 0x123   :  { %v3165_v40 = vpop.eup %3164  ;;  %3190 = vrcp.f32 %v540_v35  ;;  %v543_v41 = vadd.f32 1.0, %v3163_v37 }
 0x124   :  { %v3167_v44 = vpop.eup %3166  ;;  %3192 = vrcp.f32 %v541_v38  ;;  %v542_v45 = vadd.f32 1.0, %v3165_v40 }
 0x125   :  { %v3169_v49 = vpop.eup %3168  ;;  %3194 = vrcp.f32 %v543_v41  ;;  %v544_v50 = vadd.f32 1.0, %v3167_v44 }
 0x126   :  { %v3171_v53 = vpop.eup %3170  ;;  %3196 = vrcp.f32 %v542_v45 }
 0x127   :  { %v3173_v56 = vpop.eup %3172  ;;  %3198 = vrcp.f32 %v544_v50 }
 0x128   :  { %v3175_v60 = vpop.eup %3174  ;;  %3200 = vpow2.f32 %v2818_v46  ;;  %811 = vmatprep.mubr.f32.mxu0 %v3173_v56 }
 0x129   :  { %v3177_v9 = vpop.eup %3176  ;;  %3202 = vpow2.f32 %v2820_v51  ;;  %2830 = vmatprep.mubr.msk.f32.mxu1 %vm725_vm2, %v3175_v60  ;;  %812 = vmatmul.mubr.f32.vlgmr.msra.gmra.mxu0 %v3169_v49 }
 0x12a   :  { %v3179_v12 = vpop.eup %3178  ;;  %3204 = vpow2.f32 %v2819_v54  ;;  %919 = vmatmul.mubr.f32.vlgmr.msra.gmra.mxu1 %v3171_v53 }
 0x12b   :  { %v3181_v15 = vpop.eup %3180  ;;  %3206 = vpow2.f32 %v2821_v57 }
 0x12c   :  { %v3183_v17 = vpop.eup %3182  ;;  %3208 = vpow2.f32 %v2822_v61  ;;  %817 = vmatprep.mubr.f32.mxu0 %v3181_v15 }
 0x12d   :  { %v3185_v19 = vpop.eup %3184  ;;  %3210 = vpow2.f32 %v2824_v10  ;;  %2831 = vmatprep.mubr.msk.f32.mxu1 %vm725_vm2, %v3183_v17  ;;  %818 = vmatmul.mubr.f32.gmra.mxu0 %v3177_v9 }
 0x12e   :  { %v3187_v20 = vpop.eup %3186  ;;  %3212 = vpow2.f32 %v2823_v13  ;;  %925 = vmatmul.mubr.f32.gmra.mxu1 %v3179_v12 }
 0x12f   :  { %v3189_v7 = vpop.eup %3188  ;;  %3214 = vpow2.f32 %v2825_v16 }
 0x130   :  { %v3191_v23 = vpop.eup %3190  ;;  %3216 = vpow2.f32 %v2826_v18  ;;  %823 = vmatprep.mubr.f32.mxu0 %v3189_v7 }
 0x131   :  { %v3193_v8 = vpop.eup %3192  ;;  %3218 = vpow2.f32 %v2828_v6  ;;  %2832 = vmatprep.mubr.msk.f32.mxu1 %vm725_vm2, %v3191_v23  ;;  %824 = vmatmul.mubr.f32.gmra.mxu0 %v3185_v19 }
 0x132   :  { %v3195_v24 = vpop.eup %3194  ;;  %3220 = vpow2.f32 %v2827_v21  ;;  %931 = vmatmul.mubr.f32.gmra.mxu1 %v3187_v20 }
 0x133   :  { %v3197_v25 = vpop.eup %3196  ;;  %3222 = vpow2.f32 %v2829_v22 }
 0x134   :  { %v3199_v26 = vpop.eup %3198  ;;  %829 = vmatprep.mubr.f32.mxu0 %v3197_v25 }
 0x135   :  { %v3201_v27 = vpop.eup %3200  ;;  %2833 = vmatprep.mubr.msk.f32.mxu1 %vm725_vm2, %v3199_v26  ;;  %830 = vmatmul.mubr.f32.gmra.mxu0 %v3193_v8 }
 0x136   :  { %v3203_v28 = vpop.eup %3202  ;;  %v545_v29 = vadd.f32 1.0, %v3201_v27  ;;  %937 = vmatmul.mubr.f32.gmra.mxu1 %v3195_v24 }
 0x137   :  { %v3205_v30 = vpop.eup %3204  ;;  %v547_v32 = vadd.f32 1.0, %v3203_v28 }
 0x138   :  { %v3207_v31 = vpop.eup %3206  ;;  %v546_v33 = vadd.f32 1.0, %v3205_v30  ;;  %3224 = vrcp.f32 %v545_v29 }
 0x139   :  { %v3209_v34 = vpop.eup %3208  ;;  %v548_v35 = vadd.f32 1.0, %v3207_v31 }
 0x13a   :  { %v3211_v36 = vpop.eup %3210  ;;  %3226 = vrcp.f32 %v546_v33  ;;  %v549_v37 = vadd.f32 1.0, %v3209_v34 }
 0x13b   :  { %v3213_v38 = vpop.eup %3212  ;;  %3228 = vrcp.f32 %v548_v35  ;;  %v551_v40 = vadd.f32 1.0, %v3211_v36 }
 0x13c   :  { %v3215_v39 = vpop.eup %3214  ;;  %3230 = vrcp.f32 %v547_v32  ;;  %v550_v41 = vadd.f32 1.0, %v3213_v38 }
 0x13d   :  { %v3217_v42 = vpop.eup %3216  ;;  %3232 = vrcp.f32 %v549_v37  ;;  %v552_v43 = vadd.f32 1.0, %v3215_v39 }
 0x13e   :  { %v3219_v44 = vpop.eup %3218  ;;  %3234 = vrcp.f32 %v550_v41  ;;  %v553_v45 = vadd.f32 1.0, %v3217_v42 }
 0x13f   :  { %v3221_v46 = vpop.eup %3220  ;;  %3236 = vrcp.f32 %v552_v43  ;;  %v555_v48 = vadd.f32 1.0, %v3219_v44 }
 0x140   :  { %v3223_v47 = vpop.eup %3222  ;;  %3238 = vrcp.f32 %v551_v40  ;;  %v554_v49 = vadd.f32 1.0, %v3221_v46 }
 0x141   :  { %3240 = vrcp.f32 %v553_v45  ;;  %v556_v50 = vadd.f32 1.0, %v3223_v47  ;;  %v2841_v47 = vld [vmem:[%s5972_s4 + $0x20] sm:$0xff] }
 0x142   :  { %3242 = vrcp.f32 %v554_v49  ;;  %v961_v49 = vld [vmem:[%s5972_s4] sm:$0xff] }
 0x143   :  { %3244 = vrcp.f32 %v556_v50  ;;  %v2909_v50 = vld [vmem:[%s5973_s5 + $0x5e0] sm:$0xff] }
 0x144   :  { %3246 = vrcp.f32 %v555_v48  ;;  %v2910_v48 = vld [vmem:[%s5973_s5 + $0x5e8] sm:$0xff] }
 0x145   :  { %v3225_v51 = vpop.eup %3224 }
 0x147   :  { %v3227_v52 = vpop.eup %3226 }
 0x148   :  { %v3229_v53 = vpop.eup %3228  ;;  %835 = vmatprep.mubr.f32.mxu0 %v3227_v52  ;;  %v2906_v52 = vld [vmem:[%s5973_s5 + $0x5c8] sm:$0xff] }
 0x149   :  { %v3231_v54 = vpop.eup %3230  ;;  %2834 = vmatprep.mubr.msk.f32.mxu1 %vm725_vm2, %v3229_v53  ;;  %836 = vmatmul.mubr.f32.gmra.mxu0 %v3225_v51  ;;  %v2912_v51 = vld [vmem:[%s5973_s5 + $0x5f8] sm:$0xff]  ;;  %v2911_v53 = vld [vmem:[%s5973_s5 + $0x5f0] sm:$0xff] }
 0x14a   :  { %v3233_v55 = vpop.eup %3232  ;;  %943 = vmatmul.mubr.f32.gmra.mxu1 %v3231_v54  ;;  %v2905_v54 = vld [vmem:[%s5973_s5 + $0x5c0] sm:$0xff] }
 0x14b   :  { %v3235_v56 = vpop.eup %3234 }
 0x14c   :  { %v3237_v57 = vpop.eup %3236  ;;  %841 = vmatprep.mubr.f32.mxu0 %v3235_v56  ;;  %v2902_v56 = vld [vmem:[%s5973_s5 + $0x5a8] sm:$0xff] }
 0x14d   :  { %v3239_v58 = vpop.eup %3238  ;;  %2835 = vmatprep.mubr.msk.f32.mxu1 %vm725_vm2, %v3237_v57  ;;  %842 = vmatmul.mubr.f32.gmra.mxu0 %v3233_v55  ;;  %v2842_v55 = vld [vmem:[%s5972_s4 + $0x28] sm:$0xff]  ;;  %v2901_v57 = vld [vmem:[%s5973_s5 + $0x5a0] sm:$0xff] }
 0x14e   :  { %v3241_v59 = vpop.eup %3240  ;;  %949 = vmatmul.mubr.f32.gmra.mxu1 %v3239_v58  ;;  %v2908_v58 = vld [vmem:[%s5973_s5 + $0x5d8] sm:$0xff] }
 0x14f   :  { %v3243_v60 = vpop.eup %3242 }
 0x150   :  { %v3245_v61 = vpop.eup %3244  ;;  %847 = vmatprep.mubr.f32.mxu0 %v3243_v60  ;;  %v2907_v60 = vld [vmem:[%s5973_s5 + $0x5d0] sm:$0xff] }
 0x151   :  { %v3247_v62 = vpop.eup %3246  ;;  %2836 = vmatprep.mubr.msk.f32.mxu1 %vm725_vm2, %v3245_v61  ;;  %848 = vmatmul.mubr.f32.gmra.mxu0 %v3241_v59  ;;  %v2898_v59 = vld [vmem:[%s5973_s5 + $0x588] sm:$0xff]  ;;  %v2897_v61 = vld [vmem:[%s5973_s5 + $0x580] sm:$0xff] }
 0x152   :  { %955 = vmatmul.mubr.f32.gmra.mxu1 %v3247_v62  ;;  %1276 = vmatprep.mubr.f32.mxu0 %v3312_v2  ;;  %v2843_v62 = vld [vmem:[%s5972_s4 + $0x30] sm:$0xff] }
 0x153   :  { %1042 = vmatprep.mubr.f32.mxu1 %v3312_v2 }
 0x1e9   :  { %v4201_v9 = vpop.f32.mrf.mxu0 }
 0x1ea   :  { %v4203_v10 = vpop.f32.mrf.mxu1 }
 0x1eb   :  { %v815_v11 = vpop.f32.mrf.mxu0  ;;  %v4255_v46 = vadd.f32 %v4203_v10, %v4201_v9  ;;  %v2894_v9 = vld [vmem:[%s5973_s5 + $0x568] sm:$0xff]  ;;  %v2893_v10 = vld [vmem:[%s5973_s5 + $0x560] sm:$0xff] }
 0x1ec   :  { %v922_v12 = vpop.f32.mrf.mxu1 }
 0x1ed   :  { %v819_v13 = vpop.f32.mrf.mxu0  ;;  %v4249_v45 = vadd.f32 %v922_v12, %v815_v11  ;;  %v2904_v11 = vld [vmem:[%s5973_s5 + $0x5b8] sm:$0xff]  ;;  %v2890_v12 = vld [vmem:[%s5973_s5 + $0x548] sm:$0xff] }
 0x1ee   :  { %v926_v14 = vpop.f32.mrf.mxu1 }
 0x1ef   :  { %v821_v15 = vpop.f32.mrf.mxu0  ;;  %v4245_v44 = vadd.f32 %v926_v14, %v819_v13  ;;  %v2903_v13 = vld [vmem:[%s5973_s5 + $0x5b0] sm:$0xff]  ;;  %v2889_v14 = vld [vmem:[%s5973_s5 + $0x540] sm:$0xff] }
 0x1f0   :  { %v928_v16 = vpop.f32.mrf.mxu1 }
 0x1f1   :  { %v825_v5 = vpop.f32.mrf.mxu0  ;;  %v4241_v43 = vadd.f32 %v928_v16, %v821_v15  ;;  %v2844_v15 = vld [vmem:[%s5972_s4 + $0x38] sm:$0xff]  ;;  %v2886_v16 = vld [vmem:[%s5973_s5 + $0x528] sm:$0xff] }
 0x1f2   :  { %v932_v17 = vpop.f32.mrf.mxu1 }
 0x1f3   :  { %v827_v18 = vpop.f32.mrf.mxu0  ;;  %v4237_v42 = vadd.f32 %v932_v17, %v825_v5  ;;  %v2900_v5 = vld [vmem:[%s5973_s5 + $0x598] sm:$0xff]  ;;  %v2885_v17 = vld [vmem:[%s5973_s5 + $0x520] sm:$0xff] }
 0x1f4   :  { %v934_v19 = vpop.f32.mrf.mxu1 }
 0x1f5   :  { %v831_v6 = vpop.f32.mrf.mxu0  ;;  %v4233_v41 = vadd.f32 %v934_v19, %v827_v18  ;;  %v2899_v18 = vld [vmem:[%s5973_s5 + $0x590] sm:$0xff]  ;;  %v2882_v19 = vld [vmem:[%s5973_s5 + $0x508] sm:$0xff] }
 0x1f6   :  { %v938_v20 = vpop.f32.mrf.mxu1 }
 0x1f7   :  { %v833_v21 = vpop.f32.mrf.mxu0  ;;  %v4229_v40 = vadd.f32 %v938_v20, %v831_v6  ;;  %v2896_v6 = vld [vmem:[%s5973_s5 + $0x578] sm:$0xff]  ;;  %v2881_v20 = vld [vmem:[%s5973_s5 + $0x500] sm:$0xff] }
 0x1f8   :  { %v940_v7 = vpop.f32.mrf.mxu1 }
 0x1f9   :  { %v4225_v39 = vadd.f32 %v940_v7, %v833_v21  ;;  %v2895_v21 = vld [vmem:[%s5973_s5 + $0x570] sm:$0xff]  ;;  %v2878_v7 = vld [vmem:[%s5973_s5 + $0x4e8] sm:$0xff] }
 0x209   :  { %v837_v22 = vpop.f32.mrf.mxu0 }
 0x20a   :  { %v944_v23 = vpop.f32.mrf.mxu1 }
 0x20b   :  { %v839_v8 = vpop.f32.mrf.mxu0  ;;  %v4221_v38 = vadd.f32 %v944_v23, %v837_v22  ;;  %v2892_v22 = vld [vmem:[%s5973_s5 + $0x558] sm:$0xff]  ;;  %v2877_v23 = vld [vmem:[%s5973_s5 + $0x4e0] sm:$0xff] }
 0x20c   :  { %v946_v24 = vpop.f32.mrf.mxu1 }
 0x20d   :  { %v843_v25 = vpop.f32.mrf.mxu0  ;;  %v4217_v37 = vadd.f32 %v946_v24, %v839_v8  ;;  %v2891_v8 = vld [vmem:[%s5973_s5 + $0x550] sm:$0xff]  ;;  %v2874_v24 = vld [vmem:[%s5973_s5 + $0x4c8] sm:$0xff] }
 0x20e   :  { %v950_v26 = vpop.f32.mrf.mxu1 }
 0x20f   :  { %v845_v27 = vpop.f32.mrf.mxu0  ;;  %v4213_v36 = vadd.f32 %v950_v26, %v843_v25  ;;  %v2888_v25 = vld [vmem:[%s5973_s5 + $0x538] sm:$0xff]  ;;  %v2873_v26 = vld [vmem:[%s5973_s5 + $0x4c0] sm:$0xff] }
 0x210   :  { %v952_v28 = vpop.f32.mrf.mxu1 }
 0x211   :  { %v849_v29 = vpop.f32.mrf.mxu0  ;;  %v4209_v35 = vadd.f32 %v952_v28, %v845_v27  ;;  %v2887_v27 = vld [vmem:[%s5973_s5 + $0x530] sm:$0xff]  ;;  %v2870_v28 = vld [vmem:[%s5973_s5 + $0x4a8] sm:$0xff] }
 0x212   :  { %v956_v30 = vpop.f32.mrf.mxu1 }
 0x213   :  { %v851_v31 = vpop.f32.mrf.mxu0  ;;  %v4207_v34 = vadd.f32 %v956_v30, %v849_v29  ;;  %v2884_v29 = vld [vmem:[%s5973_s5 + $0x518] sm:$0xff]  ;;  %v2869_v30 = vld [vmem:[%s5973_s5 + $0x4a0] sm:$0xff] }
 0x214   :  { %v958_v32 = vpop.f32.mrf.mxu1 }
 0x215   :  { %v4205_v33 = vadd.f32 %v958_v32, %v851_v31  ;;  %v2883_v31 = vld [vmem:[%s5973_s5 + $0x510] sm:$0xff]  ;;  %v2866_v32 = vld [vmem:[%s5973_s5 + $0x488] sm:$0xff] }
 0x217   :  { %996 = vmatprep.subr.mxu1 %v4205_v33  ;;  %1230 = vmatprep.subr.mxu0 %v4205_v33 }
 0x218   :  { %997 = vmatpush1.msra.mxu1 %v4207_v34  ;;  %1231 = vmatpush1.msra.mxu0 %v4207_v34 }
 0x219   :  { %998 = vmatprep.subr.mxu1 %v4209_v35  ;;  %1232 = vmatprep.subr.mxu0 %v4209_v35 }
 0x21a   :  { %999 = vmatpush1.msra.mxu1 %v4213_v36  ;;  %1233 = vmatpush1.msra.mxu0 %v4213_v36 }
 0x21b   :  { %1000 = vmatprep.subr.mxu1 %v4217_v37  ;;  %1234 = vmatprep.subr.mxu0 %v4217_v37 }
 0x21c   :  { %1001 = vmatpush1.msra.mxu1 %v4221_v38  ;;  %1235 = vmatpush1.msra.mxu0 %v4221_v38 }
 0x21d   :  { %1002 = vmatprep.subr.mxu1 %v4225_v39  ;;  %1236 = vmatprep.subr.mxu0 %v4225_v39 }
 0x21e   :  { %1003 = vmatpush1.msra.mxu1 %v4229_v40  ;;  %1237 = vmatpush1.msra.mxu0 %v4229_v40 }
 0x21f   :  { %1004 = vmatprep.subr.mxu1 %v4233_v41  ;;  %1238 = vmatprep.subr.mxu0 %v4233_v41 }
 0x220   :  { %1005 = vmatpush1.msra.mxu1 %v4237_v42  ;;  %1239 = vmatpush1.msra.mxu0 %v4237_v42 }
 0x221   :  { %1006 = vmatprep.subr.mxu1 %v4241_v43  ;;  %1240 = vmatprep.subr.mxu0 %v4241_v43 }
 0x222   :  { %1007 = vmatpush1.msra.mxu1 %v4245_v44  ;;  %1241 = vmatpush1.msra.mxu0 %v4245_v44 }
 0x223   :  { %1008 = vmatprep.subr.mxu1 %v4249_v45  ;;  %1242 = vmatprep.subr.mxu0 %v4249_v45 }
 0x224   :  { %1009 = vmatpush1.msra.mxu1 %v4255_v46  ;;  %1243 = vmatpush1.msra.mxu0 %v4255_v46 }
 0x225   :  { %2845 = vmatmul.mubr.msk.f32.vlgmr.msra.gmra.mxu0 %vm965_vm3, %v2841_v47  ;;  %1430 = vmatprep.subr.mxu1 %v2910_v48  ;;  %v2880_v47 = vld [vmem:[%s5973_s5 + $0x4f8] sm:$0xff]  ;;  %v2865_v48 = vld [vmem:[%s5973_s5 + $0x480] sm:$0xff] }
 0x226   :  { %2837 = vmatmul.mubr.msk.f32.vlgmr.msra.gmra.mxu1 %vm965_vm3, %v961_v49  ;;  %1282 = vmatprep.mubr.f32.mxu0 %v3312_v2  ;;  %v2879_v49 = vld [vmem:[%s5973_s5 + $0x4f0] sm:$0xff] }
 0x227   :  { %1431 = vmatpush1.msra.mxu1 %v2909_v50  ;;  %1519 = vmatprep.subr.mxu0 %v2912_v51  ;;  %v2862_v50 = vld [vmem:[%s5973_s5 + $0x468] sm:$0xff]  ;;  %v2876_v51 = vld [vmem:[%s5973_s5 + $0x4d8] sm:$0xff] }
 0x228   :  { %1432 = vmatprep.subr.mxu1 %v2906_v52  ;;  %1520 = vmatpush1.msra.mxu0 %v2911_v53  ;;  %v2861_v52 = vld [vmem:[%s5973_s5 + $0x460] sm:$0xff]  ;;  %v2875_v53 = vld [vmem:[%s5973_s5 + $0x4d0] sm:$0xff] }
 0x229   :  { %1433 = vmatpush1.msra.mxu1 %v2905_v54  ;;  %2846 = vmatmul.mubr.msk.f32.gmra.mxu0 %vm965_vm3, %v2842_v55  ;;  %v2858_v54 = vld [vmem:[%s5973_s5 + $0x448] sm:$0xff]  ;;  %v2872_v55 = vld [vmem:[%s5973_s5 + $0x4b8] sm:$0xff] }
 0x22a   :  { %1434 = vmatprep.subr.mxu1 %v2902_v56  ;;  %1288 = vmatprep.mubr.f32.mxu0 %v3312_v2  ;;  %v2857_v56 = vld [vmem:[%s5973_s5 + $0x440] sm:$0xff] }
 0x22b   :  { %1435 = vmatpush1.msra.mxu1 %v2901_v57  ;;  %1521 = vmatprep.subr.mxu0 %v2908_v58  ;;  %v2871_v57 = vld [vmem:[%s5973_s5 + $0x4b0] sm:$0xff]  ;;  %v2854_v58 = vld [vmem:[%s5973_s5 + $0x428] sm:$0xff] }
 0x22c   :  { %1436 = vmatprep.subr.mxu1 %v2898_v59  ;;  %1522 = vmatpush1.msra.mxu0 %v2907_v60  ;;  %v2868_v59 = vld [vmem:[%s5973_s5 + $0x498] sm:$0xff]  ;;  %v2853_v60 = vld [vmem:[%s5973_s5 + $0x420] sm:$0xff] }
 0x22d   :  { %1437 = vmatpush1.msra.mxu1 %v2897_v61  ;;  %2847 = vmatmul.mubr.msk.f32.gmra.mxu0 %vm965_vm3, %v2843_v62  ;;  %v2867_v61 = vld [vmem:[%s5973_s5 + $0x490] sm:$0xff]  ;;  %v2850_v62 = vld [vmem:[%s5973_s5 + $0x408] sm:$0xff] }
 0x22e   :  { %1438 = vmatprep.subr.mxu1 %v2894_v9  ;;  %1294 = vmatprep.mubr.f32.mxu0 %v3312_v2  ;;  %v2864_v9 = vld [vmem:[%s5973_s5 + $0x478] sm:$0xff] }
 0x22f   :  { %1439 = vmatpush1.msra.mxu1 %v2893_v10  ;;  %1523 = vmatprep.subr.mxu0 %v2904_v11  ;;  %v2849_v10 = vld [vmem:[%s5973_s5 + $0x400] sm:$0xff]  ;;  %v2863_v11 = vld [vmem:[%s5973_s5 + $0x470] sm:$0xff] }
 0x230   :  { %1440 = vmatprep.subr.mxu1 %v2890_v12  ;;  %1524 = vmatpush1.msra.mxu0 %v2903_v13  ;;  %v2974_v12 = vld [vmem:[%s5973_s5 + $0x7e8] sm:$0xff]  ;;  %v2860_v13 = vld [vmem:[%s5973_s5 + $0x458] sm:$0xff] }
 0x231   :  { %1441 = vmatpush1.msra.mxu1 %v2889_v14  ;;  %2848 = vmatmul.mubr.msk.f32.gmra.mxu0 %vm965_vm3, %v2844_v15  ;;  %v2973_v14 = vld [vmem:[%s5973_s5 + $0x7e0] sm:$0xff]  ;;  %v2859_v15 = vld [vmem:[%s5973_s5 + $0x450] sm:$0xff] }
 0x232   :  { %1442 = vmatprep.subr.mxu1 %v2886_v16  ;;  %1525 = vmatprep.subr.mxu0 %v2900_v5  ;;  %v2970_v16 = vld [vmem:[%s5973_s5 + $0x7c8] sm:$0xff]  ;;  %v2856_v5 = vld [vmem:[%s5973_s5 + $0x438] sm:$0xff] }
 0x233   :  { %1443 = vmatpush1.msra.mxu1 %v2885_v17  ;;  %1526 = vmatpush1.msra.mxu0 %v2899_v18  ;;  %v2969_v17 = vld [vmem:[%s5973_s5 + $0x7c0] sm:$0xff]  ;;  %v2855_v18 = vld [vmem:[%s5973_s5 + $0x430] sm:$0xff] }
 0x234   :  { %1444 = vmatprep.subr.mxu1 %v2882_v19  ;;  %1527 = vmatprep.subr.mxu0 %v2896_v6  ;;  %v2966_v19 = vld [vmem:[%s5973_s5 + $0x7a8] sm:$0xff]  ;;  %v2852_v6 = vld [vmem:[%s5973_s5 + $0x418] sm:$0xff] }
 0x235   :  { %1445 = vmatpush1.msra.mxu1 %v2881_v20  ;;  %1528 = vmatpush1.msra.mxu0 %v2895_v21  ;;  %v2965_v20 = vld [vmem:[%s5973_s5 + $0x7a0] sm:$0xff]  ;;  %v2851_v21 = vld [vmem:[%s5973_s5 + $0x410] sm:$0xff] }
 0x236   :  { %1446 = vmatprep.subr.mxu1 %v2878_v7  ;;  %1529 = vmatprep.subr.mxu0 %v2892_v22  ;;  %v2962_v7 = vld [vmem:[%s5973_s5 + $0x788] sm:$0xff]  ;;  %v2976_v22 = vld [vmem:[%s5973_s5 + $0x7f8] sm:$0xff] }
 0x237   :  { %1447 = vmatpush1.msra.mxu1 %v2877_v23  ;;  %1530 = vmatpush1.msra.mxu0 %v2891_v8  ;;  %v2961_v23 = vld [vmem:[%s5973_s5 + $0x780] sm:$0xff]  ;;  %v2975_v8 = vld [vmem:[%s5973_s5 + $0x7f0] sm:$0xff] }
 0x238   :  { %1448 = vmatprep.subr.mxu1 %v2874_v24  ;;  %1531 = vmatprep.subr.mxu0 %v2888_v25  ;;  %v2958_v24 = vld [vmem:[%s5973_s5 + $0x768] sm:$0xff]  ;;  %v2972_v25 = vld [vmem:[%s5973_s5 + $0x7d8] sm:$0xff] }
 0x239   :  { %1449 = vmatpush1.msra.mxu1 %v2873_v26  ;;  %1532 = vmatpush1.msra.mxu0 %v2887_v27  ;;  %v2957_v26 = vld [vmem:[%s5973_s5 + $0x760] sm:$0xff]  ;;  %v2971_v27 = vld [vmem:[%s5973_s5 + $0x7d0] sm:$0xff] }
 0x23a   :  { %1450 = vmatprep.subr.mxu1 %v2870_v28  ;;  %1533 = vmatprep.subr.mxu0 %v2884_v29  ;;  %v2954_v28 = vld [vmem:[%s5973_s5 + $0x748] sm:$0xff]  ;;  %v2968_v29 = vld [vmem:[%s5973_s5 + $0x7b8] sm:$0xff] }
 0x23b   :  { %1451 = vmatpush1.msra.mxu1 %v2869_v30  ;;  %1534 = vmatpush1.msra.mxu0 %v2883_v31  ;;  %v2953_v30 = vld [vmem:[%s5973_s5 + $0x740] sm:$0xff]  ;;  %v2967_v31 = vld [vmem:[%s5973_s5 + $0x7b0] sm:$0xff] }
 0x23c   :  { %1452 = vmatprep.subr.mxu1 %v2866_v32  ;;  %1535 = vmatprep.subr.mxu0 %v2880_v47  ;;  %v2950_v32 = vld [vmem:[%s5973_s5 + $0x728] sm:$0xff]  ;;  %v2964_v47 = vld [vmem:[%s5973_s5 + $0x798] sm:$0xff] }
 0x23d   :  { %1453 = vmatpush1.msra.mxu1 %v2865_v48  ;;  %1536 = vmatpush1.msra.mxu0 %v2879_v49  ;;  %v2949_v48 = vld [vmem:[%s5973_s5 + $0x720] sm:$0xff]  ;;  %v2963_v49 = vld [vmem:[%s5973_s5 + $0x790] sm:$0xff] }
 0x23e   :  { %1454 = vmatprep.subr.mxu1 %v2862_v50  ;;  %1537 = vmatprep.subr.mxu0 %v2876_v51  ;;  %v2946_v50 = vld [vmem:[%s5973_s5 + $0x708] sm:$0xff]  ;;  %v2960_v51 = vld [vmem:[%s5973_s5 + $0x778] sm:$0xff] }
 0x23f   :  { %1455 = vmatpush1.msra.mxu1 %v2861_v52  ;;  %1538 = vmatpush1.msra.mxu0 %v2875_v53  ;;  %v2945_v52 = vld [vmem:[%s5973_s5 + $0x700] sm:$0xff]  ;;  %v2959_v53 = vld [vmem:[%s5973_s5 + $0x770] sm:$0xff] }
 0x240   :  { %1456 = vmatprep.subr.mxu1 %v2858_v54  ;;  %1539 = vmatprep.subr.mxu0 %v2872_v55  ;;  %v2942_v54 = vld [vmem:[%s5973_s5 + $0x6e8] sm:$0xff]  ;;  %v2956_v55 = vld [vmem:[%s5973_s5 + $0x758] sm:$0xff] }
 0x241   :  { %1457 = vmatpush1.msra.mxu1 %v2857_v56  ;;  %1540 = vmatpush1.msra.mxu0 %v2871_v57  ;;  %v2941_v56 = vld [vmem:[%s5973_s5 + $0x6e0] sm:$0xff]  ;;  %v2955_v57 = vld [vmem:[%s5973_s5 + $0x750] sm:$0xff] }
 0x242   :  { %1458 = vmatprep.subr.mxu1 %v2854_v58  ;;  %1541 = vmatprep.subr.mxu0 %v2868_v59  ;;  %v2938_v58 = vld [vmem:[%s5973_s5 + $0x6c8] sm:$0xff]  ;;  %v2952_v59 = vld [vmem:[%s5973_s5 + $0x738] sm:$0xff] }
 0x243   :  { %1459 = vmatpush1.msra.mxu1 %v2853_v60  ;;  %1542 = vmatpush1.msra.mxu0 %v2867_v61  ;;  %v2937_v60 = vld [vmem:[%s5973_s5 + $0x6c0] sm:$0xff]  ;;  %v2951_v61 = vld [vmem:[%s5973_s5 + $0x730] sm:$0xff] }
 0x244   :  { %1460 = vmatprep.subr.mxu1 %v2850_v62  ;;  %1543 = vmatprep.subr.mxu0 %v2864_v9  ;;  %v2934_v62 = vld [vmem:[%s5973_s5 + $0x6a8] sm:$0xff]  ;;  %v2948_v9 = vld [vmem:[%s5973_s5 + $0x718] sm:$0xff] }
 0x245   :  { %1461 = vmatpush1.msra.mxu1 %v2849_v10  ;;  %1544 = vmatpush1.msra.mxu0 %v2863_v11  ;;  %v2933_v10 = vld [vmem:[%s5973_s5 + $0x6a0] sm:$0xff]  ;;  %v2947_v11 = vld [vmem:[%s5973_s5 + $0x710] sm:$0xff] }
 0x246   :  { %1462 = vmatprep.subr.mxu1 %v2974_v12  ;;  %1545 = vmatprep.subr.mxu0 %v2860_v13  ;;  %v2930_v12 = vld [vmem:[%s5973_s5 + $0x688] sm:$0xff]  ;;  %v2944_v13 = vld [vmem:[%s5973_s5 + $0x6f8] sm:$0xff] }
 0x247   :  { %1463 = vmatpush2.msra.mxu1 %v2973_v14  ;;  %1546 = vmatpush1.msra.mxu0 %v2859_v15  ;;  %v2929_v14 = vld [vmem:[%s5973_s5 + $0x680] sm:$0xff]  ;;  %v2943_v15 = vld [vmem:[%s5973_s5 + $0x6f0] sm:$0xff] }
 0x248   :  { %1464 = vmatprep.subr.mxu1 %v2970_v16  ;;  %1547 = vmatprep.subr.mxu0 %v2856_v5  ;;  %v2926_v16 = vld [vmem:[%s5973_s5 + $0x668] sm:$0xff]  ;;  %v2925_v5 = vld [vmem:[%s5973_s5 + $0x660] sm:$0xff] }
 0x249   :  { %1465 = vmatpush2.msra.mxu1 %v2969_v17  ;;  %1548 = vmatpush1.msra.mxu0 %v2855_v18  ;;  %v2940_v17 = vld [vmem:[%s5973_s5 + $0x6d8] sm:$0xff]  ;;  %v2922_v18 = vld [vmem:[%s5973_s5 + $0x648] sm:$0xff] }
 0x24a   :  { %1466 = vmatprep.subr.mxu1 %v2966_v19  ;;  %1549 = vmatprep.subr.mxu0 %v2852_v6  ;;  %v962_v19 = vld [vmem:[%s5972_s4 + $0x8] sm:$0xff]  ;;  %v2921_v6 = vld [vmem:[%s5973_s5 + $0x640] sm:$0xff] }
 0x24b   :  { %1467 = vmatpush2.msra.mxu1 %v2965_v20  ;;  %1550 = vmatpush1.msra.mxu0 %v2851_v21  ;;  %v2939_v20 = vld [vmem:[%s5973_s5 + $0x6d0] sm:$0xff]  ;;  %v2918_v21 = vld [vmem:[%s5973_s5 + $0x628] sm:$0xff] }
 0x24c   :  { %1468 = vmatprep.subr.mxu1 %v2962_v7  ;;  %1551 = vmatprep.subr.mxu0 %v2976_v22  ;;  %v2936_v7 = vld [vmem:[%s5973_s5 + $0x6b8] sm:$0xff]  ;;  %v2917_v22 = vld [vmem:[%s5973_s5 + $0x620] sm:$0xff] }
 0x24d   :  { %1469 = vmatpush2.msra.mxu1 %v2961_v23  ;;  %1552 = vmatpush2.msra.mxu0 %v2975_v8  ;;  %v2935_v23 = vld [vmem:[%s5973_s5 + $0x6b0] sm:$0xff]  ;;  %v2914_v8 = vld [vmem:[%s5973_s5 + $0x608] sm:$0xff] }
 0x24e   :  { %1470 = vmatprep.subr.mxu1 %v2958_v24  ;;  %1553 = vmatprep.subr.mxu0 %v2972_v25  ;;  %v2913_v24 = vld [vmem:[%s5973_s5 + $0x600] sm:$0xff]  ;;  %v2932_v25 = vld [vmem:[%s5973_s5 + $0x698] sm:$0xff] }
 0x24f   :  { %1471 = vmatpush2.msra.mxu1 %v2957_v26  ;;  %1554 = vmatpush2.msra.mxu0 %v2971_v27  ;;  %v963_v26 = vld [vmem:[%s5972_s4 + $0x10] sm:$0xff] }
 0x250   :  { %1472 = vmatprep.subr.mxu1 %v2954_v28  ;;  %1555 = vmatprep.subr.mxu0 %v2968_v29  ;;  %v2931_v27 = vld [vmem:[%s5973_s5 + $0x690] sm:$0xff]  ;;  %v2928_v28 = vld [vmem:[%s5973_s5 + $0x678] sm:$0xff] }
 0x251   :  { %1473 = vmatpush2.msra.mxu1 %v2953_v30  ;;  %1556 = vmatpush2.msra.mxu0 %v2967_v31  ;;  %v2927_v29 = vld [vmem:[%s5973_s5 + $0x670] sm:$0xff]  ;;  %v2924_v30 = vld [vmem:[%s5973_s5 + $0x658] sm:$0xff] }
 0x252   :  { %1474 = vmatprep.subr.mxu1 %v2950_v32  ;;  %1557 = vmatprep.subr.mxu0 %v2964_v47  ;;  %v964_v31 = vld [vmem:[%s5972_s4 + $0x18] sm:$0xff]  ;;  %v2919_v47 = vld [vmem:[%s5973_s5 + $0x630] sm:$0xff] }
 0x253   :  { %1475 = vmatpush2.msra.mxu1 %v2949_v48  ;;  %1558 = vmatpush2.msra.mxu0 %v2963_v49  ;;  %v2920_v32 = vld [vmem:[%s5973_s5 + $0x638] sm:$0xff]  ;;  %v2915_v49 = vld [vmem:[%s5973_s5 + $0x610] sm:$0xff] }
 0x254   :  { %1476 = vmatprep.subr.mxu1 %v2946_v50  ;;  %1559 = vmatprep.subr.mxu0 %v2960_v51  ;;  %v2916_v48 = vld [vmem:[%s5973_s5 + $0x618] sm:$0xff]  ;;  %v3046_v50 = vld [vmem:[%s5973_s5 + $0x9e8] sm:$0xff] }
 0x255   :  { %1477 = vmatpush2.msra.mxu1 %v2945_v52  ;;  %1560 = vmatpush2.msra.mxu0 %v2959_v53  ;;  %v3045_v53 = vld [vmem:[%s5973_s5 + $0x9e0] sm:$0xff] }
 0x256   :  { %1478 = vmatprep.subr.mxu1 %v2942_v54  ;;  %1561 = vmatprep.subr.mxu0 %v2956_v55  ;;  %v3042_v54 = vld [vmem:[%s5973_s5 + $0x9c8] sm:$0xff] }
 0x257   :  { %1479 = vmatpush2.msra.mxu1 %v2941_v56  ;;  %1562 = vmatpush2.msra.mxu0 %v2955_v57 }
 0x258   :  { %1480 = vmatprep.subr.mxu1 %v2938_v58  ;;  %1563 = vmatprep.subr.mxu0 %v2952_v59  ;;  %v3039_v59 = vld [vmem:[%s5973_s5 + $0x9b0] sm:$0xff] }
 0x259   :  { %1481 = vmatpush2.msra.mxu1 %v2937_v60  ;;  %1564 = vmatpush2.msra.mxu0 %v2951_v61  ;;  %v3036_v60 = vld [vmem:[%s5973_s5 + $0x998] sm:$0xff]  ;;  %v3033_v61 = vld [vmem:[%s5973_s5 + $0x980] sm:$0xff] }
 0x25a   :  { %1482 = vmatprep.subr.mxu1 %v2934_v62  ;;  %1565 = vmatprep.subr.mxu0 %v2948_v9  ;;  %v3035_v62 = vld [vmem:[%s5973_s5 + $0x990] sm:$0xff]  ;;  %v3030_v9 = vld [vmem:[%s5973_s5 + $0x968] sm:$0xff] }
 0x25b   :  { %1483 = vmatpush2.msra.mxu1 %v2933_v10  ;;  %1566 = vmatpush2.msra.mxu0 %v2947_v11  ;;  %v2979_v10 = vld [vmem:[%s5972_s4 + $0x50] sm:$0xff]  ;;  %v3032_v11 = vld [vmem:[%s5973_s5 + $0x978] sm:$0xff] }
 0x25c   :  { %1484 = vmatprep.subr.mxu1 %v2930_v12  ;;  %1567 = vmatprep.subr.mxu0 %v2944_v13  ;;  %v3029_v12 = vld [vmem:[%s5973_s5 + $0x960] sm:$0xff]  ;;  %v3031_v13 = vld [vmem:[%s5973_s5 + $0x970] sm:$0xff] }
 0x25d   :  { %1485 = vmatpush2.msra.mxu1 %v2929_v14  ;;  %1568 = vmatpush2.msra.mxu0 %v2943_v15  ;;  %v3026_v14 = vld [vmem:[%s5973_s5 + $0x948] sm:$0xff]  ;;  %v3028_v15 = vld [vmem:[%s5973_s5 + $0x958] sm:$0xff] }
 0x25e   :  { %1486 = vmatprep.subr.mxu1 %v2926_v16  ;;  %1048 = vmatprep.mubr.f32.mxu1 %v3312_v2  ;;  %v3025_v16 = vld [vmem:[%s5973_s5 + $0x940] sm:$0xff] }
 0x25f   :  { %1487 = vmatpush2.msra.mxu1 %v2925_v5  ;;  %1569 = vmatprep.subr.mxu0 %v2940_v17  ;;  %v2980_v5 = vld [vmem:[%s5972_s4 + $0x58] sm:$0xff]  ;;  %v3022_v17 = vld [vmem:[%s5973_s5 + $0x928] sm:$0xff] }
 0x260   :  { %1488 = vmatprep.subr.mxu1 %v2922_v18  ;;  %2838 = vmatmul.mubr.msk.f32.gmra.mxu1 %vm965_vm3, %v962_v19  ;;  %v3027_v18 = vld [vmem:[%s5973_s5 + $0x950] sm:$0xff]  ;;  %v3021_v19 = vld [vmem:[%s5973_s5 + $0x920] sm:$0xff] }
 0x261   :  { %1489 = vmatpush2.msra.mxu1 %v2921_v6  ;;  %1570 = vmatpush2.msra.mxu0 %v2939_v20  ;;  %v3024_v6 = vld [vmem:[%s5973_s5 + $0x938] sm:$0xff]  ;;  %v3018_v20 = vld [vmem:[%s5973_s5 + $0x908] sm:$0xff] }
 0x262   :  { %1490 = vmatprep.subr.mxu1 %v2918_v21  ;;  %1571 = vmatprep.subr.mxu0 %v2936_v7  ;;  %v3023_v21 = vld [vmem:[%s5973_s5 + $0x930] sm:$0xff]  ;;  %v3017_v7 = vld [vmem:[%s5973_s5 + $0x900] sm:$0xff] }
 0x263   :  { %1491 = vmatpush2.msra.mxu1 %v2917_v22  ;;  %1572 = vmatpush2.msra.mxu0 %v2935_v23  ;;  %v3020_v22 = vld [vmem:[%s5973_s5 + $0x918] sm:$0xff]  ;;  %v3014_v23 = vld [vmem:[%s5973_s5 + $0x8e8] sm:$0xff] }
 0x264   :  { %1492 = vmatprep.subr.mxu1 %v2914_v8  ;;  %1054 = vmatprep.mubr.f32.mxu1 %v3312_v2  ;;  %v3019_v8 = vld [vmem:[%s5973_s5 + $0x910] sm:$0xff] }
 0x265   :  { %1493 = vmatpush2.msra.mxu1 %v2913_v24  ;;  %1573 = vmatprep.subr.mxu0 %v2932_v25  ;;  %v3013_v24 = vld [vmem:[%s5973_s5 + $0x8e0] sm:$0xff]  ;;  %v3016_v25 = vld [vmem:[%s5973_s5 + $0x8f8] sm:$0xff] }
 0x266   :  { %1643 = vmatprep.subr.mxu1 %v4205_v33  ;;  %2839 = vmatmul.mubr.msk.f32.gmra.mxu1 %vm965_vm3, %v963_v26  ;;  %v2923_v33 = vld [vmem:[%s5973_s5 + $0x650] sm:$0xff]  ;;  %v3010_v26 = vld [vmem:[%s5973_s5 + $0x8c8] sm:$0xff] }
 0x267   :  { %1574 = vmatpush2.msra.mxu0 %v2931_v27  ;;  %1060 = vmatprep.mubr.f32.mxu1 %v3312_v2  ;;  %v3015_v27 = vld [vmem:[%s5973_s5 + $0x8f0] sm:$0xff] }
 0x268   :  { %1575 = vmatprep.subr.mxu0 %v2928_v28  ;;  %v3009_v28 = vld [vmem:[%s5973_s5 + $0x8c0] sm:$0xff] }
 0x269   :  { %1576 = vmatpush2.msra.mxu0 %v2927_v29  ;;  %v3012_v29 = vld [vmem:[%s5973_s5 + $0x8d8] sm:$0xff] }
 0x26a   :  { %1577 = vmatprep.subr.mxu0 %v2924_v30  ;;  %2840 = vmatmul.mubr.msk.f32.gmra.mxu1 %vm965_vm3, %v964_v31  ;;  %v3006_v30 = vld [vmem:[%s5973_s5 + $0x8a8] sm:$0xff]  ;;  %v3011_v31 = vld [vmem:[%s5973_s5 + $0x8d0] sm:$0xff] }
 0x26b   :  { %1578 = vmatpush2.msra.mxu0 %v2923_v33  ;;  %v3005_v33 = vld [vmem:[%s5973_s5 + $0x8a0] sm:$0xff] }
 0x26c   :  { %1579 = vmatprep.subr.mxu0 %v2920_v32  ;;  %v3008_v32 = vld [vmem:[%s5973_s5 + $0x8b8] sm:$0xff] }
 0x26d   :  { %1580 = vmatpush2.msra.mxu0 %v2919_v47  ;;  %v3002_v47 = vld [vmem:[%s5973_s5 + $0x888] sm:$0xff] }
 0x26e   :  { %1581 = vmatprep.subr.mxu0 %v2916_v48  ;;  %v3007_v48 = vld [vmem:[%s5973_s5 + $0x8b0] sm:$0xff] }
 0x26f   :  { %1582 = vmatpush2.msra.mxu0 %v2915_v49  ;;  %v3001_v49 = vld [vmem:[%s5973_s5 + $0x880] sm:$0xff] }
 0x270   :  { %1843 = vmatprep.subr.mxu0 %v3046_v50  ;;  %v3004_v50 = vld [vmem:[%s5973_s5 + $0x898] sm:$0xff] }
 0x2e5   :  { %v1278_v51 = vpop.f32.mrf.mxu0 }
 0x2e7   :  { %v1280_v52 = vpop.f32.mrf.mxu0 }
 0x2e8   :  { %1494 = vmatprep.mubr.f32.mxu1 %v1280_v52  ;;  %1583 = vmatprep.mubr.f32.mxu0 %v1280_v52  ;;  %v3003_v52 = vld [vmem:[%s5973_s5 + $0x890] sm:$0xff] }
 0x2e9   :  { %v1284_v55 = vpop.f32.mrf.mxu0  ;;  %1495 = vmatmul.mubr.f32.vlgmr.msra.gmra.mxu1 %v1278_v51  ;;  %1584 = vmatmul.mubr.f32.vlgmr.msra.gmra.mxu0 %v1278_v51  ;;  %v2998_v51 = vld [vmem:[%s5973_s5 + $0x868] sm:$0xff] }
 0x2ea   :  { %1644 = vmatpush1.msra.mxu1 %v4207_v34  ;;  %1844 = vmatpush1.msra.mxu0 %v3045_v53  ;;  %v2997_v53 = vld [vmem:[%s5973_s5 + $0x860] sm:$0xff] }
 0x2eb   :  { %1645 = vmatprep.subr.mxu1 %v4209_v35  ;;  %v1286_v56 = vpop.f32.mrf.mxu0  ;;  %1845 = vmatprep.subr.mxu0 %v3042_v54  ;;  %v3000_v54 = vld [vmem:[%s5973_s5 + $0x878] sm:$0xff] }
 0x2ec   :  { %1646 = vmatpush1.msra.mxu1 %v4213_v36  ;;  %1500 = vmatprep.mubr.f32.mxu1 %v1286_v56  ;;  %v3048_v36 = vld [vmem:[%s5973_s5 + $0x9f8] sm:$0xff] }
 0x2ed   :  { %1647 = vmatprep.subr.mxu1 %v4217_v37  ;;  %v1290_v57 = vpop.f32.mrf.mxu0  ;;  %1501 = vmatmul.mubr.f32.gmra.mxu1 %v1284_v55  ;;  %v3041_v37 = vld [vmem:[%s5973_s5 + $0x9c0] sm:$0xff] }
 0x2ee   :  { %1589 = vmatprep.mubr.f32.mxu0 %v1286_v56  ;;  %1648 = vmatpush1.msra.mxu1 %v4221_v38  ;;  %v2977_v38 = vld [vmem:[%s5972_s4 + $0x40] sm:$0xff]  ;;  %v2999_v56 = vld [vmem:[%s5973_s5 + $0x870] sm:$0xff] }
 0x2ef   :  { %1590 = vmatmul.mubr.f32.gmra.mxu0 %v1284_v55  ;;  %1649 = vmatprep.subr.mxu1 %v4225_v39  ;;  %v1292_v58 = vpop.f32.mrf.mxu0  ;;  %v3038_v39 = vld [vmem:[%s5973_s5 + $0x9a8] sm:$0xff] }
 0x2f0   :  { %1650 = vmatpush1.msra.mxu1 %v4229_v40  ;;  %1506 = vmatprep.mubr.f32.mxu1 %v1292_v58  ;;  %v3047_v40 = vld [vmem:[%s5973_s5 + $0x9f0] sm:$0xff]  ;;  %v2994_v55 = vld [vmem:[%s5973_s5 + $0x848] sm:$0xff] }
 0x2f1   :  { %1651 = vmatprep.subr.mxu1 %v4233_v41  ;;  %v1296_v34 = vpop.f32.mrf.mxu0  ;;  %1507 = vmatmul.mubr.f32.gmra.mxu1 %v1290_v57  ;;  %v3044_v41 = vld [vmem:[%s5973_s5 + $0x9d8] sm:$0xff] }
 0x2f2   :  { %1595 = vmatprep.mubr.f32.mxu0 %v1292_v58  ;;  %1652 = vmatpush1.msra.mxu1 %v4237_v42  ;;  %v3037_v42 = vld [vmem:[%s5973_s5 + $0x9a0] sm:$0xff]  ;;  %v2996_v58 = vld [vmem:[%s5973_s5 + $0x858] sm:$0xff] }
 0x2f3   :  { %1596 = vmatmul.mubr.f32.gmra.mxu0 %v1290_v57  ;;  %1653 = vmatprep.subr.mxu1 %v4241_v43  ;;  %v1298_v35 = vpop.f32.mrf.mxu0  ;;  %v3043_v43 = vld [vmem:[%s5973_s5 + $0x9d0] sm:$0xff]  ;;  %v2993_v57 = vld [vmem:[%s5973_s5 + $0x840] sm:$0xff] }
 0x2f4   :  { %1654 = vmatpush1.msra.mxu1 %v4245_v44  ;;  %1512 = vmatprep.mubr.f32.mxu1 %v1298_v35  ;;  %v3034_v44 = vld [vmem:[%s5973_s5 + $0x988] sm:$0xff] }
 0x2f5   :  { %1655 = vmatprep.subr.mxu1 %v4249_v45  ;;  %1513 = vmatmul.mubr.f32.gmra.mxu1 %v1296_v34  ;;  %v2978_v45 = vld [vmem:[%s5972_s4 + $0x48] sm:$0xff] }
 0x2f6   :  { %1601 = vmatprep.mubr.f32.mxu0 %v1298_v35  ;;  %1656 = vmatpush1.msra.mxu1 %v4255_v46  ;;  %v3040_v46 = vld [vmem:[%s5973_s5 + $0x9b8] sm:$0xff]  ;;  %v2995_v35 = vld [vmem:[%s5973_s5 + $0x850] sm:$0xff] }
 0x2f7   :  { %1602 = vmatmul.mubr.f32.gmra.mxu0 %v1296_v34  ;;  %1689 = vmatprep.mubr.f32.mxu1 %v3312_v2  ;;  %v2990_v34 = vld [vmem:[%s5973_s5 + $0x828] sm:$0xff] }
 0x2f8   :  { %1932 = vmatprep.subr.mxu1 %v3048_v36  ;;  %1846 = vmatpush1.msra.mxu0 %v3041_v37  ;;  %v2989_v36 = vld [vmem:[%s5973_s5 + $0x820] sm:$0xff]  ;;  %v2992_v37 = vld [vmem:[%s5973_s5 + $0x838] sm:$0xff] }
 0x2f9   :  { %2981 = vmatmul.mubr.msk.f32.vlgmr.msra.gmra.mxu1 %vm965_vm3, %v2977_v38  ;;  %1847 = vmatprep.subr.mxu0 %v3038_v39  ;;  %v2986_v38 = vld [vmem:[%s5973_s5 + $0x808] sm:$0xff]  ;;  %v2991_v39 = vld [vmem:[%s5973_s5 + $0x830] sm:$0xff] }
 0x2fa   :  { %1695 = vmatprep.mubr.f32.mxu1 %v3312_v2  ;;  %1933 = vmatpush1.msra.mxu1 %v3047_v40  ;;  %v2985_v40 = vld [vmem:[%s5973_s5 + $0x800] sm:$0xff] }
 0x2fb   :  { %1934 = vmatprep.subr.mxu1 %v3044_v41  ;;  %1848 = vmatpush1.msra.mxu0 %v3037_v42  ;;  %v2988_v41 = vld [vmem:[%s5973_s5 + $0x818] sm:$0xff]  ;;  %v3110_v42 = vld [vmem:[%s5973_s5 + $0xbe8] sm:$0xff] }
 0x2fc   :  { %1935 = vmatpush1.msra.mxu1 %v3043_v43  ;;  %1849 = vmatprep.subr.mxu0 %v3034_v44  ;;  %v2987_v43 = vld [vmem:[%s5973_s5 + $0x810] sm:$0xff]  ;;  %v3109_v44 = vld [vmem:[%s5973_s5 + $0xbe0] sm:$0xff] }
 0x2fd   :  { %2982 = vmatmul.mubr.msk.f32.gmra.mxu1 %vm965_vm3, %v2978_v45  ;;  %1936 = vmatprep.subr.mxu1 %v3040_v46  ;;  %v3112_v45 = vld [vmem:[%s5973_s5 + $0xbf8] sm:$0xff]  ;;  %v3106_v46 = vld [vmem:[%s5973_s5 + $0xbc8] sm:$0xff] }
 0x2fe   :  { %1701 = vmatprep.mubr.f32.mxu1 %v3312_v2  ;;  %1937 = vmatpush1.msra.mxu1 %v3039_v59  ;;  %v3111_v59 = vld [vmem:[%s5973_s5 + $0xbf0] sm:$0xff] }
 0x2ff   :  { %1938 = vmatprep.subr.mxu1 %v3036_v60  ;;  %1850 = vmatpush1.msra.mxu0 %v3033_v61  ;;  %v3105_v60 = vld [vmem:[%s5973_s5 + $0xbc0] sm:$0xff]  ;;  %v3108_v61 = vld [vmem:[%s5973_s5 + $0xbd8] sm:$0xff] }
 0x300   :  { %1939 = vmatpush1.msra.mxu1 %v3035_v62  ;;  %1851 = vmatprep.subr.mxu0 %v3030_v9  ;;  %v3102_v62 = vld [vmem:[%s5973_s5 + $0xba8] sm:$0xff]  ;;  %v3107_v9 = vld [vmem:[%s5973_s5 + $0xbd0] sm:$0xff] }
 0x301   :  { %2983 = vmatmul.mubr.msk.f32.gmra.mxu1 %vm965_vm3, %v2979_v10  ;;  %1940 = vmatprep.subr.mxu1 %v3032_v11  ;;  %v3101_v10 = vld [vmem:[%s5973_s5 + $0xba0] sm:$0xff]  ;;  %v3104_v11 = vld [vmem:[%s5973_s5 + $0xbb8] sm:$0xff] }
 0x302   :  { %1707 = vmatprep.mubr.f32.mxu1 %v3312_v2  ;;  %1852 = vmatpush1.msra.mxu0 %v3029_v12  ;;  %v3098_v12 = vld [vmem:[%s5973_s5 + $0xb88] sm:$0xff] }
 0x303   :  { %1941 = vmatpush1.msra.mxu1 %v3031_v13  ;;  %1853 = vmatprep.subr.mxu0 %v3026_v14  ;;  %v3103_v13 = vld [vmem:[%s5973_s5 + $0xbb0] sm:$0xff]  ;;  %v3097_v14 = vld [vmem:[%s5973_s5 + $0xb80] sm:$0xff] }
 0x304   :  { %1942 = vmatprep.subr.mxu1 %v3028_v15  ;;  %1854 = vmatpush1.msra.mxu0 %v3025_v16  ;;  %v3100_v15 = vld [vmem:[%s5973_s5 + $0xb98] sm:$0xff]  ;;  %v3094_v16 = vld [vmem:[%s5973_s5 + $0xb68] sm:$0xff] }
 0x305   :  { %2984 = vmatmul.mubr.msk.f32.gmra.mxu1 %vm965_vm3, %v2980_v5  ;;  %1855 = vmatprep.subr.mxu0 %v3022_v17  ;;  %v3099_v5 = vld [vmem:[%s5973_s5 + $0xb90] sm:$0xff]  ;;  %v3093_v17 = vld [vmem:[%s5973_s5 + $0xb60] sm:$0xff] }
 0x306   :  { %1943 = vmatpush1.msra.mxu1 %v3027_v18  ;;  %1856 = vmatpush1.msra.mxu0 %v3021_v19  ;;  %v3096_v18 = vld [vmem:[%s5973_s5 + $0xb78] sm:$0xff]  ;;  %v3090_v19 = vld [vmem:[%s5973_s5 + $0xb48] sm:$0xff] }
 0x307   :  { %1944 = vmatprep.subr.mxu1 %v3024_v6  ;;  %1857 = vmatprep.subr.mxu0 %v3018_v20  ;;  %v3095_v6 = vld [vmem:[%s5973_s5 + $0xb70] sm:$0xff]  ;;  %v3089_v20 = vld [vmem:[%s5973_s5 + $0xb40] sm:$0xff] }
 0x308   :  { %1945 = vmatpush1.msra.mxu1 %v3023_v21  ;;  %1858 = vmatpush1.msra.mxu0 %v3017_v7  ;;  %v3092_v21 = vld [vmem:[%s5973_s5 + $0xb58] sm:$0xff]  ;;  %v3086_v7 = vld [vmem:[%s5973_s5 + $0xb28] sm:$0xff] }
 0x309   :  { %1946 = vmatprep.subr.mxu1 %v3020_v22  ;;  %1859 = vmatprep.subr.mxu0 %v3014_v23  ;;  %v3091_v22 = vld [vmem:[%s5973_s5 + $0xb50] sm:$0xff]  ;;  %v3088_v23 = vld [vmem:[%s5973_s5 + $0xb38] sm:$0xff] }
 0x30a   :  { %1947 = vmatpush1.msra.mxu1 %v3019_v8  ;;  %1860 = vmatpush1.msra.mxu0 %v3013_v24  ;;  %v3085_v8 = vld [vmem:[%s5973_s5 + $0xb20] sm:$0xff]  ;;  %v3087_v24 = vld [vmem:[%s5973_s5 + $0xb30] sm:$0xff] }
 0x30b   :  { %1948 = vmatprep.subr.mxu1 %v3016_v25  ;;  %1861 = vmatprep.subr.mxu0 %v3010_v26  ;;  %v3082_v25 = vld [vmem:[%s5973_s5 + $0xb08] sm:$0xff]  ;;  %v3084_v26 = vld [vmem:[%s5973_s5 + $0xb18] sm:$0xff] }
 0x30c   :  { %1949 = vmatpush1.msra.mxu1 %v3015_v27  ;;  %1862 = vmatpush1.msra.mxu0 %v3009_v28  ;;  %v3081_v27 = vld [vmem:[%s5973_s5 + $0xb00] sm:$0xff]  ;;  %v3083_v28 = vld [vmem:[%s5973_s5 + $0xb10] sm:$0xff] }
 0x30d   :  { %1950 = vmatprep.subr.mxu1 %v3012_v29  ;;  %1863 = vmatprep.subr.mxu0 %v3006_v30  ;;  %v3078_v29 = vld [vmem:[%s5973_s5 + $0xae8] sm:$0xff]  ;;  %v3080_v30 = vld [vmem:[%s5973_s5 + $0xaf8] sm:$0xff] }
 0x30e   :  { %1951 = vmatpush1.msra.mxu1 %v3011_v31  ;;  %1864 = vmatpush1.msra.mxu0 %v3005_v33  ;;  %v3077_v31 = vld [vmem:[%s5973_s5 + $0xae0] sm:$0xff]  ;;  %v3079_v33 = vld [vmem:[%s5973_s5 + $0xaf0] sm:$0xff] }
 0x30f   :  { %1952 = vmatprep.subr.mxu1 %v3008_v32  ;;  %1865 = vmatprep.subr.mxu0 %v3002_v47  ;;  %v3074_v32 = vld [vmem:[%s5973_s5 + $0xac8] sm:$0xff]  ;;  %v3076_v47 = vld [vmem:[%s5973_s5 + $0xad8] sm:$0xff] }
 0x310   :  { %1953 = vmatpush1.msra.mxu1 %v3007_v48  ;;  %1866 = vmatpush1.msra.mxu0 %v3001_v49  ;;  %v3073_v48 = vld [vmem:[%s5973_s5 + $0xac0] sm:$0xff]  ;;  %v3075_v49 = vld [vmem:[%s5973_s5 + $0xad0] sm:$0xff] }
 0x311   :  { %1954 = vmatprep.subr.mxu1 %v3004_v50  ;;  %1867 = vmatprep.subr.mxu0 %v2998_v51  ;;  %v3070_v50 = vld [vmem:[%s5973_s5 + $0xaa8] sm:$0xff]  ;;  %v3072_v51 = vld [vmem:[%s5973_s5 + $0xab8] sm:$0xff] }
 0x312   :  { %1955 = vmatpush1.msra.mxu1 %v3003_v52  ;;  %1868 = vmatpush1.msra.mxu0 %v2997_v53  ;;  %v3069_v52 = vld [vmem:[%s5973_s5 + $0xaa0] sm:$0xff]  ;;  %v3071_v53 = vld [vmem:[%s5973_s5 + $0xab0] sm:$0xff] }
 0x313   :  { %1956 = vmatprep.subr.mxu1 %v3000_v54  ;;  %1869 = vmatprep.subr.mxu0 %v2994_v55  ;;  %v3066_v54 = vld [vmem:[%s5973_s5 + $0xa88] sm:$0xff]  ;;  %v3068_v55 = vld [vmem:[%s5973_s5 + $0xa98] sm:$0xff] }
 0x314   :  { %1957 = vmatpush1.msra.mxu1 %v2999_v56  ;;  %1870 = vmatpush1.msra.mxu0 %v2993_v57  ;;  %v3065_v56 = vld [vmem:[%s5973_s5 + $0xa80] sm:$0xff]  ;;  %v3067_v57 = vld [vmem:[%s5973_s5 + $0xa90] sm:$0xff] }
 0x315   :  { %1958 = vmatprep.subr.mxu1 %v2996_v58  ;;  %1871 = vmatprep.subr.mxu0 %v2990_v34  ;;  %v3062_v58 = vld [vmem:[%s5973_s5 + $0xa68] sm:$0xff]  ;;  %v3064_v34 = vld [vmem:[%s5973_s5 + $0xa78] sm:$0xff] }
 0x316   :  { %1959 = vmatpush1.msra.mxu1 %v2995_v35  ;;  %1872 = vmatpush1.msra.mxu0 %v2989_v36  ;;  %v3061_v35 = vld [vmem:[%s5973_s5 + $0xa60] sm:$0xff]  ;;  %v3063_v36 = vld [vmem:[%s5973_s5 + $0xa70] sm:$0xff] }
 0x317   :  { %1960 = vmatprep.subr.mxu1 %v2992_v37  ;;  %1873 = vmatprep.subr.mxu0 %v2986_v38  ;;  %v3058_v37 = vld [vmem:[%s5973_s5 + $0xa48] sm:$0xff]  ;;  %v3060_v38 = vld [vmem:[%s5973_s5 + $0xa58] sm:$0xff] }
 0x318   :  { %1961 = vmatpush1.msra.mxu1 %v2991_v39  ;;  %1874 = vmatpush1.msra.mxu0 %v2985_v40  ;;  %v3057_v39 = vld [vmem:[%s5973_s5 + $0xa40] sm:$0xff]  ;;  %v3059_v40 = vld [vmem:[%s5973_s5 + $0xa50] sm:$0xff] }
 0x319   :  { %1962 = vmatprep.subr.mxu1 %v2988_v41  ;;  %1875 = vmatprep.subr.mxu0 %v3110_v42  ;;  %v3054_v41 = vld [vmem:[%s5973_s5 + $0xa28] sm:$0xff]  ;;  %v3056_v42 = vld [vmem:[%s5973_s5 + $0xa38] sm:$0xff] }
 0x31a   :  { %1963 = vmatpush1.msra.mxu1 %v2987_v43  ;;  %1876 = vmatpush2.msra.mxu0 %v3109_v44  ;;  %v3053_v43 = vld [vmem:[%s5973_s5 + $0xa20] sm:$0xff]  ;;  %v3055_v44 = vld [vmem:[%s5973_s5 + $0xa30] sm:$0xff] }
 0x31b   :  { %1964 = vmatprep.subr.mxu1 %v3112_v45  ;;  %1877 = vmatprep.subr.mxu0 %v3106_v46  ;;  %v3050_v45 = vld [vmem:[%s5973_s5 + $0xa08] sm:$0xff]  ;;  %v3052_v46 = vld [vmem:[%s5973_s5 + $0xa18] sm:$0xff] }
 0x31c   :  { %1965 = vmatpush2.msra.mxu1 %v3111_v59  ;;  %1878 = vmatpush2.msra.mxu0 %v3105_v60  ;;  %v3049_v59 = vld [vmem:[%s5973_s5 + $0xa00] sm:$0xff]  ;;  %v3051_v60 = vld [vmem:[%s5973_s5 + $0xa10] sm:$0xff] }
 0x31d   :  { %1966 = vmatprep.subr.mxu1 %v3108_v61  ;;  %1879 = vmatprep.subr.mxu0 %v3102_v62  ;;  %v1128_v61 = vld [vmem:[%s5973_s5 + $0x1e8] sm:$0xff]  ;;  %v1130_v62 = vld [vmem:[%s5973_s5 + $0x1f8] sm:$0xff] }
 0x31e   :  { %1967 = vmatpush2.msra.mxu1 %v3107_v9  ;;  %1880 = vmatpush2.msra.mxu0 %v3101_v10  ;;  %v5109_v9 = vpop.f32.mrf.mxu1 }
 0x31f   :  { %1968 = vmatprep.subr.mxu1 %v3104_v11  ;;  %1881 = vmatprep.subr.mxu0 %v3098_v12 }
 0x320   :  { %1969 = vmatpush2.msra.mxu1 %v3103_v13  ;;  %1882 = vmatpush2.msra.mxu0 %v3097_v14  ;;  %v5111_v10 = vpop.f32.mrf.mxu1 }
 0x321   :  { %1970 = vmatprep.subr.mxu1 %v3100_v15  ;;  %1883 = vmatprep.subr.mxu0 %v3094_v16 }
 0x322   :  { %1971 = vmatpush2.msra.mxu1 %v3099_v5  ;;  %1884 = vmatpush2.msra.mxu0 %v3093_v17  ;;  %v5113_v11 = vpop.f32.mrf.mxu1 }
 0x323   :  { %1972 = vmatprep.subr.mxu1 %v3096_v18  ;;  %1885 = vmatprep.subr.mxu0 %v3090_v19 }
 0x324   :  { %1973 = vmatpush2.msra.mxu1 %v3095_v6  ;;  %1886 = vmatpush2.msra.mxu0 %v3089_v20  ;;  %v5115_v12 = vpop.f32.mrf.mxu1 }
 0x325   :  { %1974 = vmatprep.subr.mxu1 %v3092_v21  ;;  %1887 = vmatprep.subr.mxu0 %v3086_v7 }
 0x326   :  { %1975 = vmatpush2.msra.mxu1 %v3091_v22  ;;  %1888 = vmatpush2.msra.mxu0 %v3085_v8  ;;  %v5117_v13 = vpop.f32.mrf.mxu1  ;;  %v1127_v8 = vld [vmem:[%s5973_s5 + $0x1e0] sm:$0xff] }
 0x327   :  { %1976 = vmatprep.subr.mxu1 %v3088_v23  ;;  %1889 = vmatprep.subr.mxu0 %v3082_v25  ;;  %v1124_v25 = vld [vmem:[%s5973_s5 + $0x1c8] sm:$0xff] }
 0x328   :  { %1977 = vmatpush2.msra.mxu1 %v3087_v24  ;;  %1890 = vmatpush2.msra.mxu0 %v3081_v27  ;;  %v5119_v14 = vpop.f32.mrf.mxu1  ;;  %v1129_v24 = vld [vmem:[%s5973_s5 + $0x1f0] sm:$0xff] }
 0x329   :  { %1978 = vmatprep.subr.mxu1 %v3084_v26  ;;  %1891 = vmatprep.subr.mxu0 %v3078_v29  ;;  %v1126_v26 = vld [vmem:[%s5973_s5 + $0x1d8] sm:$0xff]  ;;  %v1125_v29 = vld [vmem:[%s5973_s5 + $0x1d0] sm:$0xff] }
 0x32a   :  { %1979 = vmatpush2.msra.mxu1 %v3083_v28  ;;  %1892 = vmatpush2.msra.mxu0 %v3077_v31  ;;  %v5121_v15 = vpop.f32.mrf.mxu1  ;;  %v1123_v28 = vld [vmem:[%s5973_s5 + $0x1c0] sm:$0xff]  ;;  %v1120_v31 = vld [vmem:[%s5973_s5 + $0x1a8] sm:$0xff] }
 0x32b   :  { %1980 = vmatprep.subr.mxu1 %v3080_v30  ;;  %1893 = vmatprep.subr.mxu0 %v3074_v32 }
 0x32c   :  { %1981 = vmatpush2.msra.mxu1 %v3079_v33  ;;  %1894 = vmatpush2.msra.mxu0 %v3073_v48  ;;  %v5123_v16 = vpop.f32.mrf.mxu1  ;;  %v1122_v33 = vld [vmem:[%s5973_s5 + $0x1b8] sm:$0xff]  ;;  %v1121_v48 = vld [vmem:[%s5973_s5 + $0x1b0] sm:$0xff] }
 0x32d   :  { %1982 = vmatprep.subr.mxu1 %v3076_v47  ;;  %1895 = vmatprep.subr.mxu0 %v3070_v50  ;;  %v1119_v47 = vld [vmem:[%s5973_s5 + $0x1a0] sm:$0xff]  ;;  %v1118_v50 = vld [vmem:[%s5973_s5 + $0x198] sm:$0xff] }
 0x32e   :  { %1983 = vmatpush2.msra.mxu1 %v3075_v49  ;;  %1896 = vmatpush2.msra.mxu0 %v3069_v52  ;;  %v1116_v49 = vld [vmem:[%s5973_s5 + $0x188] sm:$0xff]  ;;  %v1115_v52 = vld [vmem:[%s5973_s5 + $0x180] sm:$0xff] }
 0x32f   :  { %1984 = vmatprep.subr.mxu1 %v3072_v51  ;;  %1897 = vmatprep.subr.mxu0 %v3066_v54  ;;  %v1112_v54 = vld [vmem:[%s5973_s5 + $0x168] sm:$0xff] }
 0x330   :  { %1985 = vmatpush2.msra.mxu1 %v3071_v53  ;;  %1898 = vmatpush2.msra.mxu0 %v3065_v56  ;;  %v1117_v53 = vld [vmem:[%s5973_s5 + $0x190] sm:$0xff] }
 0x331   :  { %1986 = vmatprep.subr.mxu1 %v3068_v55  ;;  %1899 = vmatprep.subr.mxu0 %v3062_v58  ;;  %v1114_v55 = vld [vmem:[%s5973_s5 + $0x178] sm:$0xff]  ;;  %v1113_v58 = vld [vmem:[%s5973_s5 + $0x170] sm:$0xff] }
 0x332   :  { %1987 = vmatpush2.msra.mxu1 %v3067_v57  ;;  %1900 = vmatpush2.msra.mxu0 %v3061_v35  ;;  %v1111_v57 = vld [vmem:[%s5973_s5 + $0x160] sm:$0xff]  ;;  %v1110_v35 = vld [vmem:[%s5973_s5 + $0x158] sm:$0xff] }
 0x333   :  { %1988 = vmatprep.subr.mxu1 %v3064_v34  ;;  %1901 = vmatprep.subr.mxu0 %v3058_v37  ;;  %v1108_v34 = vld [vmem:[%s5973_s5 + $0x148] sm:$0xff]  ;;  %v1109_v37 = vld [vmem:[%s5973_s5 + $0x150] sm:$0xff] }
 0x334   :  { %1989 = vmatpush2.msra.mxu1 %v3063_v36  ;;  %1902 = vmatpush2.msra.mxu0 %v3057_v39  ;;  %v1107_v36 = vld [vmem:[%s5973_s5 + $0x140] sm:$0xff]  ;;  %v1104_v39 = vld [vmem:[%s5973_s5 + $0x128] sm:$0xff] }
 0x335   :  { %1990 = vmatprep.subr.mxu1 %v3060_v38  ;;  %1903 = vmatprep.subr.mxu0 %v3054_v41  ;;  %v1103_v41 = vld [vmem:[%s5973_s5 + $0x120] sm:$0xff] }
 0x336   :  { %1991 = vmatpush2.msra.mxu1 %v3059_v40  ;;  %1904 = vmatpush2.msra.mxu0 %v3053_v43  ;;  %v1106_v40 = vld [vmem:[%s5973_s5 + $0x138] sm:$0xff]  ;;  %v1100_v43 = vld [vmem:[%s5973_s5 + $0x108] sm:$0xff] }
 0x337   :  { %1992 = vmatprep.subr.mxu1 %v3056_v42  ;;  %1905 = vmatprep.subr.mxu0 %v3050_v45  ;;  %v1105_v42 = vld [vmem:[%s5973_s5 + $0x130] sm:$0xff]  ;;  %v1099_v45 = vld [vmem:[%s5973_s5 + $0x100] sm:$0xff] }
 0x338   :  { %1993 = vmatpush2.msra.mxu1 %v3055_v44  ;;  %1906 = vmatpush2.msra.mxu0 %v3049_v59  ;;  %v1102_v44 = vld [vmem:[%s5973_s5 + $0x118] sm:$0xff]  ;;  %v1096_v59 = vld [vmem:[%s5973_s5 + $0xe8] sm:$0xff] }
 0x339   :  { %1994 = vmatprep.subr.mxu1 %v3052_v46  ;;  %2021 = vmatprep.subr.mxu0 %v1128_v61  ;;  %v1101_v46 = vld [vmem:[%s5973_s5 + $0x110] sm:$0xff]  ;;  %v1095_v61 = vld [vmem:[%s5973_s5 + $0xe0] sm:$0xff] }
 0x33a   :  { %1995 = vmatpush2.msra.mxu1 %v3051_v60  ;;  %v1098_v60 = vld [vmem:[%s5973_s5 + $0xf8] sm:$0xff] }
 0x33b   :  { %2110 = vmatprep.subr.mxu1 %v1130_v62  ;;  %v1097_v62 = vld [vmem:[%s5973_s5 + $0xf0] sm:$0xff] }
 0x3a9   :  { %v5125_v5 = vpop.f32.mrf.mxu1 }
 0x3ab   :  { %v5127_v17 = vpop.f32.mrf.mxu1 }
 0x3ad   :  { %v5129_v18 = vpop.f32.mrf.mxu1 }
 0x3af   :  { %v5131_v19 = vpop.f32.mrf.mxu1 }
 0x3b1   :  { %v5133_v6 = vpop.f32.mrf.mxu1 }
 0x3b3   :  { %v5135_v20 = vpop.f32.mrf.mxu1 }
 0x3b5   :  { %v5137_v21 = vpop.f32.mrf.mxu1 }
 0x3b7   :  { %v5139_v7 = vpop.f32.mrf.mxu1 }
 0x3b9   :  { %v1691_v22 = vpop.f32.mrf.mxu1 }
 0x3bb   :  { %v1693_v23 = vpop.f32.mrf.mxu1 }
 0x3bc   :  { %1907 = vmatprep.mubr.f32.mxu0 %v1693_v23  ;;  %1996 = vmatprep.mubr.f32.mxu1 %v1693_v23  ;;  %v1094_v23 = vld [vmem:[%s5973_s5 + $0xd8] sm:$0xff] }
 0x3bd   :  { %v1697_v27 = vpop.f32.mrf.mxu1  ;;  %1908 = vmatmul.mubr.f32.vlgmr.msra.gmra.mxu0 %v1691_v22  ;;  %1997 = vmatmul.mubr.f32.vlgmr.msra.gmra.mxu1 %v1691_v22  ;;  %v1092_v22 = vld [vmem:[%s5973_s5 + $0xc8] sm:$0xff] }
 0x3be   :  { %2022 = vmatpush1.msra.mxu0 %v1127_v8  ;;  %2111 = vmatpush1.msra.mxu1 %v1129_v24  ;;  %v1093_v8 = vld [vmem:[%s5973_s5 + $0xd0] sm:$0xff]  ;;  %v1088_v24 = vld [vmem:[%s5973_s5 + $0xa8] sm:$0xff] }
 0x3bf   :  { %2023 = vmatprep.subr.mxu0 %v1124_v25  ;;  %2112 = vmatprep.subr.mxu1 %v1126_v26  ;;  %v1699_v30 = vpop.f32.mrf.mxu1  ;;  %v1090_v25 = vld [vmem:[%s5973_s5 + $0xb8] sm:$0xff]  ;;  %v1087_v26 = vld [vmem:[%s5973_s5 + $0xa0] sm:$0xff] }
 0x3c0   :  { %2024 = vmatpush1.msra.mxu0 %v1123_v28  ;;  %2113 = vmatpush1.msra.mxu1 %v1125_v29  ;;  %v1084_v28 = vld [vmem:[%s5973_s5 + $0x88] sm:$0xff]  ;;  %v1086_v29 = vld [vmem:[%s5973_s5 + $0x98] sm:$0xff] }
 0x3c1   :  { %1913 = vmatprep.mubr.f32.mxu0 %v1699_v30  ;;  %2002 = vmatprep.mubr.f32.mxu1 %v1699_v30  ;;  %v1703_v32 = vpop.f32.mrf.mxu1  ;;  %v1083_v30 = vld [vmem:[%s5973_s5 + $0x80] sm:$0xff] }
 0x3c2   :  { %2025 = vmatprep.subr.mxu0 %v1120_v31  ;;  %2114 = vmatprep.subr.mxu1 %v1122_v33  ;;  %v1085_v31 = vld [vmem:[%s5973_s5 + $0x90] sm:$0xff]  ;;  %v1080_v33 = vld [vmem:[%s5973_s5 + $0x68] sm:$0xff] }
 0x3c3   :  { %1914 = vmatmul.mubr.f32.gmra.mxu0 %v1697_v27  ;;  %2003 = vmatmul.mubr.f32.gmra.mxu1 %v1697_v27  ;;  %v1705_v51 = vpop.f32.mrf.mxu1  ;;  %v1089_v27 = vld [vmem:[%s5973_s5 + $0xb0] sm:$0xff] }
 0x3c4   :  { %2026 = vmatpush1.msra.mxu0 %v1119_v47  ;;  %2115 = vmatpush1.msra.mxu1 %v1121_v48  ;;  %v1079_v47 = vld [vmem:[%s5973_s5 + $0x60] sm:$0xff]  ;;  %v1081_v48 = vld [vmem:[%s5973_s5 + $0x70] sm:$0xff] }
 0x3c5   :  { %2027 = vmatprep.subr.mxu0 %v1116_v49  ;;  %2116 = vmatprep.subr.mxu1 %v1118_v50  ;;  %v1709_v56 = vpop.f32.mrf.mxu1  ;;  %v1076_v49 = vld [vmem:[%s5973_s5 + $0x48] sm:$0xff]  ;;  %v1078_v50 = vld [vmem:[%s5973_s5 + $0x58] sm:$0xff] }
 0x3c6   :  { %2028 = vmatpush1.msra.mxu0 %v1115_v52  ;;  %2117 = vmatpush1.msra.mxu1 %v1117_v53  ;;  %v1077_v52 = vld [vmem:[%s5973_s5 + $0x50] sm:$0xff]  ;;  %v1072_v53 = vld [vmem:[%s5973_s5 + $0x28] sm:$0xff] }
 0x3c7   :  { %1919 = vmatprep.mubr.f32.mxu0 %v1705_v51  ;;  %2008 = vmatprep.mubr.f32.mxu1 %v1705_v51  ;;  %v1711_v38 = vpop.f32.mrf.mxu1  ;;  %v1075_v51 = vld [vmem:[%s5973_s5 + $0x40] sm:$0xff] }
 0x3c8   :  { %2029 = vmatprep.subr.mxu0 %v1112_v54  ;;  %2118 = vmatprep.subr.mxu1 %v1114_v55  ;;  %v1074_v54 = vld [vmem:[%s5973_s5 + $0x38] sm:$0xff]  ;;  %v1071_v55 = vld [vmem:[%s5973_s5 + $0x20] sm:$0xff] }
 0x3c9   :  { %1920 = vmatmul.mubr.f32.gmra.mxu0 %v1703_v32  ;;  %2009 = vmatmul.mubr.f32.gmra.mxu1 %v1703_v32  ;;  %v1082_v32 = vld [vmem:[%s5973_s5 + $0x78] sm:$0xff] }
 0x3ca   :  { %2030 = vmatpush1.msra.mxu0 %v1111_v57  ;;  %2119 = vmatpush1.msra.mxu1 %v1113_v58  ;;  %v1068_v57 = vld [vmem:[%s5973_s5 + $0x8] sm:$0xff]  ;;  %v1070_v58 = vld [vmem:[%s5973_s5 + $0x18] sm:$0xff] }
 0x3cb   :  { %2031 = vmatprep.subr.mxu0 %v1108_v34  ;;  %2120 = vmatprep.subr.mxu1 %v1110_v35  ;;  %v1067_v34 = vld [vmem:[%s5973_s5] sm:$0xff]  ;;  %v1069_v35 = vld [vmem:[%s5973_s5 + $0x10] sm:$0xff] }
 0x3cc   :  { %2032 = vmatpush1.msra.mxu0 %v1107_v36  ;;  %2121 = vmatpush1.msra.mxu1 %v1109_v37  ;;  %v1192_v36 = vld [vmem:[%s5973_s5 + $0x3e8] sm:$0xff]  ;;  %v1194_v37 = vld [vmem:[%s5973_s5 + $0x3f8] sm:$0xff] }
 0x3cd   :  { %1925 = vmatprep.mubr.f32.mxu0 %v1711_v38  ;;  %2014 = vmatprep.mubr.f32.mxu1 %v1711_v38  ;;  %v1191_v38 = vld [vmem:[%s5973_s5 + $0x3e0] sm:$0xff] }
 0x3ce   :  { %2033 = vmatprep.subr.mxu0 %v1104_v39  ;;  %2122 = vmatprep.subr.mxu1 %v1106_v40  ;;  %v1193_v39 = vld [vmem:[%s5973_s5 + $0x3f0] sm:$0xff]  ;;  %v1188_v40 = vld [vmem:[%s5973_s5 + $0x3c8] sm:$0xff] }
 0x3cf   :  { %1926 = vmatmul.mubr.f32.gmra.mxu0 %v1709_v56  ;;  %2015 = vmatmul.mubr.f32.gmra.mxu1 %v1709_v56  ;;  %v1073_v56 = vld [vmem:[%s5973_s5 + $0x30] sm:$0xff] }
 0x3d0   :  { %2034 = vmatpush1.msra.mxu0 %v1103_v41  ;;  %2123 = vmatpush1.msra.mxu1 %v1105_v42  ;;  %v1190_v41 = vld [vmem:[%s5973_s5 + $0x3d8] sm:$0xff]  ;;  %v1187_v42 = vld [vmem:[%s5973_s5 + $0x3c0] sm:$0xff] }
 0x3d1   :  { %2035 = vmatprep.subr.mxu0 %v1100_v43  ;;  %2085 = vmatprep.mubr.f32.mxu0 %v5111_v10  ;;  %v1189_v43 = vld [vmem:[%s5973_s5 + $0x3d0] sm:$0xff] }
 0x3d2   :  { %2124 = vmatprep.subr.mxu1 %v1102_v44  ;;  %2174 = vmatprep.mubr.f32.mxu1 %v5111_v10  ;;  %v1091_v10 = vld [vmem:[%s5973_s5 + $0xc0] sm:$0xff]  ;;  %v1184_v44 = vld [vmem:[%s5973_s5 + $0x3a8] sm:$0xff] }
 0x3d3   :  { %2036 = vmatpush1.msra.mxu0 %v1099_v45  ;;  %2125 = vmatpush1.msra.mxu1 %v1101_v46  ;;  %v1186_v45 = vld [vmem:[%s5973_s5 + $0x3b8] sm:$0xff]  ;;  %v1183_v46 = vld [vmem:[%s5973_s5 + $0x3a0] sm:$0xff] }
 0x3d4   :  { %2037 = vmatprep.subr.mxu0 %v1096_v59  ;;  %2126 = vmatprep.subr.mxu1 %v1098_v60  ;;  %v1185_v59 = vld [vmem:[%s5973_s5 + $0x3b0] sm:$0xff]  ;;  %v1180_v60 = vld [vmem:[%s5973_s5 + $0x388] sm:$0xff] }
 0x3d5   :  { %2038 = vmatpush1.msra.mxu0 %v1095_v61  ;;  %2127 = vmatpush1.msra.mxu1 %v1097_v62  ;;  %v1182_v61 = vld [vmem:[%s5973_s5 + $0x398] sm:$0xff]  ;;  %v1179_v62 = vld [vmem:[%s5973_s5 + $0x380] sm:$0xff] }
 0x3d6   :  { %2039 = vmatprep.subr.mxu0 %v1092_v22  ;;  %2128 = vmatprep.subr.mxu1 %v1094_v23  ;;  %v1181_v22 = vld [vmem:[%s5973_s5 + $0x390] sm:$0xff]  ;;  %v1176_v23 = vld [vmem:[%s5973_s5 + $0x368] sm:$0xff] }
 0x3d7   :  { %2040 = vmatpush1.msra.mxu0 %v1091_v10  ;;  %2129 = vmatpush1.msra.mxu1 %v1093_v8  ;;  %v1178_v10 = vld [vmem:[%s5973_s5 + $0x378] sm:$0xff]  ;;  %v1175_v8 = vld [vmem:[%s5973_s5 + $0x360] sm:$0xff] }
 0x3d8   :  { %2041 = vmatprep.subr.mxu0 %v1088_v24  ;;  %2130 = vmatprep.subr.mxu1 %v1090_v25  ;;  %v1177_v24 = vld [vmem:[%s5973_s5 + $0x370] sm:$0xff]  ;;  %v1172_v25 = vld [vmem:[%s5973_s5 + $0x348] sm:$0xff] }
 0x3d9   :  { %2042 = vmatpush1.msra.mxu0 %v1087_v26  ;;  %2131 = vmatpush1.msra.mxu1 %v1089_v27  ;;  %v1174_v26 = vld [vmem:[%s5973_s5 + $0x358] sm:$0xff]  ;;  %v1171_v27 = vld [vmem:[%s5973_s5 + $0x340] sm:$0xff] }
 0x3da   :  { %2043 = vmatprep.subr.mxu0 %v1084_v28  ;;  %2132 = vmatprep.subr.mxu1 %v1086_v29  ;;  %v1173_v28 = vld [vmem:[%s5973_s5 + $0x350] sm:$0xff]  ;;  %v1168_v29 = vld [vmem:[%s5973_s5 + $0x328] sm:$0xff] }
 0x3db   :  { %2044 = vmatpush1.msra.mxu0 %v1083_v30  ;;  %2133 = vmatpush1.msra.mxu1 %v1085_v31  ;;  %v1170_v30 = vld [vmem:[%s5973_s5 + $0x338] sm:$0xff]  ;;  %v1167_v31 = vld [vmem:[%s5973_s5 + $0x320] sm:$0xff] }
 0x3dc   :  { %2045 = vmatprep.subr.mxu0 %v1080_v33  ;;  %2134 = vmatprep.subr.mxu1 %v1082_v32  ;;  %v1169_v33 = vld [vmem:[%s5973_s5 + $0x330] sm:$0xff]  ;;  %v1164_v32 = vld [vmem:[%s5973_s5 + $0x308] sm:$0xff] }
 0x3dd   :  { %2046 = vmatpush1.msra.mxu0 %v1079_v47  ;;  %2135 = vmatpush1.msra.mxu1 %v1081_v48  ;;  %v1166_v47 = vld [vmem:[%s5973_s5 + $0x318] sm:$0xff]  ;;  %v1163_v48 = vld [vmem:[%s5973_s5 + $0x300] sm:$0xff] }
 0x3de   :  { %2047 = vmatprep.subr.mxu0 %v1076_v49  ;;  %2136 = vmatprep.subr.mxu1 %v1078_v50  ;;  %v1165_v49 = vld [vmem:[%s5973_s5 + $0x310] sm:$0xff]  ;;  %v1160_v50 = vld [vmem:[%s5973_s5 + $0x2e8] sm:$0xff] }
 0x3df   :  { %2048 = vmatpush1.msra.mxu0 %v1075_v51  ;;  %2137 = vmatpush1.msra.mxu1 %v1077_v52  ;;  %v1162_v51 = vld [vmem:[%s5973_s5 + $0x2f8] sm:$0xff]  ;;  %v1159_v52 = vld [vmem:[%s5973_s5 + $0x2e0] sm:$0xff] }
 0x3e0   :  { %2049 = vmatprep.subr.mxu0 %v1072_v53  ;;  %2138 = vmatprep.subr.mxu1 %v1074_v54  ;;  %v1161_v53 = vld [vmem:[%s5973_s5 + $0x2f0] sm:$0xff]  ;;  %v1156_v54 = vld [vmem:[%s5973_s5 + $0x2c8] sm:$0xff] }
 0x3e1   :  { %2050 = vmatpush1.msra.mxu0 %v1071_v55  ;;  %2139 = vmatpush1.msra.mxu1 %v1073_v56  ;;  %v1158_v55 = vld [vmem:[%s5973_s5 + $0x2d8] sm:$0xff]  ;;  %v1155_v56 = vld [vmem:[%s5973_s5 + $0x2c0] sm:$0xff] }
 0x3e2   :  { %2051 = vmatprep.subr.mxu0 %v1068_v57  ;;  %2140 = vmatprep.subr.mxu1 %v1070_v58  ;;  %v1157_v57 = vld [vmem:[%s5973_s5 + $0x2d0] sm:$0xff]  ;;  %v1152_v58 = vld [vmem:[%s5973_s5 + $0x2a8] sm:$0xff] }
 0x3e3   :  { %2052 = vmatpush1.msra.mxu0 %v1067_v34  ;;  %2141 = vmatpush1.msra.mxu1 %v1069_v35  ;;  %v1154_v34 = vld [vmem:[%s5973_s5 + $0x2b8] sm:$0xff]  ;;  %v1151_v35 = vld [vmem:[%s5973_s5 + $0x2a0] sm:$0xff] }
 0x3e4   :  { %2053 = vmatprep.subr.mxu0 %v1192_v36  ;;  %2142 = vmatprep.subr.mxu1 %v1194_v37  ;;  %v1153_v36 = vld [vmem:[%s5973_s5 + $0x2b0] sm:$0xff]  ;;  %v1148_v37 = vld [vmem:[%s5973_s5 + $0x288] sm:$0xff] }
 0x3e5   :  { %2054 = vmatpush2.msra.mxu0 %v1191_v38  ;;  %2143 = vmatpush2.msra.mxu1 %v1193_v39  ;;  %v1150_v38 = vld [vmem:[%s5973_s5 + $0x298] sm:$0xff]  ;;  %v1147_v39 = vld [vmem:[%s5973_s5 + $0x280] sm:$0xff] }
 0x3e6   :  { %2055 = vmatprep.subr.mxu0 %v1188_v40  ;;  %2144 = vmatprep.subr.mxu1 %v1190_v41  ;;  %v1149_v40 = vld [vmem:[%s5973_s5 + $0x290] sm:$0xff]  ;;  %v1144_v41 = vld [vmem:[%s5973_s5 + $0x268] sm:$0xff] }
 0x3e7   :  { %2056 = vmatpush2.msra.mxu0 %v1187_v42  ;;  %2145 = vmatpush2.msra.mxu1 %v1189_v43  ;;  %v1146_v42 = vld [vmem:[%s5973_s5 + $0x278] sm:$0xff]  ;;  %v1143_v43 = vld [vmem:[%s5973_s5 + $0x260] sm:$0xff] }
 0x3e8   :  { %2057 = vmatprep.subr.mxu0 %v1184_v44  ;;  %2146 = vmatprep.subr.mxu1 %v1186_v45  ;;  %v1145_v44 = vld [vmem:[%s5973_s5 + $0x270] sm:$0xff]  ;;  %v1140_v45 = vld [vmem:[%s5973_s5 + $0x248] sm:$0xff] }
 0x3e9   :  { %2058 = vmatpush2.msra.mxu0 %v1183_v46  ;;  %2147 = vmatpush2.msra.mxu1 %v1185_v59  ;;  %v1142_v46 = vld [vmem:[%s5973_s5 + $0x258] sm:$0xff]  ;;  %v1139_v59 = vld [vmem:[%s5973_s5 + $0x240] sm:$0xff] }
 0x3ea   :  { %2059 = vmatprep.subr.mxu0 %v1180_v60  ;;  %2148 = vmatprep.subr.mxu1 %v1182_v61  ;;  %v1141_v60 = vld [vmem:[%s5973_s5 + $0x250] sm:$0xff]  ;;  %v1136_v61 = vld [vmem:[%s5973_s5 + $0x228] sm:$0xff] }
 0x3eb   :  { %2060 = vmatpush2.msra.mxu0 %v1179_v62  ;;  %2149 = vmatpush2.msra.mxu1 %v1181_v22  ;;  %v1138_v62 = vld [vmem:[%s5973_s5 + $0x238] sm:$0xff]  ;;  %v1135_v22 = vld [vmem:[%s5973_s5 + $0x220] sm:$0xff] }
 0x3ec   :  { %2061 = vmatprep.subr.mxu0 %v1176_v23  ;;  %2150 = vmatprep.subr.mxu1 %v1178_v10  ;;  %v1137_v23 = vld [vmem:[%s5973_s5 + $0x230] sm:$0xff]  ;;  %v1132_v10 = vld [vmem:[%s5973_s5 + $0x208] sm:$0xff] }
 0x3ed   :  { %2062 = vmatpush2.msra.mxu0 %v1175_v8  ;;  %2151 = vmatpush2.msra.mxu1 %v1177_v24  ;;  %v1134_v8 = vld [vmem:[%s5973_s5 + $0x218] sm:$0xff]  ;;  %v1131_v24 = vld [vmem:[%s5973_s5 + $0x200] sm:$0xff] }
 0x3ee   :  { %2063 = vmatprep.subr.mxu0 %v1172_v25  ;;  %2152 = vmatprep.subr.mxu1 %v1174_v26  ;;  %v1133_v25 = vld [vmem:[%s5973_s5 + $0x210] sm:$0xff] }
 0x3ef   :  { %2064 = vmatpush2.msra.mxu0 %v1171_v27  ;;  %2153 = vmatpush2.msra.mxu1 %v1173_v28  ;;  %v2540_v27 = vld [vmem:[%s5974_s8 + $0xe0] sm:$0xff]  ;;  %v2539_v28 = vld [vmem:[%s5974_s8 + $0xd8] sm:$0xff] }
 0x3f0   :  { %2065 = vmatprep.subr.mxu0 %v1168_v29  ;;  %2154 = vmatprep.subr.mxu1 %v1170_v30  ;;  %v2538_v30 = vld [vmem:[%s5974_s8 + $0xd0] sm:$0xff] }
 0x3f1   :  { %2066 = vmatpush2.msra.mxu0 %v1167_v31  ;;  %2155 = vmatpush2.msra.mxu1 %v1169_v33  ;;  %v2537_v31 = vld [vmem:[%s5974_s8 + $0xc8] sm:$0xff]  ;;  %v2536_v33 = vld [vmem:[%s5974_s8 + $0xc0] sm:$0xff] }
 0x3f2   :  { %2067 = vmatprep.subr.mxu0 %v1164_v32  ;;  %2156 = vmatprep.subr.mxu1 %v1166_v47  ;;  %v2535_v32 = vld [vmem:[%s5974_s8 + $0xb8] sm:$0xff] }
 0x3f3   :  { %2068 = vmatpush2.msra.mxu0 %v1163_v48  ;;  %2157 = vmatpush2.msra.mxu1 %v1165_v49  ;;  %v2534_v48 = vld [vmem:[%s5974_s8 + $0xb0] sm:$0xff]  ;;  %v2533_v49 = vld [vmem:[%s5974_s8 + $0xa8] sm:$0xff] }
 0x3f4   :  { %2069 = vmatprep.subr.mxu0 %v1160_v50  ;;  %2158 = vmatprep.subr.mxu1 %v1162_v51  ;;  %v2532_v50 = vld [vmem:[%s5974_s8 + $0xa0] sm:$0xff]  ;;  %v2531_v51 = vld [vmem:[%s5974_s8 + $0x98] sm:$0xff] }
 0x3f5   :  { %2070 = vmatpush2.msra.mxu0 %v1159_v52  ;;  %2159 = vmatpush2.msra.mxu1 %v1161_v53  ;;  %v2530_v53 = vld [vmem:[%s5974_s8 + $0x90] sm:$0xff] }
 0x3f6   :  { %2071 = vmatprep.subr.mxu0 %v1156_v54  ;;  %2160 = vmatprep.subr.mxu1 %v1158_v55  ;;  %v2529_v54 = vld [vmem:[%s5974_s8 + $0x88] sm:$0xff] }
 0x3f7   :  { %2072 = vmatpush2.msra.mxu0 %v1155_v56  ;;  %2161 = vmatpush2.msra.mxu1 %v1157_v57  ;;  %v2528_v57 = vld [vmem:[%s5974_s8 + $0x80] sm:$0xff] }
 0x3f8   :  { %2073 = vmatprep.subr.mxu0 %v1152_v58  ;;  %2162 = vmatprep.subr.mxu1 %v1154_v34  ;;  %v2527_v58 = vld [vmem:[%s5974_s8 + $0x78] sm:$0xff]  ;;  %v2526_v34 = vld [vmem:[%s5974_s8 + $0x70] sm:$0xff] }
 0x3f9   :  { %2074 = vmatpush2.msra.mxu0 %v1151_v35  ;;  %2163 = vmatpush2.msra.mxu1 %v1153_v36  ;;  %v2525_v35 = vld [vmem:[%s5974_s8 + $0x68] sm:$0xff] }
 0x3fa   :  { %2075 = vmatprep.subr.mxu0 %v1148_v37  ;;  %2164 = vmatprep.subr.mxu1 %v1150_v38  ;;  %v2524_v38 = vld [vmem:[%s5974_s8 + $0x60] sm:$0xff] }
 0x3fb   :  { %2076 = vmatpush2.msra.mxu0 %v1147_v39  ;;  %2165 = vmatpush2.msra.mxu1 %v1149_v40  ;;  %v2523_v39 = vld [vmem:[%s5974_s8 + $0x58] sm:$0xff] }
 0x3fc   :  { %2077 = vmatprep.subr.mxu0 %v1144_v41  ;;  %2166 = vmatprep.subr.mxu1 %v1146_v42  ;;  %v2522_v42 = vld [vmem:[%s5974_s8 + $0x50] sm:$0xff] }
 0x3fd   :  { %2078 = vmatpush2.msra.mxu0 %v1143_v43  ;;  %2167 = vmatpush2.msra.mxu1 %v1145_v44  ;;  %v2521_v43 = vld [vmem:[%s5974_s8 + $0x48] sm:$0xff]  ;;  %v2520_v44 = vld [vmem:[%s5974_s8 + $0x40] sm:$0xff] }
 0x3fe   :  { %2079 = vmatprep.subr.mxu0 %v1140_v45  ;;  %2168 = vmatprep.subr.mxu1 %v1142_v46  ;;  %v2519_v45 = vld [vmem:[%s5974_s8 + $0x38] sm:$0xff] }
 0x3ff   :  { %2080 = vmatpush2.msra.mxu0 %v1139_v59  ;;  %2169 = vmatpush2.msra.mxu1 %v1141_v60  ;;  %v2518_v60 = vld [vmem:[%s5974_s8 + $0x30] sm:$0xff] }
 0x400   :  { %2081 = vmatprep.subr.mxu0 %v1136_v61  ;;  %2170 = vmatprep.subr.mxu1 %v1138_v62  ;;  %v2517_v61 = vld [vmem:[%s5974_s8 + $0x28] sm:$0xff]  ;;  %v2516_v62 = vld [vmem:[%s5974_s8 + $0x20] sm:$0xff] }
 0x401   :  { %2082 = vmatpush2.msra.mxu0 %v1135_v22  ;;  %2171 = vmatpush2.msra.mxu1 %v1137_v23  ;;  %v2515_v22 = vld [vmem:[%s5974_s8 + $0x18] sm:$0xff] }
 0x402   :  { %2083 = vmatprep.subr.mxu0 %v1132_v10  ;;  %2172 = vmatprep.subr.mxu1 %v1134_v8  ;;  %v2514_v8 = vld [vmem:[%s5974_s8 + $0x10] sm:$0xff] }
 0x403   :  { %2084 = vmatpush2.msra.mxu0 %v1131_v24  ;;  %2173 = vmatpush2.msra.mxu1 %v1133_v25  ;;  %v2513_v24 = vld [vmem:[%s5974_s8 + $0x8] sm:$0xff]  ;;  %v2512_v25 = vld [vmem:[%s5974_s8] sm:$0xff] }
 0x404   :  { %2086 = vmatmul.mubr.f32.vlgmr.msra.gmra.mxu0 %v5109_v9  ;;  %2175 = vmatmul.mubr.f32.vlgmr.msra.gmra.mxu1 %v5109_v9  ;;  %v5536_v9 = vpop.f32.mrf.mxu0 }
 0x405   :  { %2091 = vmatprep.mubr.f32.mxu0 %v5115_v12  ;;  %2180 = vmatprep.mubr.f32.mxu1 %v5115_v12 }
 0x408   :  { %2092 = vmatmul.mubr.f32.gmra.mxu0 %v5113_v11  ;;  %2181 = vmatmul.mubr.f32.gmra.mxu1 %v5113_v11  ;;  %v5538_v11 = vpop.f32.mrf.mxu0 }
 0x409   :  { %2097 = vmatprep.mubr.f32.mxu0 %v5119_v14  ;;  %2186 = vmatprep.mubr.f32.mxu1 %v5119_v14 }
 0x40a   :  { %v5540_v12 = vpop.f32.mrf.mxu0 }
 0x40c   :  { %2098 = vmatmul.mubr.f32.gmra.mxu0 %v5117_v13  ;;  %2187 = vmatmul.mubr.f32.gmra.mxu1 %v5117_v13  ;;  %v5542_v14 = vpop.f32.mrf.mxu0  ;;  %v2543_v13 = vld [vmem:[%s5974_s8 + $0xf8] sm:$0xff] }
 0x40d   :  { %2103 = vmatprep.mubr.f32.mxu0 %v5123_v16  ;;  %2192 = vmatprep.mubr.f32.mxu1 %v5123_v16  ;;  %v2541_v16 = vld [vmem:[%s5974_s8 + $0xe8] sm:$0xff] }
 0x40e   :  { %v5544_v26 = vpop.f32.mrf.mxu0  ;;  %2622 = vmatprep.subr.mxu0 %v2543_v13  ;;  %v2575_v13 = vld [vmem:[%s5974_s8 + $0x1f8] sm:$0xff] }
 0x410   :  { %2104 = vmatmul.mubr.f32.gmra.mxu0 %v5121_v15  ;;  %2193 = vmatmul.mubr.f32.gmra.mxu1 %v5121_v15  ;;  %v2542_v15 = vld [vmem:[%s5974_s8 + $0xf0] sm:$0xff]  ;;  %v5561_v29 = vpop.f32.mrf.mxu0 }
 0x411   :  { %2422 = vmatprep.mubr.f32.mxu1 %v3312_v2  ;;  %2623 = vmatpush1.msra.mxu0 %v2542_v15 }
 0x412   :  { %2624 = vmatprep.subr.mxu0 %v2541_v16  ;;  %v5575_v47 = vpop.f32.mrf.mxu0 }
 0x413   :  { %2625 = vmatpush1.msra.mxu0 %v2540_v27  ;;  %v2574_v27 = vld [vmem:[%s5974_s8 + $0x1f0] sm:$0xff] }
 0x414   :  { %2626 = vmatprep.subr.mxu0 %v2539_v28  ;;  %v5589_v52 = vpop.f32.mrf.mxu0  ;;  %v2573_v28 = vld [vmem:[%s5974_s8 + $0x1e8] sm:$0xff] }
 0x415   :  { %2627 = vmatpush1.msra.mxu0 %v2538_v30  ;;  %v2572_v30 = vld [vmem:[%s5974_s8 + $0x1e0] sm:$0xff] }
 0x416   :  { %2628 = vmatprep.subr.mxu0 %v2537_v31  ;;  %v2571_v31 = vld [vmem:[%s5974_s8 + $0x1d8] sm:$0xff] }
 0x417   :  { %2629 = vmatpush1.msra.mxu0 %v2536_v33 }
 0x418   :  { %2630 = vmatprep.subr.mxu0 %v2535_v32 }
 0x419   :  { %2631 = vmatpush1.msra.mxu0 %v2534_v48  ;;  %v2570_v48 = vld [vmem:[%s5974_s8 + $0x1d0] sm:$0xff] }
 0x41a   :  { %2632 = vmatprep.subr.mxu0 %v2533_v49  ;;  %v2569_v49 = vld [vmem:[%s5974_s8 + $0x1c8] sm:$0xff] }
 0x41b   :  { %2633 = vmatpush1.msra.mxu0 %v2532_v50  ;;  %v2568_v50 = vld [vmem:[%s5974_s8 + $0x1c0] sm:$0xff] }
 0x41c   :  { %2634 = vmatprep.subr.mxu0 %v2531_v51  ;;  %v2567_v51 = vld [vmem:[%s5974_s8 + $0x1b8] sm:$0xff] }
 0x41d   :  { %2635 = vmatpush1.msra.mxu0 %v2530_v53 }
 0x41e   :  { %2636 = vmatprep.subr.mxu0 %v2529_v54 }
 0x41f   :  { %2637 = vmatpush1.msra.mxu0 %v2528_v57  ;;  %v2566_v57 = vld [vmem:[%s5974_s8 + $0x1b0] sm:$0xff] }
 0x420   :  { %2638 = vmatprep.subr.mxu0 %v2527_v58  ;;  %v2565_v58 = vld [vmem:[%s5974_s8 + $0x1a8] sm:$0xff] }
 0x421   :  { %2639 = vmatpush1.msra.mxu0 %v2526_v34 }
 0x422   :  { %2640 = vmatprep.subr.mxu0 %v2525_v35 }
 0x423   :  { %2641 = vmatpush1.msra.mxu0 %v2524_v38  ;;  %v2564_v38 = vld [vmem:[%s5974_s8 + $0x1a0] sm:$0xff] }
 0x424   :  { %2642 = vmatprep.subr.mxu0 %v2523_v39  ;;  %v2563_v39 = vld [vmem:[%s5974_s8 + $0x198] sm:$0xff] }
 0x425   :  { %2643 = vmatpush1.msra.mxu0 %v2522_v42 }
 0x426   :  { %2644 = vmatprep.subr.mxu0 %v2521_v43 }
 0x427   :  { %2645 = vmatpush1.msra.mxu0 %v2520_v44  ;;  %v2562_v44 = vld [vmem:[%s5974_s8 + $0x190] sm:$0xff] }
 0x428   :  { %2646 = vmatprep.subr.mxu0 %v2519_v45  ;;  %v2561_v45 = vld [vmem:[%s5974_s8 + $0x188] sm:$0xff] }
 0x429   :  { %2647 = vmatpush1.msra.mxu0 %v2518_v60 }
 0x42a   :  { %2648 = vmatprep.subr.mxu0 %v2517_v61 }
 0x42b   :  { %2649 = vmatpush1.msra.mxu0 %v2516_v62  ;;  %v2560_v62 = vld [vmem:[%s5974_s8 + $0x180] sm:$0xff] }
 0x42c   :  { %2650 = vmatprep.subr.mxu0 %v2515_v22  ;;  %v2559_v22 = vld [vmem:[%s5974_s8 + $0x178] sm:$0xff] }
 0x42d   :  { %2651 = vmatpush1.msra.mxu0 %v2514_v8 }
 0x42e   :  { %2652 = vmatprep.subr.mxu0 %v2513_v24 }
 0x42f   :  { %2653 = vmatpush1.msra.mxu0 %v2512_v25  ;;  %v2558_v25 = vld [vmem:[%s5974_s8 + $0x170] sm:$0xff] }
 0x430   :  { %2654 = vmatprep.subr.mxu0 %v2575_v13  ;;  %v2557_v13 = vld [vmem:[%s5974_s8 + $0x168] sm:$0xff] }
 0x431   :  { %2655 = vmatpush2.msra.mxu0 %v2574_v27 }
 0x432   :  { %2656 = vmatprep.subr.mxu0 %v2573_v28  ;;  %v2556_v28 = vld [vmem:[%s5974_s8 + $0x160] sm:$0xff] }
 0x433   :  { %2657 = vmatpush2.msra.mxu0 %v2572_v30 }
 0x434   :  { %2658 = vmatprep.subr.mxu0 %v2571_v31 }
 0x435   :  { %2659 = vmatpush2.msra.mxu0 %v2570_v48 }
 0x436   :  { %2660 = vmatprep.subr.mxu0 %v2569_v49 }
 0x437   :  { %2661 = vmatpush2.msra.mxu0 %v2568_v50 }
 0x438   :  { %2662 = vmatprep.subr.mxu0 %v2567_v51 }
 0x439   :  { %2663 = vmatpush2.msra.mxu0 %v2566_v57 }
 0x43a   :  { %2664 = vmatprep.subr.mxu0 %v2565_v58 }
 0x43b   :  { %2665 = vmatpush2.msra.mxu0 %v2564_v38 }
 0x43c   :  { %2666 = vmatprep.subr.mxu0 %v2563_v39 }
 0x43d   :  { %2667 = vmatpush2.msra.mxu0 %v2562_v44  ;;  %v2215_v44 = vld [vmem:[%s5975_s6] sm:$0xf] }
 0x43e   :  { %2668 = vmatprep.subr.mxu0 %v2561_v45 }
 0x43f   :  { %2669 = vmatpush2.msra.mxu0 %v2560_v62 }
 0x440   :  { %2670 = vmatprep.subr.mxu0 %v2559_v22 }
 0x441   :  { %2671 = vmatpush2.msra.mxu0 %v2558_v25 }
 0x442   :  { %2672 = vmatprep.subr.mxu0 %v2557_v13  ;;  %v2220_v13 = vrot.slane %v2215_v44, %v178_v0 }
 0x443   :  { %2673 = vmatpush2.msra.mxu0 %v2556_v28 }
 0x47d   :  { %v5597_v55 = vpop.f32.mrf.mxu0  ;;  %v5599_v56 = vpop.f32.mrf.mxu1 }
 0x47f   :  { %v5613_v36 = vpop.f32.mrf.mxu0  ;;  %v5615_v37 = vpop.f32.mrf.mxu1 }
 0x483   :  { %v5623_v40 = vpop.f32.mrf.mxu0  ;;  %v5625_v41 = vpop.f32.mrf.mxu1 }
 0x485   :  { %v5639_v46 = vpop.f32.mrf.mxu0  ;;  %v5641_v59 = vpop.f32.mrf.mxu1 }
 0x489   :  { %v5655_v23 = vpop.f32.mrf.mxu0  ;;  %v5657_v10 = vpop.f32.mrf.mxu1 }
 0x48b   :  { %v5671_v15 = vpop.f32.mrf.mxu0  ;;  %v5673_v16 = vpop.f32.mrf.mxu1 }
 0x48f   :  { %v1927_v33 = vpop.f32.mrf.mxu0  ;;  %v5687_v32 = vpop.f32.mrf.mxu1 }
 0x491   :  { %v1929_v53 = vpop.f32.mrf.mxu0  ;;  %v5701_v54 = vpop.f32.mrf.mxu1 }
 0x4c4   :  { %v2087_v34 = vpop.f32.mrf.mxu0  ;;  %v5709_v35 = vpop.f32.mrf.mxu1 }
 0x4c6   :  { %v2089_v42 = vpop.f32.mrf.mxu0  ;;  %v5717_v43 = vpop.f32.mrf.mxu1 }
 0x4c7   :  { %v2179_v63 = vadd.f32 %v5717_v43, %v5538_v11 }
 0x4c8   :  { %v2093_v60 = vpop.f32.mrf.mxu0  ;;  %v2182_v61 = vpop.f32.mrf.mxu1 }
 0x4c9   :  { %v2094_v22 = vadd.f32 %v2093_v60, %v5129_v18 }
 0x4ca   :  { %v2095_v8 = vpop.f32.mrf.mxu0  ;;  %v2184_v24 = vpop.f32.mrf.mxu1 }
 0x4cb   :  { %v2096_v50 = vadd.f32 %v2095_v8, %v5131_v19  ;;  %v2224_v8 = vrot.slane %v2215_v44, %v182_v3  ;;  %v2228_v3 = vrot.slane %v2215_v44, %v186_v1 }
 0x4cc   :  { %v2099_v27 = vpop.f32.mrf.mxu0  ;;  %v2188_v30 = vpop.f32.mrf.mxu1 }
 0x4cd   :  { %v2100_v39 = vadd.f32 %v2099_v27, %v5133_v6  ;;  %v2204_v45 = vadd.f32 %v2096_v50, %v5639_v46  ;;  %v2088_v6 = vadd.f32 %v2087_v34, %v5125_v5 }
 0x4ce   :  { %v2101_v31 = vpop.f32.mrf.mxu0  ;;  %v2190_v48 = vpop.f32.mrf.mxu1 }
 0x4cf   :  { %v2102_v38 = vadd.f32 %v2101_v31, %v5135_v20  ;;  %v2207_v46 = vadd.f32 %v2100_v39, %v5655_v23  ;;  %v2242_v27 = vadd.f32 %v2224_v8, %v2204_v45  ;;  %v2191_v34 = vadd.f32 %v2190_v48, %v5561_v29 }
 0x4d0   :  { %v2105_v49 = vpop.f32.mrf.mxu0  ;;  %v2194_v57 = vpop.f32.mrf.mxu1  ;;  %v2199_v0 = vadd.f32 %v2088_v6, %v5597_v55  ;;  %v2232_v23 = vrot.slane %v2215_v44, %v190_v4 }
 0x4d1   :  { %v2106_v51 = vadd.f32 %v2105_v49, %v5137_v21  ;;  %v2090_v21 = vadd.f32 %v2089_v42, %v5127_v17  ;;  %v2208_v20 = vadd.f32 %v2102_v38, %v5671_v15  ;;  %v2195_v17 = vadd.f32 %v2194_v57, %v5575_v47 }
 0x4d2   :  { %v2107_v58 = vpop.f32.mrf.mxu0  ;;  %v2196_v19 = vpop.f32.mrf.mxu1  ;;  %v2185_v42 = vadd.f32 %v2184_v24, %v5542_v14  ;;  %v2210_v55 = vadd.f32 %v2191_v34, %v5673_v16  ;;  %v2177_v14 = vadd.f32 %v5709_v35, %v5536_v9  ;;  %v2202_v16 = vadd.f32 %v2179_v63, %v5615_v37 }
 0x4d3   :  { %v2108_v62 = vadd.f32 %v2107_v58, %v5139_v7  ;;  %v2211_v25 = vadd.f32 %v2106_v51, %v1927_v33  ;;  %v2197_v18 = vadd.f32 %v2196_v19, %v5589_v52  ;;  %v2203_v33 = vadd.f32 %v2094_v22, %v5623_v40 }
 0x4d4   :  { %v2200_v15 = vadd.f32 %v2090_v21, %v5613_v36  ;;  %v2246_v5 = vadd.f32 %v2224_v8, %v2208_v20  ;;  %v2189_v52 = vadd.f32 %v2188_v30, %v5544_v26  ;;  %v3118_v40 = vmul.f32 -1.442695, %v2242_v27 }
 0x4d5   :  { %v2212_v7 = vadd.f32 %v2108_v62, %v1929_v53  ;;  %v2249_v60 = vadd.f32 %v2220_v13, %v2211_v25  ;;  %v2245_v53 = vadd.f32 %v2220_v13, %v2207_v46  ;;  %v2214_v28 = vadd.f32 %v2197_v18, %v5701_v54 }
 0x4d6   :  { %v2241_v1 = vadd.f32 %v2220_v13, %v2203_v33  ;;  %v2183_v36 = vadd.f32 %v2182_v61, %v5540_v12  ;;  %v2213_v29 = vadd.f32 %v2195_v17, %v5687_v32  ;;  %v2238_v48 = vadd.f32 %v2224_v8, %v2200_v15 }
 0x4d7   :  { %v2250_v47 = vadd.f32 %v2224_v8, %v2212_v7  ;;  %v3125_v31 = vmul.f32 -1.442695, %v2249_v60  ;;  %v3122_v4 = vmul.f32 -1.442695, %v2246_v5  ;;  %v2237_v26 = vadd.f32 %v2220_v13, %v2199_v0 }
 0x4d8   :  { %v3121_v24 = vmul.f32 -1.442695, %v2245_v53  ;;  %v2209_v54 = vadd.f32 %v2189_v52, %v5657_v10  ;;  %3248 = vpow2.f32 %v3118_v40  ;;  %v2206_v12 = vadd.f32 %v2185_v42, %v5641_v59 }
 0x4d9   :  { %v3126_v61 = vmul.f32 -1.442695, %v2250_v47  ;;  %v2252_v30 = vadd.f32 %v2232_v23, %v2214_v28  ;;  %v3117_v32 = vmul.f32 -1.442695, %v2241_v1  ;;  %v2205_v49 = vadd.f32 %v2183_v36, %v5625_v41 }
 0x4da   :  { %3250 = vpow2.f32 %v3125_v31  ;;  %v2251_v11 = vadd.f32 %v2228_v3, %v2213_v29  ;;  %v3114_v43 = vmul.f32 -1.442695, %v2238_v48  ;;  %v2248_v50 = vadd.f32 %v2232_v23, %v2210_v55 }
 0x4db   :  { %3252 = vpow2.f32 %v3122_v4  ;;  %v3113_v51 = vmul.f32 -1.442695, %v2237_v26  ;;  %v2201_v9 = vadd.f32 %v2177_v14, %v5599_v56  ;;  %v2247_v10 = vadd.f32 %v2228_v3, %v2209_v54 }
 0x4dc   :  { %3254 = vpow2.f32 %v3121_v24  ;;  %v2244_v35 = vadd.f32 %v2232_v23, %v2206_v12  ;;  %v3128_v59 = vmul.f32 -1.442695, %v2252_v30  ;;  %v2243_v57 = vadd.f32 %v2228_v3, %v2205_v49  ;;  %v2349_v12 = vld [vmem:[%s5976_s7] sm:$0xff] }
 0x4dd   :  { %3256 = vpow2.f32 %v3126_v61  ;;  %v3127_v58 = vmul.f32 -1.442695, %v2251_v11  ;;  %v2240_v41 = vadd.f32 %v2232_v23, %v2202_v16  ;;  %v3124_v38 = vmul.f32 -1.442695, %v2248_v50  ;;  %v2350_v11 = vld [vmem:[%s5976_s7 + $0x8] sm:$0xff] }
 0x4de   :  { %3258 = vpow2.f32 %v3117_v32  ;;  %v2239_v39 = vadd.f32 %v2228_v3, %v2201_v9  ;;  %v3123_v44 = vmul.f32 -1.442695, %v2247_v10  ;;  %v3120_v37 = vmul.f32 -1.442695, %v2244_v35  ;;  %v2607_v9 = vld [vmem:[%s5974_s8 + $0x2f8] sm:$0xff]  ;;  %v2606_v35 = vld [vmem:[%s5974_s8 + $0x2f0] sm:$0xff] }
 0x4df   :  { %3260 = vpow2.f32 %v3114_v43  ;;  %v3119_v45 = vmul.f32 -1.442695, %v2243_v57  ;;  %v3116_v62 = vmul.f32 -1.442695, %v2240_v41  ;;  %v2604_v57 = vld [vmem:[%s5974_s8 + $0x2e0] sm:$0xff]  ;;  %v2602_v41 = vld [vmem:[%s5974_s8 + $0x2d0] sm:$0xff] }
 0x4e0   :  { %3262 = vpow2.f32 %v3113_v51  ;;  %v3115_v56 = vmul.f32 -1.442695, %v2239_v39  ;;  %v2599_v39 = vld [vmem:[%s5974_s8 + $0x2b8] sm:$0xff] }
 0x4e1   :  { %3264 = vpow2.f32 %v3128_v59  ;;  %v2605_v59 = vld [vmem:[%s5974_s8 + $0x2e8] sm:$0xff] }
 0x4e2   :  { %3266 = vpow2.f32 %v3127_v58  ;;  %v2603_v58 = vld [vmem:[%s5974_s8 + $0x2d8] sm:$0xff] }
 0x4e3   :  { %3268 = vpow2.f32 %v3124_v38  ;;  %v2601_v38 = vld [vmem:[%s5974_s8 + $0x2c8] sm:$0xff] }
 0x4e4   :  { %3270 = vpow2.f32 %v3123_v44  ;;  %v2598_v44 = vld [vmem:[%s5974_s8 + $0x2b0] sm:$0xff] }
 0x4e5   :  { %3272 = vpow2.f32 %v3120_v37  ;;  %v3249_v22 = vpop.eup %3248  ;;  %v2597_v37 = vld [vmem:[%s5974_s8 + $0x2a8] sm:$0xff] }
 0x4e6   :  { %3274 = vpow2.f32 %v3119_v45  ;;  %v2306_v33 = vadd.f32 1.0, %v3249_v22  ;;  %v2596_v45 = vld [vmem:[%s5974_s8 + $0x2a0] sm:$0xff]  ;;  %v2593_v22 = vld [vmem:[%s5974_s8 + $0x288] sm:$0xff] }
 0x4e7   :  { %v3251_v25 = vpop.eup %3250  ;;  %3276 = vpow2.f32 %v3116_v62  ;;  %v2595_v62 = vld [vmem:[%s5974_s8 + $0x298] sm:$0xff] }
 0x4e8   :  { %v3253_v19 = vpop.eup %3252  ;;  %3278 = vpow2.f32 %v3115_v56  ;;  %v2313_v20 = vadd.f32 1.0, %v3251_v25  ;;  %v2594_v56 = vld [vmem:[%s5974_s8 + $0x290] sm:$0xff]  ;;  %v2592_v25 = vld [vmem:[%s5974_s8 + $0x280] sm:$0xff] }
 0x4e9   :  { %v3255_v21 = vpop.eup %3254  ;;  %v2310_v13 = vadd.f32 1.0, %v3253_v19  ;;  %v2591_v19 = vld [vmem:[%s5974_s8 + $0x278] sm:$0xff] }
 0x4ea   :  { %v3257_v8 = vpop.eup %3256  ;;  %v2309_v7 = vadd.f32 1.0, %v3255_v21  ;;  %v2590_v21 = vld [vmem:[%s5974_s8 + $0x270] sm:$0xff] }
 0x4eb   :  { %v3259_v6 = vpop.eup %3258  ;;  %v2314_v46 = vadd.f32 1.0, %v3257_v8  ;;  %v2589_v8 = vld [vmem:[%s5974_s8 + $0x268] sm:$0xff] }
 0x4ec   :  { %v3261_v27 = vpop.eup %3260  ;;  %v2305_v17 = vadd.f32 1.0, %v3259_v6  ;;  %v2587_v6 = vld [vmem:[%s5974_s8 + $0x258] sm:$0xff] }
 0x4ed   :  { %v3263_v18 = vpop.eup %3262  ;;  %3280 = vrcp.f32 %v2314_v46  ;;  %v2302_v15 = vadd.f32 1.0, %v3261_v27  ;;  %v2585_v46 = vld [vmem:[%s5974_s8 + $0x248] sm:$0xff]  ;;  %v2584_v27 = vld [vmem:[%s5974_s8 + $0x240] sm:$0xff] }
 0x4ee   :  { %v3265_v60 = vpop.eup %3264  ;;  %3282 = vrcp.f32 %v2313_v20  ;;  %v2301_v34 = vadd.f32 1.0, %v3263_v18  ;;  %v2588_v20 = vld [vmem:[%s5974_s8 + $0x260] sm:$0xff]  ;;  %v2582_v18 = vld [vmem:[%s5974_s8 + $0x230] sm:$0xff] }
 0x4ef   :  { %v3267_v3 = vpop.eup %3266  ;;  %3284 = vrcp.f32 %v2310_v13  ;;  %v2316_v23 = vadd.f32 1.0, %v3265_v60  ;;  %v2586_v13 = vld [vmem:[%s5974_s8 + $0x250] sm:$0xff]  ;;  %v2580_v60 = vld [vmem:[%s5974_s8 + $0x220] sm:$0xff] }
 0x4f0   :  { %v3269_v5 = vpop.eup %3268  ;;  %3286 = vrcp.f32 %v2309_v7  ;;  %v2315_v52 = vadd.f32 1.0, %v3267_v3  ;;  %v2583_v7 = vld [vmem:[%s5974_s8 + $0x238] sm:$0xff]  ;;  %v2554_v3 = vld [vmem:[%s5974_s8 + $0x150] sm:$0xff] }
 0x4f1   :  { %v3271_v0 = vpop.eup %3270  ;;  %3288 = vrcp.f32 %v2306_v33  ;;  %v2312_v42 = vadd.f32 1.0, %v3269_v5  ;;  %v2581_v33 = vld [vmem:[%s5974_s8 + $0x228] sm:$0xff]  ;;  %v2552_v5 = vld [vmem:[%s5974_s8 + $0x140] sm:$0xff] }
 0x4f2   :  { %v3273_v53 = vpop.eup %3272  ;;  %3290 = vrcp.f32 %v2305_v17  ;;  %v2311_v28 = vadd.f32 1.0, %v3271_v0  ;;  %v2555_v17 = vld [vmem:[%s5974_s8 + $0x158] sm:$0xff]  ;;  %v2550_v0 = vld [vmem:[%s5974_s8 + $0x130] sm:$0xff] }
 0x4f3   :  { %v3275_v40 = vpop.eup %3274  ;;  %3292 = vrcp.f32 %v2302_v15  ;;  %v2308_v36 = vadd.f32 1.0, %v3273_v53  ;;  %2674 = vmatprep.subr.mxu0 %v2555_v17  ;;  %v2553_v15 = vld [vmem:[%s5974_s8 + $0x148] sm:$0xff]  ;;  %v2548_v53 = vld [vmem:[%s5974_s8 + $0x120] sm:$0xff] }
 0x4f4   :  { %v3277_v47 = vpop.eup %3276  ;;  %3294 = vrcp.f32 %v2301_v34  ;;  %v2307_v31 = vadd.f32 1.0, %v3275_v40  ;;  %2675 = vmatpush2.msra.mxu0 %v2554_v3  ;;  %v2551_v34 = vld [vmem:[%s5974_s8 + $0x138] sm:$0xff]  ;;  %v2578_v40 = vld [vmem:[%s5974_s8 + $0x210] sm:$0xff] }
 0x4f5   :  { %v3279_v1 = vpop.eup %3278  ;;  %3296 = vrcp.f32 %v2316_v23  ;;  %v2304_v29 = vadd.f32 1.0, %v3277_v47  ;;  %2676 = vmatprep.subr.mxu0 %v2553_v15  ;;  %v2549_v23 = vld [vmem:[%s5974_s8 + $0x128] sm:$0xff]  ;;  %v2546_v47 = vld [vmem:[%s5974_s8 + $0x110] sm:$0xff] }
 0x4f6   :  { %3298 = vrcp.f32 %v2315_v52  ;;  %v2303_v48 = vadd.f32 1.0, %v3279_v1  ;;  %2677 = vmatpush2.msra.mxu0 %v2552_v5  ;;  %v2579_v52 = vld [vmem:[%s5974_s8 + $0x218] sm:$0xff]  ;;  %v2576_v1 = vld [vmem:[%s5974_s8 + $0x200] sm:$0xff] }
 0x4f7   :  { %3300 = vrcp.f32 %v2312_v42  ;;  %2678 = vmatprep.subr.mxu0 %v2551_v34  ;;  %v2547_v42 = vld [vmem:[%s5974_s8 + $0x118] sm:$0xff] }
 0x4f8   :  { %3302 = vrcp.f32 %v2311_v28  ;;  %2679 = vmatpush2.msra.mxu0 %v2550_v0  ;;  %v2577_v28 = vld [vmem:[%s5974_s8 + $0x208] sm:$0xff] }
 0x4f9   :  { %3304 = vrcp.f32 %v2308_v36  ;;  %2680 = vmatprep.subr.mxu0 %v2549_v23  ;;  %v2545_v36 = vld [vmem:[%s5974_s8 + $0x108] sm:$0xff] }
 0x4fa   :  { %v3281_v63 = vpop.eup %3280  ;;  %3306 = vrcp.f32 %v2307_v31  ;;  %2681 = vmatpush2.msra.mxu0 %v2548_v53  ;;  %v2544_v31 = vld [vmem:[%s5974_s8 + $0x100] sm:$0xff] }
 0x4fb   :  { %v3283_v4 = vpop.eup %3282  ;;  %3308 = vrcp.f32 %v2304_v29  ;;  %2382 = vmatprep.subr.mxu1 %v3281_v63  ;;  %2682 = vmatprep.subr.mxu0 %v2547_v42  ;;  %v2615_v29 = vld [vmem:[%s5974_s8 + $0x338] sm:$0xff]  ;;  %v2613_v63 = vld [vmem:[%s5974_s8 + $0x328] sm:$0xff] }
 0x4fc   :  { %v3285_v55 = vpop.eup %3284  ;;  %3310 = vrcp.f32 %v2303_v48  ;;  %2383 = vmatpush1.msra.mxu1 %v3283_v4  ;;  %2683 = vmatpush2.msra.mxu0 %v2546_v47  ;;  %v2614_v48 = vld [vmem:[%s5974_s8 + $0x330] sm:$0xff]  ;;  %v2612_v4 = vld [vmem:[%s5974_s8 + $0x320] sm:$0xff] }
 0x4fd   :  { %v3287_v26 = vpop.eup %3286  ;;  %2384 = vmatprep.subr.mxu1 %v3285_v55  ;;  %2684 = vmatprep.subr.mxu0 %v2545_v36  ;;  %v2611_v55 = vld [vmem:[%s5974_s8 + $0x318] sm:$0xff] }
 0x4fe   :  { %v3289_v14 = vpop.eup %3288  ;;  %2385 = vmatpush1.msra.mxu1 %v3287_v26  ;;  %2685 = vmatpush2.msra.mxu0 %v2544_v31  ;;  %v2610_v26 = vld [vmem:[%s5974_s8 + $0x310] sm:$0xff] }
 0x4ff   :  { %v3291_v24 = vpop.eup %3290  ;;  %2386 = vmatprep.subr.mxu1 %v3289_v14  ;;  %v2609_v14 = vld [vmem:[%s5974_s8 + $0x308] sm:$0xff] }
 0x500   :  { %v3293_v54 = vpop.eup %3292  ;;  %2387 = vmatpush1.msra.mxu1 %v3291_v24  ;;  %v2608_v24 = vld [vmem:[%s5974_s8 + $0x300] sm:$0xff] }
 0x501   :  { %v3295_v61 = vpop.eup %3294  ;;  %2388 = vmatprep.subr.mxu1 %v3293_v54 }
 0x502   :  { %v3297_v30 = vpop.eup %3296  ;;  %2389 = vmatpush1.msra.mxu1 %v3295_v61 }
 0x503   :  { %v3299_v32 = vpop.eup %3298  ;;  %2459 = vmatprep.subr.mxu1 %v3297_v30  ;;  %3129 = vmatmul.mubr.msk.f32.vlgmr.msra.gmra.mxu1 %vm2351_vm4, %v2349_v12 }
 0x504   :  { %v3301_v49 = vpop.eup %3300  ;;  %2460 = vmatpush1.msra.mxu1 %v3299_v32  ;;  %2428 = vmatprep.mubr.f32.mxu1 %v3312_v2 }
 0x505   :  { %v3303_v43 = vpop.eup %3302  ;;  %2461 = vmatprep.subr.mxu1 %v3301_v49 }
 0x506   :  { %v3305_v16 = vpop.eup %3304  ;;  %2462 = vmatpush1.msra.mxu1 %v3303_v43 }
 0x507   :  { %v3307_v50 = vpop.eup %3306  ;;  %2463 = vmatprep.subr.mxu1 %v3305_v16  ;;  %3130 = vmatmul.mubr.msk.f32.gmra.mxu1 %vm2351_vm4, %v2350_v11 }
 0x508   :  { %v3309_v51 = vpop.eup %3308  ;;  %2464 = vmatpush1.msra.mxu1 %v3307_v50  ;;  %2499 = vmatprep.mubr.f32.mxu1 %v3312_v2 }
 0x509   :  { %v3311_v10 = vpop.eup %3310  ;;  %2465 = vmatprep.subr.mxu1 %v3309_v51 }
 0x50a   :  { %2466 = vmatpush1.msra.mxu1 %v3311_v10 }
 0x50b   :  { %3131 = vmatmul.mubr.msk.f32.vlgmr.msra.gmra.mxu1 %vm2351_vm4, %v2349_v12  ;;  %2699 = vmatprep.subr.mxu1 %v2607_v9 }
 0x50c   :  { %2505 = vmatprep.mubr.f32.mxu1 %v3312_v2  ;;  %2700 = vmatpush1.msra.mxu1 %v2606_v35  ;;  %v2600_v2 = vld [vmem:[%s5974_s8 + $0x2c0] sm:$0xff] }
 0x50d   :  { %2701 = vmatprep.subr.mxu1 %v2605_v59 }
 0x50e   :  { %2702 = vmatpush1.msra.mxu1 %v2604_v57 }
 0x50f   :  { %3132 = vmatmul.mubr.msk.f32.gmra.mxu1 %vm2351_vm4, %v2350_v11  ;;  %2703 = vmatprep.subr.mxu1 %v2603_v58 }
 0x510   :  { %2704 = vmatpush1.msra.mxu1 %v2602_v41 }
 0x511   :  { %2705 = vmatprep.subr.mxu1 %v2601_v38 }
 0x512   :  { %2706 = vmatpush1.msra.mxu1 %v2600_v2 }
 0x513   :  { %2707 = vmatprep.subr.mxu1 %v2599_v39 }
 0x514   :  { %2708 = vmatpush1.msra.mxu1 %v2598_v44 }
 0x515   :  { %2709 = vmatprep.subr.mxu1 %v2597_v37 }
 0x516   :  { %2710 = vmatpush1.msra.mxu1 %v2596_v45 }
 0x517   :  { %2711 = vmatprep.subr.mxu1 %v2595_v62 }
 0x518   :  { %2712 = vmatpush1.msra.mxu1 %v2594_v56 }
 0x519   :  { %2713 = vmatprep.subr.mxu1 %v2593_v22 }
 0x51a   :  { %2714 = vmatpush1.msra.mxu1 %v2592_v25 }
 0x51b   :  { %2715 = vmatprep.subr.mxu1 %v2591_v19 }
 0x51c   :  { %2716 = vmatpush1.msra.mxu1 %v2590_v21 }
 0x51d   :  { %2717 = vmatprep.subr.mxu1 %v2589_v8 }
 0x51e   :  { %2718 = vmatpush1.msra.mxu1 %v2588_v20 }
 0x51f   :  { %2719 = vmatprep.subr.mxu1 %v2587_v6 }
 0x520   :  { %2720 = vmatpush1.msra.mxu1 %v2586_v13 }
 0x521   :  { %2721 = vmatprep.subr.mxu1 %v2585_v46 }
 0x522   :  { %2722 = vmatpush1.msra.mxu1 %v2584_v27 }
 0x523   :  { %2723 = vmatprep.subr.mxu1 %v2583_v7 }
 0x524   :  { %2724 = vmatpush1.msra.mxu1 %v2582_v18 }
 0x525   :  { %2725 = vmatprep.subr.mxu1 %v2581_v33 }
 0x526   :  { %2726 = vmatpush1.msra.mxu1 %v2580_v60 }
 0x527   :  { %2727 = vmatprep.subr.mxu1 %v2579_v52 }
 0x528   :  { %2728 = vmatpush1.msra.mxu1 %v2578_v40 }
 0x529   :  { %2729 = vmatprep.subr.mxu1 %v2577_v28 }
 0x52a   :  { %2730 = vmatpush1.msra.mxu1 %v2576_v1 }
 0x52b   :  { %2755 = vmatprep.subr.mxu1 %v2615_v29 }
 0x52c   :  { %2756 = vmatpush2.msra.mxu1 %v2614_v48 }
 0x52d   :  { %2757 = vmatprep.subr.mxu1 %v2613_v63 }
 0x52e   :  { %2758 = vmatpush2.msra.mxu1 %v2612_v4 }
 0x52f   :  { %2759 = vmatprep.subr.mxu1 %v2611_v55 }
 0x530   :  { %2760 = vmatpush2.msra.mxu1 %v2610_v26 }
 0x531   :  { %2761 = vmatprep.subr.mxu1 %v2609_v14 }
 0x532   :  { %2762 = vmatpush2.msra.mxu1 %v2608_v24 }
 0x5c3   :  { %v2424_v54 = vpop.f32.mrf.mxu1 }
 0x5c5   :  { %v2426_v12 = vpop.f32.mrf.mxu1 }
 0x5c6   :  { %2686 = vmatprep.mubr.f32.mxu0 %v2426_v12 }
 0x5c7   :  { %v2430_v61 = vpop.f32.mrf.mxu1  ;;  %2687 = vmatmul.mubr.f32.vlgmr.msra.gmra.mxu0 %v2424_v54 }
 0x5c9   :  { %v2432_v30 = vpop.f32.mrf.mxu1 }
 0x5ca   :  { %2692 = vmatprep.mubr.f32.mxu0 %v2432_v30 }
 0x5cb   :  { %v2501_v32 = vpop.f32.mrf.mxu1  ;;  %2693 = vmatmul.mubr.f32.gmra.mxu0 %v2430_v61 }
 0x5cd   :  { %v2503_v49 = vpop.f32.mrf.mxu1 }
 0x5ce   :  { %3133 = vmatprep.mubr.msk.f32.mxu1 %vm2351_vm4, %v2503_v49 }
 0x5cf   :  { %v2507_v11 = vpop.f32.mrf.mxu1  ;;  %2764 = vmatmul.mubr.f32.vlgmr.msra.gmra.mxu1 %v2501_v32 }
 0x5d1   :  { %v2509_v43 = vpop.f32.mrf.mxu1 }
 0x5d2   :  { %3134 = vmatprep.mubr.msk.f32.mxu1 %vm2351_vm4, %v2509_v43 }
 0x5d3   :  { %2770 = vmatmul.mubr.f32.gmra.mxu1 %v2507_v11 }
 0x687   :  { %v2688_v16 = vpop.f32.mrf.mxu0 }
 0x689   :  { %v2690_v50 = vpop.f32.mrf.mxu0 }
 0x68b   :  { %v2694_v35 = vpop.f32.mrf.mxu0 }
 0x68d   :  { %v2696_v41 = vpop.f32.mrf.mxu0 }
 0x68f   :  { %v2765_v51 = vpop.f32.mrf.mxu1 }
 0x690   :  { %v2766_v9 = vadd.f32 %v2765_v51, %v2688_v16 }
 0x691   :  { %v2767_v10 = vpop.f32.mrf.mxu1 }
 0x692   :  { %2776 = vst [vmem:[%s5977_s9] sm:$0xff] %v2766_v9  ;;  %v2768_v59 = vadd.f32 %v2767_v10, %v2690_v50 }
 0x693   :  { %v2771_v57 = vpop.f32.mrf.mxu1 }
 0x694   :  { %2777 = vst.msk [vmem:[%s5977_s9 + $0x8] sm:$0xff] %vm725_vm2, %v2768_v59  ;;  %v2772_v58 = vadd.f32 %v2771_v57, %v2694_v35 }
 0x695   :  { %v2773_v38 = vpop.f32.mrf.mxu1 }
 0x696   :  { %2778 = vst [vmem:[%s5977_s9 + $0x10] sm:$0xff] %v2772_v58  ;;  %v2774_v2 = vadd.f32 %v2773_v38, %v2696_v41 }
 0x698   :  { %2779 = vst.msk [vmem:[%s5977_s9 + $0x18] sm:$0xff] %vm725_vm2, %v2774_v2 }

</bundles_post_ra>
